<compile_context>
chip_gen: v6e
topology: v6e:2x2x1
jax: 0.10.0
libtpu: 0.0.40
codegen_flags: <defaults>
</compile_context>

<pallas_src>
import functools

import jax
import jax.numpy as jnp
from jax import lax
from jax.experimental import pallas as pl
from jax.experimental.pallas import tpu as pltpu


# ---------------------------------------------------------------------------
# Helpers
# ---------------------------------------------------------------------------

def _cdiv(a, b):
    return (a + b - 1) // b


def _round_up(x, m):
    return _cdiv(x, m) * m


def _vmem_limit_bytes():
    """Per-generation scoped-VMEM limit: ~96 MiB on 128-MiB parts, ~48 MiB on v7x (64 MiB)."""
    try:
        cap = int(pltpu.get_tpu_info().vmem_capacity_bytes)
    except Exception:                       # pragma: no cover - conservative fallback
        cap = 64 * 1024 * 1024
    return max(32 << 20, min(cap * 3 // 4, cap - (16 << 20)))


def _batch_pack(n, rows_per_image, target_rows=256, max_rows=4096):
    """Images per grid step so the matmul M dim fills the 256-row MXU (divisor of n)."""
    nb = 1
    for d in range(1, n + 1):
        if n % d != 0 or d * rows_per_image > max_rows:
            continue
        nb = d
        if d * rows_per_image >= target_rows:
            break
    return nb


def _k_tile(cin, cap=512):
    """cin (K) tile for the 1x1 conv: a multiple-of-128 divisor of cin, else no tiling."""
    if cin <= cap:
        return cin
    for t in range(cap, 127, -128):
        if cin % t == 0:
            return t
    return cin


def _row_tile(m, min_steps=8, cap=1024):
    """Head row tile: multiple of 8, >= min_steps grid steps for pipelining / dual core."""
    if m <= 8:
        return max(m, 1)
    t = _round_up(_cdiv(m, min_steps), 8)
    return max(8, min(cap, t))


def bn_affine(gamma, beta, mean, var, eps=1e-5):
    scale = gamma / jnp.sqrt(var + eps)
    return scale, beta - mean * scale


# ---------------------------------------------------------------------------
# Pallas kernels
# ---------------------------------------------------------------------------

def _deconv_fused_kernel(x_ref, w1_ref, s1_ref, wt_ref, s2_ref, o_ref,
                         acc_ref, xpad_ref, *, nb, h, w, mid):
    """deconv[0..3] for `nb` images; BN scales pre-folded into the weights.

    x_ref  : (nb, h*w, ck)        cin-tile of the layer4 features (channels-last rows)
    w1_ref : (ck, mid)            1x1 conv weight tile * BN1 scale
    s1_ref : (1, mid)             folded conv bias + BN1 shift (f32)
    wt_ref : (2, 2, 4*mid, mid)   transpose-conv weight pre-stacked per output parity
    s2_ref : (1, mid)             folded deconv bias + BN2 shift (f32)
    o_ref  : (nb, h, 2, w, 2*mid) sub-pixel output; row-major view == (nb, 2h, 2w, mid)
    acc_ref: (nb*h*w, mid) f32    1x1-conv accumulator across the cin grid axis
    xpad_ref: (nb, h+2, w+2, mid) per-image halo buffer (compute dtype)
    """
    k = pl.program_id(1)
    nk = pl.num_programs(1)
    f32 = jnp.float32
    ck = x_ref.shape[-1]

    @pl.when(k == 0)
    def _():
        acc_ref[...] = jnp.zeros_like(acc_ref)

    # deconv[0]: partial 1x1 conv over this cin tile (bf16 MXU, f32 accumulation).
    acc_ref[...] += jnp.dot(x_ref[...].reshape(nb * h * w, ck), w1_ref[...],
                            preferred_element_type=f32)

    @pl.when(k == nk - 1)
    def _():
        # Build the zero-padded halo with dense stores only (no masked column stores).
        # Re-done every output-producing step so megacore sharding of the batch axis is safe.
        xpad_ref[...] = jnp.zeros(xpad_ref.shape, xpad_ref.dtype)
        h1 = acc_ref[...] + s1_ref[...]
        xpad_ref[:, 1:h + 1, 1:w + 1, :] = h1.reshape(nb, h, w, mid).astype(xpad_ref.dtype)

        # deconv[2]: ConvTranspose2d(k=4, s=2, p=1) + folded BN2 via sub-pixel decomposition.
        # Output index oy = 2*iy - 1 + ky, so each output parity is the sum of exactly 4 taps.
        # The 4 shifted windows are lane-concatenated (K = 4*mid) and hit the MXU once per
        # parity against the pre-stacked weight -> 4 matmuls, no accumulator adds, and no
        # dictionary of 9 live window copies.
        off = ((1, 0), (2, 1))          # padded window offset per (output parity, tap slot)
        for py in range(2):
            halves = []
            for px in range(2):
                lhs = jnp.concatenate(
                    [xpad_ref[:, off[py][dy]:off[py][dy] + h,
                              off[px][dx]:off[px][dx] + w, :].reshape(nb * h * w, mid)
                     for dy in range(2) for dx in range(2)],
                    axis=-1)
                y = jnp.dot(lhs, wt_ref[py, px], preferred_element_type=f32) + s2_ref[...]
                halves.append(y.reshape(nb, h, w, mid))
            # Lane-concat the two x-parities -> dense (nb, h, w, 2*mid) store whose wrapper
            # reshape to (n, 2h, 2w, mid) is a free row-major view (no HBM transpose).
            o_ref[:, :, py, :, :] = jnp.concatenate(halves, axis=-1).astype(o_ref.dtype)


def _head_kernel(h2_ref, f3_ref, w4_ref, s3_ref, wc_ref, bc_ref, o_ref):
    """x0 rows = relu(h2 @ w4' + s3') + (f3 @ wc + bc).  BN3 folded into w4/s3."""
    y = jnp.dot(h2_ref[...], w4_ref[...], preferred_element_type=jnp.float32) + s3_ref[...]
    y = jnp.maximum(y, 0.0)
    z = jnp.dot(f3_ref[...], wc_ref[...], preferred_element_type=jnp.float32) + bc_ref[...]
    o_ref[...] = (y + z).astype(o_ref.dtype)


# ---------------------------------------------------------------------------
# pallas_call wrappers
# ---------------------------------------------------------------------------

def deconv_branch(f4_nhwc, params, compute_dtype):
    """deconv[0..3](xs['1']) -> (n, 2h, 2w, mid) in compute_dtype (NHWC)."""
    n, h, w, cin = f4_nhwc.shape
    mid = params['w_d0'].shape[1]
    cdt = jnp.dtype(compute_dtype)

    s1, t1 = bn_affine(*params['bn1'])
    s2, t2 = bn_affine(*params['bn2'])
    w1 = (params['w_d0'] * s1[None, :]).astype(compute_dtype)
    sh1 = (params['b_d0'] * s1 + t1).reshape(1, mid).astype(jnp.float32)
    sh2 = (params['b_dt'] * s2 + t2).reshape(1, mid).astype(jnp.float32)

    # Pre-stack the BN2-folded transpose-conv weight per output parity, rows ordered to match
    # the in-kernel window concat order (dy, dx) = (0,0),(0,1),(1,0),(1,1).
    wt = params['w_dt'] * s2[None, None, None, :]            # (ky, kx, mid, mid)
    ktap = ((1, 3), (0, 2))                                  # kernel tap per (parity, slot)
    wt_stacked = jnp.stack([
        jnp.stack([
            jnp.concatenate([wt[ktap[py][dy], ktap[px][dx]]
                             for dy in range(2) for dx in range(2)], axis=0)
            for px in range(2)])
        for py in range(2)]).astype(compute_dtype)           # (2, 2, 4*mid, mid)

    nb = _batch_pack(n, h * w)            # pack images so matmul M >= 256 when h*w is small
    ck = _k_tile(cin)                     # cin (K) tiling keeps the working set in VMEM
    nk = cin // ck

    x = f4_nhwc.astype(compute_dtype).reshape(n, h * w, cin)

    out_elems = n * h * 2 * w * 2 * mid
    cost = pl.CostEstimate(
        flops=2 * n * h * w * mid * (cin + 16 * mid),
        transcendentals=0,
        bytes_accessed=(x.size + w1.size + wt_stacked.size + out_elems) * cdt.itemsize)

    resident = pl.Buffered(1)             # constant-index operands: no double buffering
    out = pl.pallas_call(
        functools.partial(_deconv_fused_kernel, nb=nb, h=h, w=w, mid=mid),
        grid=(n // nb, nk),
        in_specs=[
            pl.BlockSpec((nb, h * w, ck), lambda b, k: (b, 0, k)),
            pl.BlockSpec((ck, mid), lambda b, k: (k, 0)),
            pl.BlockSpec((1, mid), lambda b, k: (0, 0), pipeline_mode=resident),
            pl.BlockSpec((2, 2, 4 * mid, mid), lambda b, k: (0, 0, 0, 0),
                         pipeline_mode=resident),
            pl.BlockSpec((1, mid), lambda b, k: (0, 0), pipeline_mode=resident),
        ],
        out_specs=pl.BlockSpec((nb, h, 2, w, 2 * mid), lambda b, k: (b, 0, 0, 0, 0)),
        out_shape=jax.ShapeDtypeStruct((n, h, 2, w, 2 * mid), compute_dtype),
        scratch_shapes=[pltpu.VMEM((nb * h * w, mid), jnp.float32),
                        pltpu.VMEM((nb, h + 2, w + 2, mid), compute_dtype)],
        compiler_params=pltpu.CompilerParams(
            dimension_semantics=("parallel", "arbitrary"),
            vmem_limit_bytes=_vmem_limit_bytes()),
        cost_estimate=cost,
    )(x, w1, sh1, wt_stacked, sh2)

    # Row-major view: (n, h, 2, w, 2*mid) == (n, 2h, 2w, mid); no HBM transpose.
    return out.reshape(n, 2 * h, 2 * w, mid)


def fused_head(h2_flat, f3_flat, params, compute_dtype):
    """relu(BN3(conv1x1(h2))) + (conv_layer3(f3) + bias), M-tiled over n*2h*2w rows."""
    m, mid = h2_flat.shape
    ch = f3_flat.shape[1]
    cdt = jnp.dtype(compute_dtype)

    s3, t3 = bn_affine(*params['bn3'])
    w4 = params['w_d4'] * s3[None, :]
    sh3 = params['b_d4'] * s3 + t3
    wc = params['w_c3']
    bc = params['b_c3']

    cout = w4.shape[1]
    cpad = _round_up(cout, 128)
    # Lane-pad only when nearly free (large cout); for small cout the 128-pad multiplies the
    # HBM writeback of the biggest output tensor, so masked stores are cheaper.
    if cout < 128 or (cpad - cout) * 8 > cout:
        cpad = cout
    if cpad != cout:
        w4 = jnp.pad(w4, ((0, 0), (0, cpad - cout)))
        sh3 = jnp.pad(sh3, (0, cpad - cout))
        wc = jnp.pad(wc, ((0, 0), (0, cpad - cout)))
        bc = jnp.pad(bc, (0, cpad - cout))

    tm = _row_tile(m)
    cost = pl.CostEstimate(
        flops=2 * m * cpad * (mid + ch),
        transcendentals=0,
        bytes_accessed=(m * (mid + ch) + (mid + ch) * cpad) * cdt.itemsize + m * cpad * 4)

    resident = pl.Buffered(1)
    out = pl.pallas_call(
        _head_kernel,
        grid=(pl.cdiv(m, tm),),
        in_specs=[
            pl.BlockSpec((tm, mid), lambda i: (i, 0)),
            pl.BlockSpec((tm, ch), lambda i: (i, 0)),
            pl.BlockSpec((mid, cpad), lambda i: (0, 0), pipeline_mode=resident),
            pl.BlockSpec((1, cpad), lambda i: (0, 0), pipeline_mode=resident),
            pl.BlockSpec((ch, cpad), lambda i: (0, 0), pipeline_mode=resident),
            pl.BlockSpec((1, cpad), lambda i: (0, 0), pipeline_mode=resident),
        ],
        out_specs=pl.BlockSpec((tm, cpad), lambda i: (i, 0)),
        out_shape=jax.ShapeDtypeStruct((m, cpad), jnp.float32),
        compiler_params=pltpu.CompilerParams(
            dimension_semantics=("parallel",),
            vmem_limit_bytes=_vmem_limit_bytes()),
        cost_estimate=cost,
    )(h2_flat.astype(compute_dtype), f3_flat.astype(compute_dtype),
      w4.astype(compute_dtype), sh3.reshape(1, cpad).astype(jnp.float32),
      wc.astype(compute_dtype), bc.reshape(1, cpad).astype(jnp.float32))
    return out if cpad == cout else out[:, :cout]


# ---------------------------------------------------------------------------
# Forward (glue in plain JAX, jitted so boundary reshapes/transposes fuse)
# ---------------------------------------------------------------------------

def interpolate_mask_nearest(mask, out_h, out_w):
    """F.interpolate(m[None].float(), size=(out_h, out_w)).to(bool)[0], mode='nearest'."""
    _, hm, wm = mask.shape
    rows = (jnp.arange(out_h) * hm) // out_h
    cols = (jnp.arange(out_w) * wm) // out_w
    return mask[:, rows][:, :, cols]


@functools.partial(jax.jit, static_argnames=("compute_dtype",))
def backbone_base_forward(feat3_nchw, feat4_nchw, mask, params,
                          compute_dtype=jnp.bfloat16):
    """xs = {'0': feat3 (layer3), '1': feat4 (layer4)};  returns {name: (x_nchw, mask)}.

    compute_dtype=bfloat16 (default) halves HBM/VMEM traffic of the large operands and uses
    the bf16 MXU on all generations; accumulation and the final output stay in float32.
    """
    n, c3, h3, w3 = feat3_nchw.shape
    _, c4, h4, w4 = feat4_nchw.shape
    assert (h3, w3) == (2 * h4, 2 * w4)

    f3 = jnp.transpose(feat3_nchw, (0, 2, 3, 1))
    f4 = jnp.transpose(feat4_nchw, (0, 2, 3, 1))

    # deconv[0..3](xs['1']) -> kept in compute_dtype (bf16) to halve the HBM round trip
    h2 = deconv_branch(f4, params, compute_dtype)                 # (n, h3, w3, mid)
    mid = h2.shape[-1]

    # name '0': relu(BN3(conv1x1(h2))) + conv_layer3(xs['0'])  -- single fused kernel
    x0_flat = fused_head(h2.reshape(n * h3 * w3, mid),
                         f3.reshape(n * h3 * w3, c3), params, compute_dtype)
    x0_nchw = jnp.transpose(x0_flat.reshape(n, h3, w3, c3), (0, 3, 1, 2))

    # name '1': passthrough
    x1_nchw = feat4_nchw

    m0 = interpolate_mask_nearest(mask, h3, w3)
    m1 = interpolate_mask_nearest(mask, h4, w4)
    return {'0': (x0_nchw, m0), '1': (x1_nchw, m1)}


# ---------------------------------------------------------------------------
# Deterministic parameter init (mirrors shapes from __init__; kaiming fan_out)
# ---------------------------------------------------------------------------

def init_params(key, num_channels, mid=256):
    c, ch = num_channels, num_channels // 2
    ks = jax.random.split(key, 5)

    def kaiming(k, shape, fan_out):
        return (jnp.sqrt(2.0 / fan_out) * jax.random.normal(k, shape)).astype(jnp.float32)

    p = {}
    # deconv[0]: Conv2d(c, mid, 1)   (pt weight (mid, c, 1, 1) -> (cin, cout) matmul form)
    p['w_d0'] = jnp.transpose(kaiming(ks[0], (mid, c), fan_out=mid))
    p['b_d0'] = jnp.zeros((mid,), jnp.float32)
    p['bn1'] = (jnp.ones((mid,)), jnp.zeros((mid,)), jnp.zeros((mid,)), jnp.ones((mid,)))
    # deconv[2]: ConvTranspose2d(mid, mid, 4, 2, 1)  (pt weight (cin, cout, 4, 4))
    wt = kaiming(ks[1], (mid, mid, 4, 4), fan_out=mid * 16)
    p['w_dt'] = jnp.transpose(wt, (2, 3, 0, 1))          # (ky, kx, cin, cout)
    p['b_dt'] = jnp.zeros((mid,), jnp.float32)
    p['bn2'] = (jnp.ones((mid,)), jnp.zeros((mid,)), jnp.zeros((mid,)), jnp.ones((mid,)))
    # deconv[4]: Conv2d(mid, ch, 1)
    p['w_d4'] = jnp.transpose(kaiming(ks[2], (ch, mid), fan_out=ch))
    p['b_d4'] = jnp.zeros((ch,), jnp.float32)
    p['bn3'] = (jnp.ones((ch,)), jnp.zeros((ch,)), jnp.zeros((ch,)), jnp.ones((ch,)))
    # conv_layer3: Conv2d(ch, ch, 1)
    p['w_c3'] = jnp.transpose(kaiming(ks[3], (ch, ch), fan_out=ch))
    p['b_c3'] = (0.01 * jax.random.normal(ks[4], (ch,))).astype(jnp.float32)
    return p


# ---------------------------------------------------------------------------
# Pure-JAX reference (for the computed '0' branch) used as the correctness check
# ---------------------------------------------------------------------------

def reference_x0(feat3, feat4, params):
    def conv1x1(x, w_cin_cout, b):
        return jnp.einsum('nchw,cf->nfhw', x, w_cin_cout) + b[None, :, None, None]

    def bn(x, gamma, beta, mean, var, eps=1e-5):
        s = gamma / jnp.sqrt(var + eps)
        return (x - mean[None, :, None, None]) * s[None, :, None, None] + beta[None, :, None, None]

    h = bn(conv1x1(feat4, params['w_d0'], params['b_d0']), *params['bn1'])
    # ConvTranspose2d(k=4,s=2,p=1) == dilated conv with flipped, io-swapped kernel, pad k-1-p=2
    w_oihw = jnp.transpose(params['w_dt'], (3, 2, 0, 1))
    w_flip = jnp.flip(w_oihw, axis=(2, 3))
    h = lax.conv_general_dilated(h, w_flip, window_strides=(1, 1),
                                 padding=((2, 2), (2, 2)), lhs_dilation=(2, 2),
                                 dimension_numbers=('NCHW', 'OIHW', 'NCHW'))
    h = bn(h + params['b_dt'][None, :, None, None], *params['bn2'])
    h = jnp.maximum(bn(conv1x1(h, params['w_d4'], params['b_d4']), *params['bn3']), 0.0)
    return conv1x1(feat3, params['w_c3'], params['b_c3']) + h


# ---------------------------------------------------------------------------

if __name__ == "__main__":
    key = jax.random.PRNGKey(0)
    k_f3, k_f4, k_m, k_p = jax.random.split(key, 4)

    N = 2
    C = 64            # num_channels (layer4 channels); layer3 has C // 2 = 32
    H3, W3 = 8, 8     # layer3 spatial size
    H4, W4 = 4, 4     # layer4 spatial size (deconv upsamples 4x4 -> 8x8)
    HM, WM = 16, 16   # input-image mask resolution

    feat3 = jax.random.normal(k_f3, (N, C // 2, H3, W3), jnp.float32)   # xs['0']
    feat4 = jax.random.normal(k_f4, (N, C, H4, W4), jnp.float32)        # xs['1']
    mask = jax.random.bernoulli(k_m, 0.3, (N, HM, WM))                  # NestedTensor.mask

    params = init_params(k_p, C)
    ref = reference_x0(feat3, feat4, params)

    # Default path: bf16 compute (f32 accumulation) -- the fast configuration.
    out = backbone_base_forward(feat3, feat4, mask, params)
    jax.block_until_ready(out)

    x0, m0 = out['0']
    x1, m1 = out['1']
    assert x0.shape == (N, C // 2, H3, W3) and x0.dtype == jnp.float32
    assert x1.shape == (N, C, H4, W4)
    assert m0.shape == (N, H3, W3) and m0.dtype == jnp.bool_
    assert m1.shape == (N, H4, W4) and m1.dtype == jnp.bool_
    rel = float(jnp.linalg.norm(x0 - ref) / (jnp.linalg.norm(ref) + 1e-12))
    assert rel < 3e-2, f"bf16 path mismatch vs reference: rel_l2={rel}"

    # f32 compute path: tight check against the pure-JAX reference.
    out32 = backbone_base_forward(feat3, feat4, mask, params, compute_dtype=jnp.float32)
    jax.block_until_ready(out32)
    err = float(jnp.max(jnp.abs(out32['0'][0] - ref)))
    assert err < 2e-3, f"f32 path mismatch vs reference: max|diff|={err}"

    print("KERNEL_OK")
</pallas_src>

<mosaic_0001>
module attributes {stable_mosaic.version = 11 : i64} {
  func.func @_deconv_fused_kernel(%arg0: i32, %arg1: i32, %arg2: memref<2x16x64xbf16, #tpu.memory_space<vmem>>, %arg3: memref<64x256xbf16, #tpu.memory_space<vmem>>, %arg4: memref<1x256xf32, #tpu.memory_space<vmem>>, %arg5: memref<2x2x1024x256xbf16, #tpu.memory_space<vmem>>, %arg6: memref<1x256xf32, #tpu.memory_space<vmem>>, %arg7: memref<2x4x2x4x512xbf16, #tpu.memory_space<vmem>>, %arg8: memref<32x256xf32, #tpu.memory_space<vmem>>, %arg9: memref<2x6x6x256xbf16, #tpu.memory_space<vmem>>) attributes {dimension_semantics = [#tpu.dimension_semantics<parallel>, #tpu.dimension_semantics<arbitrary>], iteration_bounds = array<i64: 1, 1>, scalar_prefetch = 0 : i64, scratch_operands = 2 : i64, tpu.core_type = #tpu.core_type<tc>, window_params = [{transform_indices = @transform_0, window_bounds = array<i64: 2, 16, 64>}, {transform_indices = @transform_1, window_bounds = array<i64: 64, 256>}, {pipeline_mode = #tpu.pipeline_mode<synchronous>, transform_indices = @transform_2, window_bounds = array<i64: 1, 256>}, {pipeline_mode = #tpu.pipeline_mode<synchronous>, transform_indices = @transform_3, window_bounds = array<i64: 2, 2, 1024, 256>}, {pipeline_mode = #tpu.pipeline_mode<synchronous>, transform_indices = @transform_4, window_bounds = array<i64: 1, 256>}, {transform_indices = @transform_5, window_bounds = array<i64: 2, 4, 2, 4, 512>}]} {
    %c0_i32 = arith.constant 0 : i32
    %0 = arith.cmpi eq, %arg1, %c0_i32 : i32
    %1 = arith.extui %0 : i1 to i32
    %c0_i32_0 = arith.constant 0 : i32
    %2 = arith.cmpi ne, %1, %c0_i32_0 : i32
    scf.if %2 {
      %cst_11 = arith.constant 0.000000e+00 : f32
      %13 = vector.broadcast %cst_11 : f32 to vector<32x256xf32>
      %c0_12 = arith.constant 0 : index
      %c0_13 = arith.constant 0 : index
      %14 = vector.load %arg8[%c0_12, %c0_13] : memref<32x256xf32, #tpu.memory_space<vmem>>, vector<32x256xf32>
      tpu.vector_store %arg8[%c0_12, %c0_13], %13 {strides = array<i32>} : memref<32x256xf32, #tpu.memory_space<vmem>>, vector<32x256xf32>,
    } else {
    }
    %c0 = arith.constant 0 : index
    %c0_1 = arith.constant 0 : index
    %3 = vector.load %arg8[%c0, %c0_1] : memref<32x256xf32, #tpu.memory_space<vmem>>, vector<32x256xf32>
    %c0_2 = arith.constant 0 : index
    %c0_3 = arith.constant 0 : index
    %c0_4 = arith.constant 0 : index
    %4 = vector.load %arg2[%c0_2, %c0_3, %c0_4] : memref<2x16x64xbf16, #tpu.memory_space<vmem>>, vector<2x16x64xbf16>
    %5 = vector.shape_cast %4 : vector<2x16x64xbf16> to vector<32x64xbf16>
    %c0_5 = arith.constant 0 : index
    %c0_6 = arith.constant 0 : index
    %6 = vector.load %arg3[%c0_5, %c0_6] : memref<64x256xbf16, #tpu.memory_space<vmem>>, vector<64x256xbf16>
    %cst = arith.constant dense<0.000000e+00> : vector<32x256xf32>
    %7 = tpu.matmul %5, %6, %cst {dimension_numbers = #tpu.dot_dimension_numbers<[1], [0], [0], [1], [0, 0, 1, 1], [], []>} : vector<32x64xbf16>, vector<64x256xbf16>, vector<32x256xf32> -> vector<32x256xf32>
    %8 = arith.addf %3, %7 : vector<32x256xf32>
    %c0_7 = arith.constant 0 : index
    %c0_8 = arith.constant 0 : index
    %9 = vector.load %arg8[%c0_7, %c0_8] : memref<32x256xf32, #tpu.memory_space<vmem>>, vector<32x256xf32>
    tpu.vector_store %arg8[%c0_7, %c0_8], %8 {strides = array<i32>} : memref<32x256xf32, #tpu.memory_space<vmem>>, vector<32x256xf32>,
    %c0_i32_9 = arith.constant 0 : i32
    %10 = arith.cmpi eq, %arg1, %c0_i32_9 : i32
    %11 = arith.extui %10 : i1 to i32
    %c0_i32_10 = arith.constant 0 : i32
    %12 = arith.cmpi ne, %11, %c0_i32_10 : i32
    scf.if %12 {
      %cst_11 = arith.constant 0.000000e+00 : bf16
      %13 = vector.broadcast %cst_11 : bf16 to vector<2x6x6x256xbf16>
      %c0_12 = arith.constant 0 : index
      %c0_13 = arith.constant 0 : index
      %c0_14 = arith.constant 0 : index
      %c0_15 = arith.constant 0 : index
      %14 = vector.load %arg9[%c0_12, %c0_13, %c0_14, %c0_15] : memref<2x6x6x256xbf16, #tpu.memory_space<vmem>>, vector<2x6x6x256xbf16>
      tpu.vector_store %arg9[%c0_12, %c0_13, %c0_14, %c0_15], %13 {strides = array<i32>} : memref<2x6x6x256xbf16, #tpu.memory_space<vmem>>, vector<2x6x6x256xbf16>,
      %c0_16 = arith.constant 0 : index
      %c0_17 = arith.constant 0 : index
      %15 = vector.load %arg8[%c0_16, %c0_17] : memref<32x256xf32, #tpu.memory_space<vmem>>, vector<32x256xf32>
      %c0_18 = arith.constant 0 : index
      %c0_19 = arith.constant 0 : index
      %16 = vector.load %arg4[%c0_18, %c0_19] : memref<1x256xf32, #tpu.memory_space<vmem>>, vector<1x256xf32>
      %17 = vector.broadcast %16 : vector<1x256xf32> to vector<32x256xf32>
      %18 = arith.addf %15, %17 : vector<32x256xf32>
      %19 = vector.shape_cast %18 : vector<32x256xf32> to vector<2x4x4x256xf32>
      %20 = arith.truncf %19 : vector<2x4x4x256xf32> to vector<2x4x4x256xbf16>
      %c0_20 = arith.constant 0 : index
      %c1 = arith.constant 1 : index
      %c1_21 = arith.constant 1 : index
      %c0_22 = arith.constant 0 : index
      %21 = vector.load %arg9[%c0_20, %c1, %c1_21, %c0_22] : memref<2x6x6x256xbf16, #tpu.memory_space<vmem>>, vector<2x4x4x256xbf16>
      tpu.vector_store %arg9[%c0_20, %c1, %c1_21, %c0_22], %20 {strides = array<i32>} : memref<2x6x6x256xbf16, #tpu.memory_space<vmem>>, vector<2x4x4x256xbf16>,
      %c0_23 = arith.constant 0 : index
      %c1_24 = arith.constant 1 : index
      %c1_25 = arith.constant 1 : index
      %c0_26 = arith.constant 0 : index
      %22 = vector.load %arg9[%c0_23, %c1_24, %c1_25, %c0_26] : memref<2x6x6x256xbf16, #tpu.memory_space<vmem>>, vector<2x4x4x256xbf16>
      %23 = vector.shape_cast %22 : vector<2x4x4x256xbf16> to vector<32x256xbf16>
      %c0_27 = arith.constant 0 : index
      %c1_28 = arith.constant 1 : index
      %c0_29 = arith.constant 0 : index
      %c0_30 = arith.constant 0 : index
      %24 = vector.load %arg9[%c0_27, %c1_28, %c0_29, %c0_30] : memref<2x6x6x256xbf16, #tpu.memory_space<vmem>>, vector<2x4x4x256xbf16>
      %25 = vector.shape_cast %24 : vector<2x4x4x256xbf16> to vector<32x256xbf16>
      %c0_31 = arith.constant 0 : index
      %c0_32 = arith.constant 0 : index
      %c1_33 = arith.constant 1 : index
      %c0_34 = arith.constant 0 : index
      %26 = vector.load %arg9[%c0_31, %c0_32, %c1_33, %c0_34] : memref<2x6x6x256xbf16, #tpu.memory_space<vmem>>, vector<2x4x4x256xbf16>
      %27 = vector.shape_cast %26 : vector<2x4x4x256xbf16> to vector<32x256xbf16>
      %c0_35 = arith.constant 0 : index
      %c0_36 = arith.constant 0 : index
      %c0_37 = arith.constant 0 : index
      %c0_38 = arith.constant 0 : index
      %28 = vector.load %arg9[%c0_35, %c0_36, %c0_37, %c0_38] : memref<2x6x6x256xbf16, #tpu.memory_space<vmem>>, vector<2x4x4x256xbf16>
      %29 = vector.shape_cast %28 : vector<2x4x4x256xbf16> to vector<32x256xbf16>
      %30 = tpu.concatenate %23, %25, %27, %29 in 1 : vector<32x256xbf16>, vector<32x256xbf16>, vector<32x256xbf16>, vector<32x256xbf16> -> vector<32x1024xbf16>
      %c0_39 = arith.constant 0 : index
      %c0_40 = arith.constant 0 : index
      %c0_41 = arith.constant 0 : index
      %c0_42 = arith.constant 0 : index
      %31 = vector.load %arg5[%c0_39, %c0_40, %c0_41, %c0_42] : memref<2x2x1024x256xbf16, #tpu.memory_space<vmem>>, vector<1x1x1024x256xbf16>
      %32 = vector.shape_cast %31 : vector<1x1x1024x256xbf16> to vector<1024x256xbf16>
      %cst_43 = arith.constant dense<0.000000e+00> : vector<32x256xf32>
      %33 = tpu.matmul %30, %32, %cst_43 {dimension_numbers = #tpu.dot_dimension_numbers<[1], [0], [0], [1], [0, 0, 1, 1], [], []>} : vector<32x1024xbf16>, vector<1024x256xbf16>, vector<32x256xf32> -> vector<32x256xf32>
      %c0_44 = arith.constant 0 : index
      %c0_45 = arith.constant 0 : index
      %34 = vector.load %arg6[%c0_44, %c0_45] : memref<1x256xf32, #tpu.memory_space<vmem>>, vector<1x256xf32>
      %35 = vector.broadcast %34 : vector<1x256xf32> to vector<32x256xf32>
      %36 = arith.addf %33, %35 : vector<32x256xf32>
      %37 = vector.shape_cast %36 : vector<32x256xf32> to vector<2x4x4x256xf32>
      %c0_46 = arith.constant 0 : index
      %c1_47 = arith.constant 1 : index
      %c2 = arith.constant 2 : index
      %c0_48 = arith.constant 0 : index
      %38 = vector.load %arg9[%c0_46, %c1_47, %c2, %c0_48] : memref<2x6x6x256xbf16, #tpu.memory_space<vmem>>, vector<2x4x4x256xbf16>
      %39 = vector.shape_cast %38 : vector<2x4x4x256xbf16> to vector<32x256xbf16>
      %c0_49 = arith.constant 0 : index
      %c1_50 = arith.constant 1 : index
      %c1_51 = arith.constant 1 : index
      %c0_52 = arith.constant 0 : index
      %40 = vector.load %arg9[%c0_49, %c1_50, %c1_51, %c0_52] : memref<2x6x6x256xbf16, #tpu.memory_space<vmem>>, vector<2x4x4x256xbf16>
      %41 = vector.shape_cast %40 : vector<2x4x4x256xbf16> to vector<32x256xbf16>
      %c0_53 = arith.constant 0 : index
      %c0_54 = arith.constant 0 : index
      %c2_55 = arith.constant 2 : index
      %c0_56 = arith.constant 0 : index
      %42 = vector.load %arg9[%c0_53, %c0_54, %c2_55, %c0_56] : memref<2x6x6x256xbf16, #tpu.memory_space<vmem>>, vector<2x4x4x256xbf16>
      %43 = vector.shape_cast %42 : vector<2x4x4x256xbf16> to vector<32x256xbf16>
      %c0_57 = arith.constant 0 : index
      %c0_58 = arith.constant 0 : index
      %c1_59 = arith.constant 1 : index
      %c0_60 = arith.constant 0 : index
      %44 = vector.load %arg9[%c0_57, %c0_58, %c1_59, %c0_60] : memref<2x6x6x256xbf16, #tpu.memory_space<vmem>>, vector<2x4x4x256xbf16>
      %45 = vector.shape_cast %44 : vector<2x4x4x256xbf16> to vector<32x256xbf16>
      %46 = tpu.concatenate %39, %41, %43, %45 in 1 : vector<32x256xbf16>, vector<32x256xbf16>, vector<32x256xbf16>, vector<32x256xbf16> -> vector<32x1024xbf16>
      %c0_61 = arith.constant 0 : index
      %c1_62 = arith.constant 1 : index
      %c0_63 = arith.constant 0 : index
      %c0_64 = arith.constant 0 : index
      %47 = vector.load %arg5[%c0_61, %c1_62, %c0_63, %c0_64] : memref<2x2x1024x256xbf16, #tpu.memory_space<vmem>>, vector<1x1x1024x256xbf16>
      %48 = vector.shape_cast %47 : vector<1x1x1024x256xbf16> to vector<1024x256xbf16>
      %cst_65 = arith.constant dense<0.000000e+00> : vector<32x256xf32>
      %49 = tpu.matmul %46, %48, %cst_65 {dimension_numbers = #tpu.dot_dimension_numbers<[1], [0], [0], [1], [0, 0, 1, 1], [], []>} : vector<32x1024xbf16>, vector<1024x256xbf16>, vector<32x256xf32> -> vector<32x256xf32>
      %c0_66 = arith.constant 0 : index
      %c0_67 = arith.constant 0 : index
      %50 = vector.load %arg6[%c0_66, %c0_67] : memref<1x256xf32, #tpu.memory_space<vmem>>, vector<1x256xf32>
      %51 = vector.broadcast %50 : vector<1x256xf32> to vector<32x256xf32>
      %52 = arith.addf %49, %51 : vector<32x256xf32>
      %53 = vector.shape_cast %52 : vector<32x256xf32> to vector<2x4x4x256xf32>
      %54 = tpu.concatenate %37, %53 in 3 : vector<2x4x4x256xf32>, vector<2x4x4x256xf32> -> vector<2x4x4x512xf32>
      %55 = arith.truncf %54 : vector<2x4x4x512xf32> to vector<2x4x4x512xbf16>
      %c0_68 = arith.constant 0 : index
      %c0_69 = arith.constant 0 : index
      %c0_70 = arith.constant 0 : index
      %c0_71 = arith.constant 0 : index
      %c0_72 = arith.constant 0 : index
      %56 = vector.load %arg7[%c0_68, %c0_69, %c0_70, %c0_71, %c0_72] : memref<2x4x2x4x512xbf16, #tpu.memory_space<vmem>>, vector<2x4x1x4x512xbf16>
      %57 = vector.shape_cast %56 : vector<2x4x1x4x512xbf16> to vector<2x4x4x512xbf16>
      %58 = vector.shape_cast %55 : vector<2x4x4x512xbf16> to vector<2x4x1x4x512xbf16>
      tpu.vector_store %arg7[%c0_68, %c0_69, %c0_70, %c0_71, %c0_72], %58 {strides = array<i32>} : memref<2x4x2x4x512xbf16, #tpu.memory_space<vmem>>, vector<2x4x1x4x512xbf16>,
      %c0_73 = arith.constant 0 : index
      %c2_74 = arith.constant 2 : index
      %c1_75 = arith.constant 1 : index
      %c0_76 = arith.constant 0 : index
      %59 = vector.load %arg9[%c0_73, %c2_74, %c1_75, %c0_76] : memref<2x6x6x256xbf16, #tpu.memory_space<vmem>>, vector<2x4x4x256xbf16>
      %60 = vector.shape_cast %59 : vector<2x4x4x256xbf16> to vector<32x256xbf16>
      %c0_77 = arith.constant 0 : index
      %c2_78 = arith.constant 2 : index
      %c0_79 = arith.constant 0 : index
      %c0_80 = arith.constant 0 : index
      %61 = vector.load %arg9[%c0_77, %c2_78, %c0_79, %c0_80] : memref<2x6x6x256xbf16, #tpu.memory_space<vmem>>, vector<2x4x4x256xbf16>
      %62 = vector.shape_cast %61 : vector<2x4x4x256xbf16> to vector<32x256xbf16>
      %c0_81 = arith.constant 0 : index
      %c1_82 = arith.constant 1 : index
      %c1_83 = arith.constant 1 : index
      %c0_84 = arith.constant 0 : index
      %63 = vector.load %arg9[%c0_81, %c1_82, %c1_83, %c0_84] : memref<2x6x6x256xbf16, #tpu.memory_space<vmem>>, vector<2x4x4x256xbf16>
      %64 = vector.shape_cast %63 : vector<2x4x4x256xbf16> to vector<32x256xbf16>
      %c0_85 = arith.constant 0 : index
      %c1_86 = arith.constant 1 : index
      %c0_87 = arith.constant 0 : index
      %c0_88 = arith.constant 0 : index
      %65 = vector.load %arg9[%c0_85, %c1_86, %c0_87, %c0_88] : memref<2x6x6x256xbf16, #tpu.memory_space<vmem>>, vector<2x4x4x256xbf16>
      %66 = vector.shape_cast %65 : vector<2x4x4x256xbf16> to vector<32x256xbf16>
      %67 = tpu.concatenate %60, %62, %64, %66 in 1 : vector<32x256xbf16>, vector<32x256xbf16>, vector<32x256xbf16>, vector<32x256xbf16> -> vector<32x1024xbf16>
      %c1_89 = arith.constant 1 : index
      %c0_90 = arith.constant 0 : index
      %c0_91 = arith.constant 0 : index
      %c0_92 = arith.constant 0 : index
      %68 = vector.load %arg5[%c1_89, %c0_90, %c0_91, %c0_92] : memref<2x2x1024x256xbf16, #tpu.memory_space<vmem>>, vector<1x1x1024x256xbf16>
      %69 = vector.shape_cast %68 : vector<1x1x1024x256xbf16> to vector<1024x256xbf16>
      %cst_93 = arith.constant dense<0.000000e+00> : vector<32x256xf32>
      %70 = tpu.matmul %67, %69, %cst_93 {dimension_numbers = #tpu.dot_dimension_numbers<[1], [0], [0], [1], [0, 0, 1, 1], [], []>} : vector<32x1024xbf16>, vector<1024x256xbf16>, vector<32x256xf32> -> vector<32x256xf32>
      %c0_94 = arith.constant 0 : index
      %c0_95 = arith.constant 0 : index
      %71 = vector.load %arg6[%c0_94, %c0_95] : memref<1x256xf32, #tpu.memory_space<vmem>>, vector<1x256xf32>
      %72 = vector.broadcast %71 : vector<1x256xf32> to vector<32x256xf32>
      %73 = arith.addf %70, %72 : vector<32x256xf32>
      %74 = vector.shape_cast %73 : vector<32x256xf32> to vector<2x4x4x256xf32>
      %c0_96 = arith.constant 0 : index
      %c2_97 = arith.constant 2 : index
      %c2_98 = arith.constant 2 : index
      %c0_99 = arith.constant 0 : index
      %75 = vector.load %arg9[%c0_96, %c2_97, %c2_98, %c0_99] : memref<2x6x6x256xbf16, #tpu.memory_space<vmem>>, vector<2x4x4x256xbf16>
      %76 = vector.shape_cast %75 : vector<2x4x4x256xbf16> to vector<32x256xbf16>
      %c0_100 = arith.constant 0 : index
      %c2_101 = arith.constant 2 : index
      %c1_102 = arith.constant 1 : index
      %c0_103 = arith.constant 0 : index
      %77 = vector.load %arg9[%c0_100, %c2_101, %c1_102, %c0_103] : memref<2x6x6x256xbf16, #tpu.memory_space<vmem>>, vector<2x4x4x256xbf16>
      %78 = vector.shape_cast %77 : vector<2x4x4x256xbf16> to vector<32x256xbf16>
      %c0_104 = arith.constant 0 : index
      %c1_105 = arith.constant 1 : index
      %c2_106 = arith.constant 2 : index
      %c0_107 = arith.constant 0 : index
      %79 = vector.load %arg9[%c0_104, %c1_105, %c2_106, %c0_107] : memref<2x6x6x256xbf16, #tpu.memory_space<vmem>>, vector<2x4x4x256xbf16>
      %80 = vector.shape_cast %79 : vector<2x4x4x256xbf16> to vector<32x256xbf16>
      %c0_108 = arith.constant 0 : index
      %c1_109 = arith.constant 1 : index
      %c1_110 = arith.constant 1 : index
      %c0_111 = arith.constant 0 : index
      %81 = vector.load %arg9[%c0_108, %c1_109, %c1_110, %c0_111] : memref<2x6x6x256xbf16, #tpu.memory_space<vmem>>, vector<2x4x4x256xbf16>
      %82 = vector.shape_cast %81 : vector<2x4x4x256xbf16> to vector<32x256xbf16>
      %83 = tpu.concatenate %76, %78, %80, %82 in 1 : vector<32x256xbf16>, vector<32x256xbf16>, vector<32x256xbf16>, vector<32x256xbf16> -> vector<32x1024xbf16>
      %c1_112 = arith.constant 1 : index
      %c1_113 = arith.constant 1 : index
      %c0_114 = arith.constant 0 : index
      %c0_115 = arith.constant 0 : index
      %84 = vector.load %arg5[%c1_112, %c1_113, %c0_114, %c0_115] : memref<2x2x1024x256xbf16, #tpu.memory_space<vmem>>, vector<1x1x1024x256xbf16>
      %85 = vector.shape_cast %84 : vector<1x1x1024x256xbf16> to vector<1024x256xbf16>
      %cst_116 = arith.constant dense<0.000000e+00> : vector<32x256xf32>
      %86 = tpu.matmul %83, %85, %cst_116 {dimension_numbers = #tpu.dot_dimension_numbers<[1], [0], [0], [1], [0, 0, 1, 1], [], []>} : vector<32x1024xbf16>, vector<1024x256xbf16>, vector<32x256xf32> -> vector<32x256xf32>
      %c0_117 = arith.constant 0 : index
      %c0_118 = arith.constant 0 : index
      %87 = vector.load %arg6[%c0_117, %c0_118] : memref<1x256xf32, #tpu.memory_space<vmem>>, vector<1x256xf32>
      %88 = vector.broadcast %87 : vector<1x256xf32> to vector<32x256xf32>
      %89 = arith.addf %86, %88 : vector<32x256xf32>
      %90 = vector.shape_cast %89 : vector<32x256xf32> to vector<2x4x4x256xf32>
      %91 = tpu.concatenate %74, %90 in 3 : vector<2x4x4x256xf32>, vector<2x4x4x256xf32> -> vector<2x4x4x512xf32>
      %92 = arith.truncf %91 : vector<2x4x4x512xf32> to vector<2x4x4x512xbf16>
      %c0_119 = arith.constant 0 : index
      %c0_120 = arith.constant 0 : index
      %c1_121 = arith.constant 1 : index
      %c0_122 = arith.constant 0 : index
      %c0_123 = arith.constant 0 : index
      %93 = vector.load %arg7[%c0_119, %c0_120, %c1_121, %c0_122, %c0_123] : memref<2x4x2x4x512xbf16, #tpu.memory_space<vmem>>, vector<2x4x1x4x512xbf16>
      %94 = vector.shape_cast %93 : vector<2x4x1x4x512xbf16> to vector<2x4x4x512xbf16>
      %95 = vector.shape_cast %92 : vector<2x4x4x512xbf16> to vector<2x4x1x4x512xbf16>
      tpu.vector_store %arg7[%c0_119, %c0_120, %c1_121, %c0_122, %c0_123], %95 {strides = array<i32>} : memref<2x4x2x4x512xbf16, #tpu.memory_space<vmem>>, vector<2x4x1x4x512xbf16>,
    } else {
    }
    return
  }
  func.func @transform_0(%arg0: i32, %arg1: i32) -> (i32, i32, i32) {
    %c0_i32 = arith.constant 0 : i32
    %c0_i32_0 = arith.constant 0 : i32
    return %arg0, %c0_i32, %arg1 : i32, i32, i32
  }
  func.func @transform_1(%arg0: i32, %arg1: i32) -> (i32, i32) {
    %c0_i32 = arith.constant 0 : i32
    %c0_i32_0 = arith.constant 0 : i32
    return %arg1, %c0_i32 : i32, i32
  }
  func.func @transform_2(%arg0: i32, %arg1: i32) -> (i32, i32) {
    %c0_i32 = arith.constant 0 : i32
    %c0_i32_0 = arith.constant 0 : i32
    %c0_i32_1 = arith.constant 0 : i32
    return %c0_i32, %c0_i32_0 : i32, i32
  }
  func.func @transform_3(%arg0: i32, %arg1: i32) -> (i32, i32, i32, i32) {
    %c0_i32 = arith.constant 0 : i32
    %c0_i32_0 = arith.constant 0 : i32
    %c0_i32_1 = arith.constant 0 : i32
    %c0_i32_2 = arith.constant 0 : i32
    %c0_i32_3 = arith.constant 0 : i32
    return %c0_i32, %c0_i32_0, %c0_i32_1, %c0_i32_2 : i32, i32, i32, i32
  }
  func.func @transform_4(%arg0: i32, %arg1: i32) -> (i32, i32) {
    %c0_i32 = arith.constant 0 : i32
    %c0_i32_0 = arith.constant 0 : i32
    %c0_i32_1 = arith.constant 0 : i32
    return %c0_i32, %c0_i32_0 : i32, i32
  }
  func.func @transform_5(%arg0: i32, %arg1: i32) -> (i32, i32, i32, i32, i32) {
    %c0_i32 = arith.constant 0 : i32
    %c0_i32_0 = arith.constant 0 : i32
    %c0_i32_1 = arith.constant 0 : i32
    %c0_i32_2 = arith.constant 0 : i32
    %c0_i32_3 = arith.constant 0 : i32
    return %arg0, %c0_i32, %c0_i32_0, %c0_i32_1, %c0_i32_2 : i32, i32, i32, i32, i32
  }
}

module attributes {stable_mosaic.version = 11 : i64} {
  func.func @_head_kernel(%arg0: i32, %arg1: memref<16x256xbf16, #tpu.memory_space<vmem>>, %arg2: memref<16x32xbf16, #tpu.memory_space<vmem>>, %arg3: memref<256x32xbf16, #tpu.memory_space<vmem>>, %arg4: memref<1x32xf32, #tpu.memory_space<vmem>>, %arg5: memref<32x32xbf16, #tpu.memory_space<vmem>>, %arg6: memref<1x32xf32, #tpu.memory_space<vmem>>, %arg7: memref<16x32xf32, #tpu.memory_space<vmem>>) attributes {dimension_semantics = [#tpu.dimension_semantics<parallel>], iteration_bounds = array<i64: 8>, scalar_prefetch = 0 : i64, scratch_operands = 0 : i64, tpu.core_type = #tpu.core_type<tc>, window_params = [{transform_indices = @transform_0, window_bounds = array<i64: 16, 256>}, {transform_indices = @transform_1, window_bounds = array<i64: 16, 32>}, {pipeline_mode = #tpu.pipeline_mode<synchronous>, transform_indices = @transform_2, window_bounds = array<i64: 256, 32>}, {pipeline_mode = #tpu.pipeline_mode<synchronous>, transform_indices = @transform_3, window_bounds = array<i64: 1, 32>}, {pipeline_mode = #tpu.pipeline_mode<synchronous>, transform_indices = @transform_4, window_bounds = array<i64: 32, 32>}, {pipeline_mode = #tpu.pipeline_mode<synchronous>, transform_indices = @transform_5, window_bounds = array<i64: 1, 32>}, {transform_indices = @transform_6, window_bounds = array<i64: 16, 32>}]} {
    %c0 = arith.constant 0 : index
    %c0_0 = arith.constant 0 : index
    %0 = vector.load %arg1[%c0, %c0_0] : memref<16x256xbf16, #tpu.memory_space<vmem>>, vector<16x256xbf16>
    %c0_1 = arith.constant 0 : index
    %c0_2 = arith.constant 0 : index
    %1 = vector.load %arg3[%c0_1, %c0_2] : memref<256x32xbf16, #tpu.memory_space<vmem>>, vector<256x32xbf16>
    %cst = arith.constant dense<0.000000e+00> : vector<16x32xf32>
    %2 = tpu.matmul %0, %1, %cst {dimension_numbers = #tpu.dot_dimension_numbers<[1], [0], [0], [1], [0, 0, 1, 1], [], []>} : vector<16x256xbf16>, vector<256x32xbf16>, vector<16x32xf32> -> vector<16x32xf32>
    %c0_3 = arith.constant 0 : index
    %c0_4 = arith.constant 0 : index
    %3 = vector.load %arg4[%c0_3, %c0_4] : memref<1x32xf32, #tpu.memory_space<vmem>>, vector<1x32xf32>
    %4 = vector.broadcast %3 : vector<1x32xf32> to vector<16x32xf32>
    %5 = arith.addf %2, %4 : vector<16x32xf32>
    %cst_5 = arith.constant 0.000000e+00 : f32
    %6 = vector.broadcast %cst_5 : f32 to vector<16x32xf32>
    %7 = arith.maximumf %5, %6 : vector<16x32xf32>
    %c0_6 = arith.constant 0 : index
    %c0_7 = arith.constant 0 : index
    %8 = vector.load %arg2[%c0_6, %c0_7] : memref<16x32xbf16, #tpu.memory_space<vmem>>, vector<16x32xbf16>
    %c0_8 = arith.constant 0 : index
    %c0_9 = arith.constant 0 : index
    %9 = vector.load %arg5[%c0_8, %c0_9] : memref<32x32xbf16, #tpu.memory_space<vmem>>, vector<32x32xbf16>
    %cst_10 = arith.constant dense<0.000000e+00> : vector<16x32xf32>
    %10 = tpu.matmul %8, %9, %cst_10 {dimension_numbers = #tpu.dot_dimension_numbers<[1], [0], [0], [1], [0, 0, 1, 1], [], []>} : vector<16x32xbf16>, vector<32x32xbf16>, vector<16x32xf32> -> vector<16x32xf32>
    %c0_11 = arith.constant 0 : index
    %c0_12 = arith.constant 0 : index
    %11 = vector.load %arg6[%c0_11, %c0_12] : memref<1x32xf32, #tpu.memory_space<vmem>>, vector<1x32xf32>
    %12 = vector.broadcast %11 : vector<1x32xf32> to vector<16x32xf32>
    %13 = arith.addf %10, %12 : vector<16x32xf32>
    %14 = arith.addf %7, %13 : vector<16x32xf32>
    %c0_13 = arith.constant 0 : index
    %c0_14 = arith.constant 0 : index
    %15 = vector.load %arg7[%c0_13, %c0_14] : memref<16x32xf32, #tpu.memory_space<vmem>>, vector<16x32xf32>
    tpu.vector_store %arg7[%c0_13, %c0_14], %14 {strides = array<i32>} : memref<16x32xf32, #tpu.memory_space<vmem>>, vector<16x32xf32>,
    return
  }
  func.func @transform_0(%arg0: i32) -> (i32, i32) {
    %c0_i32 = arith.constant 0 : i32
    %c0_i32_0 = arith.constant 0 : i32
    return %arg0, %c0_i32 : i32, i32
  }
  func.func @transform_1(%arg0: i32) -> (i32, i32) {
    %c0_i32 = arith.constant 0 : i32
    %c0_i32_0 = arith.constant 0 : i32
    return %arg0, %c0_i32 : i32, i32
  }
  func.func @transform_2(%arg0: i32) -> (i32, i32) {
    %c0_i32 = arith.constant 0 : i32
    %c0_i32_0 = arith.constant 0 : i32
    %c0_i32_1 = arith.constant 0 : i32
    return %c0_i32, %c0_i32_0 : i32, i32
  }
  func.func @transform_3(%arg0: i32) -> (i32, i32) {
    %c0_i32 = arith.constant 0 : i32
    %c0_i32_0 = arith.constant 0 : i32
    %c0_i32_1 = arith.constant 0 : i32
    return %c0_i32, %c0_i32_0 : i32, i32
  }
  func.func @transform_4(%arg0: i32) -> (i32, i32) {
    %c0_i32 = arith.constant 0 : i32
    %c0_i32_0 = arith.constant 0 : i32
    %c0_i32_1 = arith.constant 0 : i32
    return %c0_i32, %c0_i32_0 : i32, i32
  }
  func.func @transform_5(%arg0: i32) -> (i32, i32) {
    %c0_i32 = arith.constant 0 : i32
    %c0_i32_0 = arith.constant 0 : i32
    %c0_i32_1 = arith.constant 0 : i32
    return %c0_i32, %c0_i32_0 : i32, i32
  }
  func.func @transform_6(%arg0: i32) -> (i32, i32) {
    %c0_i32 = arith.constant 0 : i32
    %c0_i32_0 = arith.constant 0 : i32
    return %arg0, %c0_i32 : i32, i32
  }
}

</mosaic_0001>

<bundles_post_ra>
// kernel: backbone_base_forward.3
= control target key start
LH: loop header
LB: loop body
LE: loop exit
PB: predicated region body
PF: predicated region fallthrough
CT: control target
= control target key end

     0   :  { %11 = vsyncpa [#allocation3], 0  ;;  %s1044_s0 = inlined_call_operand.vmem [shape: bf16[128,256], index: 0, kind: input, shape index: {}]   ;;  %s1045_s1 = inlined_call_operand.vmem [shape: bf16[128,32], index: 1, kind: input, shape index: {}]   ;;  %s1046_s2 = inlined_call_operand.vmem [shape: bf16[256,32], index: 2, kind: input, shape index: {}]   ;;  %s1047_s3 = inlined_call_operand.vmem [shape: f32[1,32], index: 3, kind: input, shape index: {}]   ;;  %s1048_s4 = inlined_call_operand.vmem [shape: bf16[32,32], index: 4, kind: input, shape index: {}]   ;;  %s1049_s5 = inlined_call_operand.vmem [shape: f32[1,32], index: 5, kind: input, shape index: {}]   ;;  %s1050_s6 = inlined_call_operand.hbm [shape: f32[128,32], index: 6, kind: output, shape index: {}]  }
   0x1   :  { %13 = vsyncpa [#allocation3 + $0x1], 0  ;;  %s877_s21 = smov 0   ;;  %s879_s22 = smov 0  }
   0x2   :  { %s881_s23 = smov 0   ;;  %s883_s24 = smov 0  }
   0x3 LB: > { %s898_s25 = sadd.s32 4294967295, %s835_s24   ;;  %s636_s26 = sadd.s32 4294967294, %s835_s24   ;;  %s835_s24 = sphi %s883_s24, %s1056_s24   ;;  %s831_s23 = sphi %s881_s23, %s1055_s23   ;;  %s827_s22 = sphi %s879_s22, %s1054_s22   ;;  %s823_s21 = sphi %s877_s21, %s1053_s21  }
   0x4   : > { %s902_s27 = sadd.s32 1, %s835_s24   ;;  %s162_s28 = sadd.s32 1, %s831_s23 }
   0x5   : > { %s159_s29 = ssub.s32 %s835_s24, %s902_s27  ;;  %p172_p0 = scmp.ne.s32.totalorder %s831_s23, %s827_s22 }
   0x6   : > { %p160_p1 = scmp.eq.s32.totalorder %s159_s29, 0  ;;  %p173_p2 = scmp.eq.s32.totalorder %s898_s25, 7 }
   0x7   : > { %p178_p3 = scmp.ne.s32.totalorder %s827_s22, %s823_s21  ;;  %p179_p4 = scmp.eq.s32.totalorder %s636_s26, 7 }
   0x8   : > { %s913_s30 = scalar_select %p160_p1, %s831_s23, %s162_s28  }
   0x9   : > { %p915_p5 = por %p173_p2, %p172_p0  ;;  %p919_p6 = por %p179_p4, %p178_p3 }
   0xa   : > { %p639_p7 = scmp.ge.s32.totalorder %s835_s24, 1  ;;  %p228_p8 = scmp.lt.s32.totalorder %s835_s24, 9 }
   0xc   : > { %p229_p9 = pnand %p639_p7, %p228_p8 }
   0xd   : > { %s641_s15 = sshll.u32 (!%p229_p9), %s898_s25, 1  ;;  %s261_s12 = sand.u32 (!%p229_p9), 1, %s827_s22  }
   0xe   : > { %232 = sbr.rel (%p229_p9) target bundleno = 273 (0x111), region = 44  ;;  %p265_p10 = scmp.lt.s32.totalorder (!%p229_p9), %s641_s15, 15 }
   0xf   : > { %s676_s18 = sshll.u32 (!%p229_p9), %s898_s25, 8  ;;  %s1004_s25 = scalar_lea.sflag (!%p229_p9), [#allocation3], %s261_s12 }
  0x10   : > { %s839_s29 = smov (!%p229_p9), [#allocation2]  }
  0x11   : > { %s779_s10 = sshll.u32 (!%p229_p9), %s839_s29, 4  ;;  %s780_s10 = int_to_ptr.vmem [resolvable:$false] %s779_s10 }
  0x12   : > { %s781_s11 = scalar_lea.vmem (!%p229_p9), %s780_s10, 512 }
  0x13   : > { %v753_v0 = vld [vmem:[%s1046_s2 + $0x78] sm:$0xff]   ;;  %v837_v2 = vmov 0.0   ;;  %v755_v3 = vld [vmem:[%s1046_s2 + $0x70] sm:$0xff]   ;;  %v757_v5 = vld [vmem:[%s1046_s2 + $0x68] sm:$0xff]   ;;  %vm838_vm0 = vmmov 0   ;;  %s1058_s15 = smov (!%p265_p10, %s641_s15), 15 }
  0x14   : > { %v754_v1 = vld [vmem:[%s1046_s2 + $0x38] sm:$0xff]   ;;  %702 = vmatprep.subr.bf16.mxu1 %v837_v2  ;;  %677 = vmatprep.subr.bf16.mxu0 %v753_v0  ;;  %v756_v4 = vld [vmem:[%s1046_s2 + $0x30] sm:$0xff]   ;;  %v758_v6 = vld [vmem:[%s1046_s2 + $0x28] sm:$0xff]   ;;  %s675_s13 = sshll.u32 %s1058_s15, 3  ;;  %s645_s17 = sshll.u32 %s1058_s15, 2  ;;  %vm499_vm1 = vcmask 261120  }
  0x15   : > { %678 = vmatpush3.bf16.msra.mxu0 %v754_v1  ;;  %706 = vmatprep.mubr.msk.bf16.mxu1 %vm838_vm0, %v837_v2  ;;  %v759_v7 = vld [vmem:[%s1046_s2 + $0x60] sm:$0xff]   ;;  %v761_v9 = vld [vmem:[%s1046_s2 + $0x58] sm:$0xff]   ;;  %v767_v10 = vld [vmem:[%s1048_s4 + $0x8] sm:$0xff]   ;;  %s269_s9 = scalar_lea.vmem %s1044_s0, %s675_s13  ;;  %s275_s14 = scalar_lea.vmem %s1045_s1, %s645_s17 }
  0x16   : > { %679 = vmatprep.subr.bf16.mxu0 %v755_v3  ;;  %v760_v8 = vld [vmem:[%s1046_s2 + $0x20] sm:$0xff]   ;;  %v762_v11 = vld [vmem:[%s1046_s2 + $0x18] sm:$0xff]   ;;  %v763_v12 = vld [vmem:[%s1046_s2 + $0x50] sm:$0xff]   ;;  %703 = vmatpush3.bf16.msra.mxu1 %v767_v10  ;;  %s999_s17 = scalar_lea.hbm %s1050_s6, %s676_s18 }
  0x17   : > { %704 = vmatprep.subr.bf16.mxu1 %v837_v2  ;;  %v770_v13 = vld [vmem:[%s1048_s4] sm:$0xff]   ;;  %v764_v14 = vld [vmem:[%s1046_s2 + $0x10] sm:$0xff]   ;;  %v765_v16 = vld [vmem:[%s1046_s2 + $0x48] sm:$0xff]  }
  0x18   : > { %v773_v15 = vld [vmem:[%s269_s9 + $0x4] ss:$8 sps:$4 sm:$0xff]   ;;  %v771_v21 = vld [vmem:[%s269_s9] ss:$8 sps:$4 sm:$0xff]   ;;  %s640_s9 = sshll.u32 %s261_s12, 4 }
  0x19   : > { %680 = vmatpush3.bf16.msra.mxu0 %v756_v4  ;;  %v774_v17 = vld [vmem:[%s275_s14] sm:$0xff]   ;;  %458 = vmatprep.mubr.bf16.mxu0 %v773_v15  ;;  %v766_v18 = vld [vmem:[%s1046_s2 + $0x8] sm:$0xff]   ;;  %s263_s19 = scalar_lea.vmem [#allocation2], %s640_s9 }
  0x1a   : > { %681 = vmatprep.subr.bf16.mxu0 %v757_v5  ;;  %705 = vmatpush3.bf16.msra.mxu1 %v770_v13  ;;  %v768_v19 = vld [vmem:[%s1046_s2 + $0x40] sm:$0xff]   ;;  %s562_s20 = sshll.u32 %s263_s19, 4  ;;  %s1001_s20 = int_to_ptr.vmem [resolvable:$true] %s562_s20 }
  0x1b   : > { %v769_v20 = vld [vmem:[%s1046_s2] sm:$0xff]   ;;  %s775_s28 = scalar_lea.vmem %s1001_s20, 256  ;;  %p782_p0 = scmp.lt.s32.totalorder %s1001_s20, %s780_s10 }
  0x1c   : > { %v665_v27 = vld [vmem:[%s1049_s5] ss:$0 sm:$0xff]  ;;  %p776_p11 = scmp.ne.s32.totalorder %s1001_s20, %s775_s28  ;;  %p783_p1 = scmp.lt.s32.totalorder %s781_s11, %s775_s28 }
  0x1d   : > { %682 = vmatpush3.bf16.msra.mxu0 %v758_v6  ;;  %707 = vmatmul.mubr.msk.bf16.vlgmr.msra.gmra.mxu1 %vm499_vm1, %v774_v17  ;;  %v646_v28 = vld [vmem:[%s1047_s3] ss:$0 sm:$0xff] }
  0x1e   : > { %683 = vmatprep.subr.bf16.mxu0 %v759_v7  ;;  %p777_p12 = pnand %p776_p11, %p915_p5  ;;  %p784_p2 = por %p783_p1, %p782_p0 }
  0x20   : > { %p778_p13 = pneg %p777_p12 }
  0x21   : > { %684 = vmatpush3.bf16.msra.mxu0 %v760_v8 }
  0x22   : > { %685 = vmatprep.subr.bf16.mxu0 %v761_v9  ;;  %p785_p3 = pnand %p784_p2, %p778_p13 }
  0x25   : > { %686 = vmatpush3.bf16.msra.mxu0 %v762_v11 }
  0x26   : > { %687 = vmatprep.subr.bf16.mxu0 %v763_v12 }
  0x29   : > { %688 = vmatpush3.bf16.msra.mxu0 %v764_v14 }
  0x2a   : > { %689 = vmatprep.subr.bf16.mxu0 %v765_v16 }
  0x2d   : > { %690 = vmatpush3.bf16.msra.mxu0 %v766_v18 }
  0x2e   : > { %691 = vmatprep.subr.bf16.mxu0 %v768_v19 }
  0x31   : > { %692 = vmatpush3.bf16.msra.mxu0 %v769_v20 }
  0x34   : > { %459 = vmatmul.mubr.bf16.vlgmr.msra.gmra.mxu0 %v771_v21 }
  0xdd   : > { %v537_v22 = vpop.f32.mrf.mxu1 }
  0xde   : > { %v538_v32 = vadd.f32 %v665_v27, %v537_v22 }
  0xdf   : > { %v708_v23 = vpop.f32.mrf.mxu1 }
  0xe1   : > { %v540_v24 = vpop.f32.mrf.mxu1 }
  0xe2   : > { %v541_v39 = vadd.f32 %v665_v27, %v540_v24 }
  0xe3   : > { %v709_v25 = vpop.f32.mrf.mxu1 }
  0xf4   : > { %v693_v26 = vpop.f32.mrf.mxu0 }
  0xf6   : > { %v694_v29 = vpop.f32.mrf.mxu0 }
  0xf7   : > { %v695_v30 = vadd.f32 %v694_v29, %v693_v26 }
  0xf8   : > { %v696_v31 = vpop.f32.mrf.mxu0 }
  0xf9   : > { %v461_v33 = vadd.f32 %v695_v30, %v646_v28 }
  0xfa   : > { %v697_v34 = vpop.f32.mrf.mxu0 }
  0xfb   : > { %v467_v35 = vmax.f32 %v461_v33, 0.0  ;;  %v698_v36 = vadd.f32 %v697_v34, %v696_v31 }
  0xfd   : > { %v544_v37 = vadd.f32 %v538_v32, %v467_v35  ;;  %v464_v38 = vadd.f32 %v698_v36, %v646_v28 }
  0xff   : > { %546 = vst.msk [vmem:[%s263_s19] sm:$0xff] %vm499_vm1, %v544_v37  ;;  %v468_v40 = vmax.f32 %v464_v38, 0.0 }
 0x101   : > { %v545_v41 = vadd.f32 %v541_v39, %v468_v40 }
 0x103   : > { %547 = vst.msk [vmem:[%s263_s19 + $0x8] sm:$0xff] %vm499_vm1, %v545_v41 }
 0x104   : > { %788 = shalt.err (!%p785_p3)
}
 0x105   : > { %s789_s15 = scalar_lea.hbm %s999_s17, 256  ;;  %s793_s16 = scalar_lea.hbm %s1050_s6, 2048 }
 0x106   : > { %p790_p4 = scmp.ne.s32.totalorder %s999_s17, %s789_s15  ;;  %p794_p9 = scmp.lt.s32.totalorder %s999_s17, %s1050_s6 }
 0x107   : > { %p795_p10 = scmp.lt.s32.totalorder %s793_s16, %s789_s15 }
 0x108   : > { %p791_p7 = pnand %p790_p4, %p915_p5 }
 0x109   : > { %p796_p11 = por %p795_p10, %p794_p9 }
 0x10a   : > { %p792_p8 = pneg %p791_p7 }
 0x10c   : > { %p797_p12 = pnand %p796_p11, %p792_p8 }
 0x10e   : > { %800 = shalt.err (!%p797_p12)
}
 0x10f   : > { %s840_s19 = smov 128   ;;  %s841_s13 = smov 8  }
 0x110   : > { %710 = dma.vmem_to_hbm [thread:$0]  (%p915_p5), %s1001_s20, 256, %s999_s17, %s1004_s25, %s840_s19, %s840_s19, %s841_s13  }
 0x111 PF: > { %p716_p13 = scmp.ge.s32.totalorder %s835_s24, 2  ;;  %s577_s26 = sand.u32 1, %s823_s21  }
 0x112   : > { %s578_s28 = scalar_lea.sflag [#allocation3], %s577_s26 }
 0x113   : > { %p713_p0 = pnand %p716_p13, %p919_p6 }
 0x115   : > { %p714_p1 = pneg %p713_p0 }
 0x117   : > { %818 = dma.done.wait (%p714_p1), %s578_s28, 256  }
 0x118   : > { %820 = vsyncadd (%p714_p1), %s578_s28, 4294967040  ;;  %p16_p2 = scmp.ge.s32.totalorder %s902_s27, 10   ;;  %s1053_s21 = smov %s827_s22 }
 0x119   : > { %s1054_s22 = smov %s831_s23  ;;  %s1055_s23 = smov %s913_s30 }
 0x11a   : > { %s1056_s24 = smov %s902_s27  ;;  %18 = sbr.rel (!%p16_p2) target bundleno = 3 (0x3), region = 82 }
 0x11f   :  { %583 = vsyncpa [#allocation3], 1 }
 0x120   :  { %585 = vsyncpa [#allocation3 + $0x1], 1 }

// kernel: backbone_base_forward.2
= control target key start
LH: loop header
LB: loop body
LE: loop exit
PB: predicated region body
PF: predicated region fallthrough
CT: control target
= control target key end

     0   :  { %v8879_v1 = vmov 0   ;;  %vm103_vm0 = vcmask 523264   ;;  %vm384_vm1 = vsmask.f32 2306  ;;  %vm383_vm2 = vcmask 1042432   ;;  %s11553_s1 = inlined_call_operand.vmem [shape: bf16[64,256], index: 1, kind: input, shape index: {}]   ;;  %s11554_s0 = inlined_call_operand.vmem [shape: bf16[2,16,64], index: 0, kind: input, shape index: {}]   ;;  %s11555_s3 = inlined_call_operand.vmem [shape: bf16[2,2,1024,256], index: 3, kind: input, shape index: {}]   ;;  %s11556_s2 = inlined_call_operand.vmem [shape: f32[1,256], index: 2, kind: input, shape index: {}]   ;;  %s11557_s4 = inlined_call_operand.vmem [shape: f32[1,256], index: 4, kind: input, shape index: {}]   ;;  %s11558_s5 = inlined_call_operand.vmem [shape: bf16[2,4,2,4,512], index: 5, kind: output, shape index: {}]  }
   0x1   :  { %v8091_v0 = vld [vmem:[%s11553_s1 + $0x34] ss:$8 sps:$4 sm:$0xff]   ;;  %142 = vmatprep.mubr.bf16.mxu0 %v8879_v1  ;;  %182 = vst [vmem:[#allocation3] sm:$0x77] %v8879_v1  ;;  %183 = vst [vmem:[#allocation3 + $0x8] sm:$0x77] %v8879_v1 }
   0x2   :  { %184 = vst [vmem:[#allocation3 + $0x10] sm:$0x77] %v8879_v1  ;;  %185 = vst [vmem:[#allocation3 + $0x18] sm:$0x77] %v8879_v1  ;;  %v8093_v2 = vld [vmem:[%s11553_s1 + $0x30] ss:$8 sps:$4 sm:$0xff]   ;;  %118 = vmatprep.subr.bf16.mxu0 %v8091_v0 }
   0x3   :  { %186 = vst [vmem:[#allocation3 + $0x20] sm:$0x77] %v8879_v1  ;;  %187 = vst [vmem:[#allocation3 + $0x28] sm:$0x77] %v8879_v1  ;;  %v8094_v3 = vld [vmem:[%s11553_s1 + $0x24] ss:$8 sps:$4 sm:$0xff]   ;;  %119 = vmatpush1.bf16.msra.mxu0 %v8093_v2 }
   0x4   :  { %188 = vst [vmem:[#allocation3 + $0x30] sm:$0x77] %v8879_v1  ;;  %189 = vst [vmem:[#allocation3 + $0x38] sm:$0x77] %v8879_v1  ;;  %v8096_v4 = vld [vmem:[%s11553_s1 + $0x20] ss:$8 sps:$4 sm:$0xff]   ;;  %120 = vmatprep.subr.bf16.mxu0 %v8094_v3 }
   0x5   :  { %190 = vst [vmem:[#allocation3 + $0x40] sm:$0x77] %v8879_v1  ;;  %191 = vst [vmem:[#allocation3 + $0x48] sm:$0x77] %v8879_v1  ;;  %v8097_v5 = vld [vmem:[%s11553_s1 + $0x14] ss:$8 sps:$4 sm:$0xff]  }
   0x6   :  { %192 = vst [vmem:[#allocation3 + $0x50] sm:$0x77] %v8879_v1  ;;  %193 = vst [vmem:[#allocation3 + $0x58] sm:$0x77] %v8879_v1  ;;  %v8099_v6 = vld [vmem:[%s11553_s1 + $0x10] ss:$8 sps:$4 sm:$0xff]  }
   0x7   :  { %121 = vmatpush1.bf16.msra.mxu0 %v8096_v4  ;;  %v8100_v7 = vld [vmem:[%s11553_s1 + $0x4] ss:$8 sps:$4 sm:$0xff]   ;;  %v8102_v8 = vld [vmem:[%s11553_s1] ss:$8 sps:$4 sm:$0xff]   ;;  %v8107_v9 = vld [vmem:[%s11555_s3 + $0x174] ss:$8 sps:$4 sm:$0xff]  }
   0x8   :  { %122 = vmatprep.subr.bf16.mxu0 %v8097_v5  ;;  %v8114_v10 = vld [vmem:[%s11555_s3 + $0x74] ss:$8 sps:$4 sm:$0xff]   ;;  %v8116_v11 = vld [vmem:[%s11555_s3 + $0x70] ss:$8 sps:$4 sm:$0xff]   ;;  %v8103_v12 = vld [vmem:[%s11554_s0] sm:$0xff]   ;;  %vm386_vm3 = vcmask 1046532  }
   0x9   :  { %1889 = vmatprep.subr.bf16.mxu1 %v8114_v10  ;;  %v8120_v13 = vld [vmem:[%s11555_s3 + $0x64] ss:$8 sps:$4 sm:$0xff]   ;;  %v8105_v14 = vld [vmem:[%s11555_s3 + $0x170] ss:$8 sps:$4 sm:$0xff]   ;;  %v8122_v16 = vld [vmem:[%s11555_s3 + $0x60] ss:$8 sps:$4 sm:$0xff]  }
   0xa   :  { %1890 = vmatpush1.bf16.msra.mxu1 %v8116_v11  ;;  %v8110_v15 = vld [vmem:[%s11555_s3 + $0x164] ss:$8 sps:$4 sm:$0xff]   ;;  %v8126_v17 = vld [vmem:[%s11555_s3 + $0x54] ss:$8 sps:$4 sm:$0xff]   ;;  %v8108_v18 = vld [vmem:[%s11555_s3 + $0x160] ss:$8 sps:$4 sm:$0xff]  }
   0xb   :  { %123 = vmatpush1.bf16.msra.mxu0 %v8099_v6  ;;  %1891 = vmatprep.subr.bf16.mxu1 %v8120_v13  ;;  %v8113_v19 = vld [vmem:[%s11555_s3 + $0x154] ss:$8 sps:$4 sm:$0xff]   ;;  %v8128_v20 = vld [vmem:[%s11555_s3 + $0x50] ss:$8 sps:$4 sm:$0xff]   ;;  %v8132_v21 = vld [vmem:[%s11555_s3 + $0x44] ss:$8 sps:$4 sm:$0xff]   ;;  %v204_v13 = vlaneseq }
   0xc   :  { %124 = vmatprep.subr.bf16.mxu0 %v8100_v7  ;;  %v8104_v22 = vld [vmem:[%s11554_s0 + $0x8] sm:$0xff]   ;;  %v8111_v23 = vld [vmem:[%s11555_s3 + $0x150] ss:$8 sps:$4 sm:$0xff]   ;;  %v8138_v27 = vld [vmem:[%s11555_s3 + $0x34] ss:$8 sps:$4 sm:$0xff]   ;;  %vm2205_vm15 = vcmask 1040384  }
   0xd   :  { %v8119_v24 = vld [vmem:[%s11555_s3 + $0x144] ss:$8 sps:$4 sm:$0xff]   ;;  %v8134_v25 = vld [vmem:[%s11555_s3 + $0x40] ss:$8 sps:$4 sm:$0xff]   ;;  %v8125_v28 = vld [vmem:[%s11555_s3 + $0x134] ss:$8 sps:$4 sm:$0xff]  }
   0xe   :  { %1892 = vmatpush1.bf16.msra.mxu1 %v8122_v16  ;;  %v8117_v26 = vld [vmem:[%s11555_s3 + $0x140] ss:$8 sps:$4 sm:$0xff]   ;;  %v8140_v29 = vld [vmem:[%s11555_s3 + $0x30] ss:$8 sps:$4 sm:$0xff]   ;;  %v8144_v30 = vld [vmem:[%s11555_s3 + $0x24] ss:$8 sps:$4 sm:$0xff]  }
   0xf   :  { %125 = vmatpush1.bf16.msra.mxu0 %v8102_v8  ;;  %1893 = vmatprep.subr.bf16.mxu1 %v8126_v17  ;;  %v8123_v31 = vld [vmem:[%s11555_s3 + $0x130] ss:$8 sps:$4 sm:$0xff]   ;;  %v8131_v32 = vld [vmem:[%s11555_s3 + $0x124] ss:$8 sps:$4 sm:$0xff]   ;;  %v8129_v33 = vld [vmem:[%s11555_s3 + $0x120] ss:$8 sps:$4 sm:$0xff]  }
  0x10   :  { %1942 = vmatprep.subr.bf16.mxu0 %v8107_v9  ;;  %v8137_v34 = vld [vmem:[%s11555_s3 + $0x114] ss:$8 sps:$4 sm:$0xff]   ;;  %v8135_v35 = vld [vmem:[%s11555_s3 + $0x110] ss:$8 sps:$4 sm:$0xff]   ;;  %v8143_v36 = vld [vmem:[%s11555_s3 + $0x104] ss:$8 sps:$4 sm:$0xff]  }
  0x11   :  { %v8141_v37 = vld [vmem:[%s11555_s3 + $0x100] ss:$8 sps:$4 sm:$0xff]   ;;  %v8149_v39 = vld [vmem:[%s11555_s3 + $0x1f4] ss:$8 sps:$4 sm:$0xff]   ;;  %v8147_v40 = vld [vmem:[%s11555_s3 + $0x1f0] ss:$8 sps:$4 sm:$0xff]  }
  0x12   :  { %6967 = vmatmul.mubr.msk.bf16.vlgmr.msra.gmra.mxu0 %vm103_vm0, %v8103_v12  ;;  %1894 = vmatpush1.bf16.msra.mxu1 %v8128_v20  ;;  %v8146_v38 = vld [vmem:[%s11555_s3 + $0x20] ss:$8 sps:$4 sm:$0xff]   ;;  %v8150_v41 = vld [vmem:[%s11555_s3 + $0x14] ss:$8 sps:$4 sm:$0xff]   ;;  %v8152_v42 = vld [vmem:[%s11555_s3 + $0x10] ss:$8 sps:$4 sm:$0xff]  }
  0x13   :  { %152 = vmatprep.mubr.bf16.mxu0 %v8879_v1  ;;  %1943 = vmatpush1.bf16.msra.mxu0 %v8105_v14  ;;  %v8155_v43 = vld [vmem:[%s11555_s3 + $0x1e4] ss:$8 sps:$4 sm:$0xff]   ;;  %v8153_v44 = vld [vmem:[%s11555_s3 + $0x1e0] ss:$8 sps:$4 sm:$0xff]   ;;  %v8161_v47 = vld [vmem:[%s11555_s3 + $0x1d4] ss:$8 sps:$4 sm:$0xff]  }
  0x14   :  { %1944 = vmatprep.subr.bf16.mxu0 %v8110_v15  ;;  %1895 = vmatprep.subr.bf16.mxu1 %v8132_v21  ;;  %v8156_v45 = vld [vmem:[%s11555_s3 + $0x4] ss:$8 sps:$4 sm:$0xff]   ;;  %v8158_v46 = vld [vmem:[%s11555_s3] ss:$8 sps:$4 sm:$0xff]   ;;  %v8159_v48 = vld [vmem:[%s11555_s3 + $0x1d0] ss:$8 sps:$4 sm:$0xff]  }
  0x15   :  { %v8162_v49 = vld [vmem:[%s11555_s3 + $0xf4] ss:$8 sps:$4 sm:$0xff]   ;;  %v8164_v50 = vld [vmem:[%s11555_s3 + $0xf0] ss:$8 sps:$4 sm:$0xff]   ;;  %v8167_v51 = vld [vmem:[%s11555_s3 + $0x1c4] ss:$8 sps:$4 sm:$0xff]  }
  0x16   :  { %1896 = vmatpush1.bf16.msra.mxu1 %v8134_v25  ;;  %v8165_v52 = vld [vmem:[%s11555_s3 + $0x1c0] ss:$8 sps:$4 sm:$0xff]   ;;  %v8168_v53 = vld [vmem:[%s11555_s3 + $0xe4] ss:$8 sps:$4 sm:$0xff]   ;;  %v8173_v55 = vld [vmem:[%s11555_s3 + $0x1b4] ss:$8 sps:$4 sm:$0xff]  }
  0x17   :  { %1945 = vmatpush1.bf16.msra.mxu0 %v8108_v18  ;;  %1897 = vmatprep.subr.bf16.mxu1 %v8138_v27  ;;  %v8170_v54 = vld [vmem:[%s11555_s3 + $0xe0] ss:$8 sps:$4 sm:$0xff]   ;;  %v8171_v56 = vld [vmem:[%s11555_s3 + $0x1b0] ss:$8 sps:$4 sm:$0xff]   ;;  %v8174_v57 = vld [vmem:[%s11555_s3 + $0xd4] ss:$8 sps:$4 sm:$0xff]  }
  0x18   :  { %1946 = vmatprep.subr.bf16.mxu0 %v8113_v19  ;;  %v8176_v58 = vld [vmem:[%s11555_s3 + $0xd0] ss:$8 sps:$4 sm:$0xff]   ;;  %v8179_v59 = vld [vmem:[%s11555_s3 + $0x1a4] ss:$8 sps:$4 sm:$0xff]   ;;  %v8177_v60 = vld [vmem:[%s11555_s3 + $0x1a0] ss:$8 sps:$4 sm:$0xff]  }
  0x19   :  { %v8180_v61 = vld [vmem:[%s11555_s3 + $0xc4] ss:$8 sps:$4 sm:$0xff]   ;;  %v8182_v62 = vld [vmem:[%s11555_s3 + $0xc0] ss:$8 sps:$4 sm:$0xff]   ;;  %v8185_v63 = vld [vmem:[%s11555_s3 + $0x194] ss:$8 sps:$4 sm:$0xff]  }
  0x1a   :  { %6968 = vmatmul.mubr.msk.bf16.gmra.mxu0 %vm103_vm0, %v8104_v22  ;;  %1898 = vmatpush1.bf16.msra.mxu1 %v8140_v29  ;;  %v8183_v0 = vld [vmem:[%s11555_s3 + $0x190] ss:$8 sps:$4 sm:$0xff]   ;;  %v8186_v1 = vld [vmem:[%s11555_s3 + $0xb4] ss:$8 sps:$4 sm:$0xff]   ;;  %v8189_v3 = vld [vmem:[%s11555_s3 + $0x180] ss:$8 sps:$4 sm:$0xff]  }
  0x1b   :  { %1947 = vmatpush1.bf16.msra.mxu0 %v8111_v23  ;;  %1899 = vmatprep.subr.bf16.mxu1 %v8144_v30  ;;  %v8188_v2 = vld [vmem:[%s11555_s3 + $0xb0] ss:$8 sps:$4 sm:$0xff]   ;;  %v8191_v4 = vld [vmem:[%s11555_s3 + $0x184] ss:$8 sps:$4 sm:$0xff]   ;;  %v8194_v6 = vld [vmem:[%s11555_s3 + $0xa0] ss:$8 sps:$4 sm:$0xff]  }
  0x1c   :  { %1948 = vmatprep.subr.bf16.mxu0 %v8119_v24  ;;  %v8192_v5 = vld [vmem:[%s11555_s3 + $0xa4] ss:$8 sps:$4 sm:$0xff]   ;;  %v8197_v7 = vld [vmem:[%s11555_s3 + $0x374] ss:$8 sps:$4 sm:$0xff]   ;;  %v8200_v9 = vld [vmem:[%s11555_s3 + $0x90] ss:$8 sps:$4 sm:$0xff]  }
  0x1d   :  { %v8198_v8 = vld [vmem:[%s11555_s3 + $0x94] ss:$8 sps:$4 sm:$0xff]   ;;  %v8204_v10 = vld [vmem:[%s11555_s3 + $0x84] ss:$8 sps:$4 sm:$0xff]   ;;  %v8206_v11 = vld [vmem:[%s11555_s3 + $0x80] ss:$8 sps:$4 sm:$0xff]  }
  0x1e   :  { %1900 = vmatpush1.bf16.msra.mxu1 %v8146_v38  ;;  %v8212_v12 = vld [vmem:[%s11555_s3 + $0x274] ss:$8 sps:$4 sm:$0xff]   ;;  %v9141_v14 = vshrl.u32 %v204_v13, 7  ;;  %v202_v15 = vld [vmem:[%s11556_s2] sm:$0x3]  ;;  %vm9162_vm5 = vmand %vm383_vm2, %vm384_vm1  ;;  %vm2206_vm0 = vcmask 1042434  }
  0x1f   :  { %1949 = vmatpush1.bf16.msra.mxu0 %v8117_v26  ;;  %1901 = vmatprep.subr.bf16.mxu1 %v8150_v41  ;;  %v9160_v29 = vld.sshfl [vmem:[#allocation3] sm:$0x5f pattern:$0x76325410]  ;;  %vm387_vm4 = vsmask.f32 6418 }
  0x20   :  { %1950 = vmatprep.subr.bf16.mxu0 %v8125_v28  ;;  %v9147_v16 = vsub.s32 0, %v9141_v14  ;;  %v9150_v17 = vsub.s32 1, %v9141_v14  ;;  %vm388_vm6 = vmand %vm386_vm3, %vm387_vm4  ;;  %vm494_vm8 = vsmask.f32 1280  ;;  %vm495_vm9 = vsmask.f32 3336 }
  0x21   :  { %vm9177_vm7 = vmor %vm388_vm6, %vm9162_vm5  ;;  %vm497_vm10 = vsmask.f32 5392  ;;  %vm499_vm11 = vsmask.f32 7448  ;;  %vm2208_vm1 = vcmask 1044484   ;;  %vm2210_vm2 = vcmask 1046534  }
  0x22   :  { %1902 = vmatpush1.bf16.msra.mxu1 %v8152_v42  ;;  %11576 = vst [vmem:[#allocation4_spill] sm:$0xff] %v9147_v16  ;;  %11577 = vst [vmem:[#allocation5_spill] sm:$0xff] %v9150_v17  ;;  %v9153_v18 = vrot.slane %v202_v15, %v9147_v16  ;;  %v9156_v19 = vrot.slane %v202_v15, %v9150_v17  ;;  %v8305_v16 = vld [vmem:[%s11555_s3 + $0x554] ss:$8 sps:$4 sm:$0xff]  }
  0x23   :  { %1951 = vmatpush1.bf16.msra.mxu0 %v8123_v31  ;;  %1903 = vmatprep.subr.bf16.mxu1 %v8156_v45  ;;  %vm9212_vm12 = vmor %vm494_vm8, %vm495_vm9 }
  0x24   :  { %1952 = vmatprep.subr.bf16.mxu0 %v8131_v32  ;;  %vm9228_vm13 = vmor %vm9212_vm12, %vm497_vm10 }
  0x25   :  { %vm9249_vm14 = vmor %vm9228_vm13, %vm499_vm11 }
  0x26   :  { %1904 = vmatpush1.bf16.msra.mxu1 %v8158_v46  ;;  %vm9321_vm3 = vmor %vm2205_vm15, %vm2206_vm0 }
  0x27   :  { %1953 = vmatpush1.bf16.msra.mxu0 %v8129_v33  ;;  %1905 = vmatprep.subr.bf16.mxu1 %v8162_v49  ;;  %vm9347_vm4 = vmor %vm9321_vm3, %vm2208_vm1 }
  0x28   :  { %1954 = vmatprep.subr.bf16.mxu0 %v8137_v34  ;;  %vm9386_vm5 = vmor %vm9347_vm4, %vm2210_vm2 }
  0x2a   :  { %1906 = vmatpush2.bf16.msra.mxu1 %v8164_v50 }
  0x2b   :  { %1955 = vmatpush1.bf16.msra.mxu0 %v8135_v35  ;;  %1907 = vmatprep.subr.bf16.mxu1 %v8168_v53 }
  0x2c   :  { %1956 = vmatprep.subr.bf16.mxu0 %v8143_v36 }
  0x2e   :  { %1908 = vmatpush2.bf16.msra.mxu1 %v8170_v54 }
  0x2f   :  { %1957 = vmatpush1.bf16.msra.mxu0 %v8141_v37  ;;  %1909 = vmatprep.subr.bf16.mxu1 %v8174_v57  ;;  %v8880_v37 = vmov 1983009808  }
  0x30   :  { %1958 = vmatprep.subr.bf16.mxu0 %v8149_v39  ;;  %v9168_v38 = vunpack.c.l.s4 %v8880_v37  ;;  %v766_v39 = vshrl.u32 %v9160_v29, 16 }
  0x32   :  { %1910 = vmatpush2.bf16.msra.mxu1 %v8176_v58 }
  0x33   :  { %1959 = vmatpush2.bf16.msra.mxu0 %v8147_v40  ;;  %1911 = vmatprep.subr.bf16.mxu1 %v8180_v61 }
  0x34   :  { %1960 = vmatprep.subr.bf16.mxu0 %v8155_v43 }
  0x36   :  { %1912 = vmatpush2.bf16.msra.mxu1 %v8182_v62 }
  0x37   :  { %1961 = vmatpush2.bf16.msra.mxu0 %v8153_v44  ;;  %1913 = vmatprep.subr.bf16.mxu1 %v8186_v1  ;;  %v390_v44 = vld [vmem:[#allocation3 + $0x8] sm:$0x77] }
  0x38   :  { %1962 = vmatprep.subr.bf16.mxu0 %v8161_v47 }
  0x3a   :  { %1914 = vmatpush2.bf16.msra.mxu1 %v8188_v2 }
  0x3b   :  { %1963 = vmatpush2.bf16.msra.mxu0 %v8159_v48  ;;  %1915 = vmatprep.subr.bf16.mxu1 %v8192_v5 }
  0x3c   :  { %1964 = vmatprep.subr.bf16.mxu0 %v8167_v51 }
  0x3e   :  { %1916 = vmatpush2.bf16.msra.mxu1 %v8194_v6 }
  0x3f   :  { %1965 = vmatpush2.bf16.msra.mxu0 %v8165_v52  ;;  %1917 = vmatprep.subr.bf16.mxu1 %v8198_v8  ;;  %v393_v52 = vld [vmem:[#allocation3 + $0x10] sm:$0x77]  ;;  %v396_v8 = vld [vmem:[#allocation3 + $0x18] sm:$0x77] }
  0x40   :  { %1966 = vmatprep.subr.bf16.mxu0 %v8173_v55 }
  0x42   :  { %1918 = vmatpush2.bf16.msra.mxu1 %v8200_v9  ;;  %v399_v9 = vld [vmem:[#allocation3 + $0x20] sm:$0x77] }
  0x43   :  { %1967 = vmatpush2.bf16.msra.mxu0 %v8171_v56  ;;  %1919 = vmatprep.subr.bf16.mxu1 %v8204_v10 }
  0x44   :  { %1968 = vmatprep.subr.bf16.mxu0 %v8179_v59  ;;  %v708_v59 = vcombine.high %v9160_v29, %v9160_v29 }
  0x46   :  { %1920 = vmatpush2.bf16.msra.mxu1 %v8206_v11 }
  0x47   :  { %1969 = vmatpush2.bf16.msra.mxu0 %v8177_v60  ;;  %1995 = vmatprep.subr.bf16.mxu1 %v8212_v12  ;;  %v769_v60 = vshll.u32 %v9160_v29, 16 }
  0x48   :  { %1970 = vmatprep.subr.bf16.mxu0 %v8185_v63 }
  0x4b   :  { %1971 = vmatpush2.bf16.msra.mxu0 %v8183_v0 }
  0x4c   :  { %1972 = vmatprep.subr.bf16.mxu0 %v8191_v4 }
  0x4f   :  { %1973 = vmatpush2.bf16.msra.mxu0 %v8189_v3 }
  0x50   :  { %2048 = vmatprep.subr.bf16.mxu0 %v8197_v7 }
  0xd2   :  { %v144_v20 = vpop.f32.mrf.mxu0 }
  0xd3   :  { %v214_v22 = vadd.f32 %v9153_v18, %v144_v20 }
  0xd4   :  { %v146_v21 = vpop.f32.mrf.mxu0 }
  0xd5   :  { %v215_v23 = vadd.f32 %v9156_v19, %v146_v21 }
  0xd6   :  { %v148_v24 = vpop.f32.mrf.mxu0 }
  0xd7   :  { %v230_v25 = vcombine.low %v214_v22, %v215_v23  ;;  %v231_v26 = vcombine.high %v214_v22, %v215_v23  ;;  %v6969_v27 = vcombine.low %v215_v23, %v215_v23  ;;  %v6970_v28 = vcombine.high %v215_v23, %v215_v23 }
  0xd8   :  { %v150_v30 = vpop.f32.mrf.mxu0  ;;  %v216_v35 = vadd.f32 %v9153_v18, %v148_v24  ;;  %v768_v23 = vrot.slane %v766_v39, 6  ;;  %v771_v24 = vrot.slane %v769_v60, 7  ;;  %v953_v39 = vunpack.c.0.s8 %v9168_v38 }
  0xd9   :  { %v8081_v31 = vpack.c.bf16 %v6969_v27, %v230_v25  ;;  %v8082_v32 = vpack.c.bf16 %v6970_v28, %v231_v26  ;;  %v217_v34 = vadd.f32 %v9156_v19, %v150_v30 }
  0xda   :  { %v154_v36 = vpop.f32.mrf.mxu0 }
  0xdb   :  { %v319_v40 = vshrl.u32 %v8081_v31, 16  ;;  %v322_v41 = vshll.u32 %v8081_v31, 16  ;;  %v326_v42 = vshrl.u32 %v8082_v32, 16  ;;  %v329_v43 = vshll.u32 %v8082_v32, 16 }
  0xdc   :  { %v232_v45 = vcombine.low %v216_v35, %v217_v34  ;;  %v233_v46 = vcombine.high %v216_v35, %v217_v34  ;;  %v6971_v47 = vcombine.low %v217_v34, %v217_v34  ;;  %v6972_v48 = vcombine.high %v217_v34, %v217_v34  ;;  %v156_v49 = vpop.f32.mrf.mxu0 }
  0xdd   :  { %v321_v50 = vrot.slane %v319_v40, 7  ;;  %v328_v51 = vrot.slane %v326_v42, 7  ;;  %v218_v53 = vadd.f32 %v9153_v18, %v154_v36  ;;  %v219_v54 = vadd.f32 %v9156_v19, %v156_v49 }
  0xde   :  { %v8083_v56 = vpack.c.bf16 %v6971_v47, %v232_v45  ;;  %v8084_v57 = vpack.c.bf16 %v6972_v48, %v233_v46  ;;  %v158_v58 = vpop.f32.mrf.mxu0  ;;  %v9195_v40 = vshll.u32 %v708_v59, 16  ;;  %v772_v47 = vor.u32 %v771_v24, %v768_v23 }
  0xdf   :  { %v324_v61 = vor.u32 %v322_v41, %v321_v50  ;;  %v331_v62 = vor.u32 %v329_v43, %v328_v51  ;;  %v234_v63 = vcombine.low %v218_v53, %v219_v54  ;;  %v235_v0 = vcombine.high %v218_v53, %v219_v54  ;;  %v405_v41 = vld [vmem:[#allocation3 + $0x40] sm:$0x77] }
  0xe0   :  { %v333_v1 = vshrl.u32 %v8083_v56, 16  ;;  %v336_v2 = vshll.u32 %v8083_v56, 16  ;;  %v340_v3 = vshrl.u32 %v8084_v57, 16  ;;  %v343_v4 = vshll.u32 %v8084_v57, 16  ;;  %v160_v5 = vpop.f32.mrf.mxu0  ;;  %v411_v56 = vld [vmem:[#allocation3 + $0x50] sm:$0x77] }
  0xe1   :  { %v391_v6 = vsel %vm9177_vm7, %v324_v61, %v390_v44  ;;  %v394_v7 = vsel %vm9177_vm7, %v331_v62, %v393_v52  ;;  %v6973_v10 = vcombine.low %v219_v54, %v219_v54  ;;  %v6974_v11 = vcombine.high %v219_v54, %v219_v54  ;;  %v9199_v52 = vld.sshfl [vmem:[#allocation3] sm:$0xf pattern:$0x76325410]  ;;  %v408_v54 = vld [vmem:[#allocation3 + $0x48] sm:$0x77] }
  0xe2   :  { %392 = vst [vmem:[#allocation3 + $0x8] sm:$0x77] %v391_v6  ;;  %395 = vst [vmem:[#allocation3 + $0x10] sm:$0x77] %v394_v7  ;;  %v335_v12 = vrot.slane %v333_v1, 7  ;;  %v342_v13 = vrot.slane %v340_v3, 7  ;;  %v220_v15 = vadd.f32 %v9153_v18, %v158_v58  ;;  %v221_v20 = vadd.f32 %v9156_v19, %v160_v5 }
  0xe3   :  { %v8085_v21 = vpack.c.bf16 %v6973_v10, %v234_v63  ;;  %v8086_v22 = vpack.c.bf16 %v6974_v11, %v235_v0  ;;  %v402_v19 = vld [vmem:[#allocation3 + $0x38] sm:$0x77]  ;;  %v777_v58 = vrot.slane %v9195_v40, 7  ;;  %v9207_v61 = vsub.s32 %v953_v39, %v9141_v14 }
  0xe4   :  { %v338_v25 = vor.u32 %v336_v2, %v335_v12  ;;  %v345_v26 = vor.u32 %v343_v4, %v342_v13  ;;  %v236_v27 = vcombine.low %v220_v15, %v221_v20  ;;  %v237_v28 = vcombine.high %v220_v15, %v221_v20 }
  0xe5   :  { %v347_v29 = vshrl.u32 %v8085_v21, 16  ;;  %v350_v30 = vshll.u32 %v8085_v21, 16  ;;  %v354_v31 = vshrl.u32 %v8086_v22, 16  ;;  %v357_v32 = vshll.u32 %v8086_v22, 16 }
  0xe6   :  { %v397_v33 = vsel %vm9177_vm7, %v338_v25, %v396_v8  ;;  %v400_v18 = vsel %vm9177_vm7, %v345_v26, %v399_v9  ;;  %v6975_v34 = vcombine.low %v221_v20, %v221_v20  ;;  %v6976_v35 = vcombine.high %v221_v20, %v221_v20 }
  0xe7   :  { %398 = vst [vmem:[#allocation3 + $0x18] sm:$0x77] %v397_v33  ;;  %401 = vst [vmem:[#allocation3 + $0x20] sm:$0x77] %v400_v18  ;;  %v349_v36 = vrot.slane %v347_v29, 7  ;;  %v356_v37 = vrot.slane %v354_v31, 7 }
  0xe8   :  { %v8087_v42 = vpack.c.bf16 %v6975_v34, %v236_v27  ;;  %v8088_v43 = vpack.c.bf16 %v6976_v35, %v237_v28  ;;  %v9216_v9 = vrot.slane %v772_v47, 2  ;;  %v8203_v18 = vld [vmem:[%s11555_s3 + $0x364] ss:$8 sps:$4 sm:$0xff]  }
  0xe9   :  { %v352_v44 = vor.u32 %v350_v30, %v349_v36  ;;  %v359_v45 = vor.u32 %v357_v32, %v356_v37  ;;  %v9197_v46 = vld.sshfl [vmem:[#allocation3 + $0x8] sm:$0xf pattern:$0x76325410]  ;;  %v8195_v30 = vld [vmem:[%s11555_s3 + $0x370] ss:$8 sps:$4 sm:$0xff]  }
  0xea   :  { %v361_v48 = vshrl.u32 %v8087_v42, 16  ;;  %v364_v49 = vshll.u32 %v8087_v42, 16  ;;  %v368_v50 = vshrl.u32 %v8088_v43, 16  ;;  %v371_v51 = vshll.u32 %v8088_v43, 16 }
  0xeb   :  { %v403_v38 = vsel %vm9177_vm7, %v352_v44, %v402_v19  ;;  %v406_v53 = vsel %vm9177_vm7, %v359_v45, %v405_v41  ;;  %v6994_v57 = vld.sshfl [vmem:[#allocation3 + $0x10] sm:$0xf pattern:$0x76325410]  ;;  %v1069_v12 = vcombine.low %v9199_v52, %v9197_v46 }
  0xec   :  { %404 = vst [vmem:[#allocation3 + $0x38] sm:$0x77] %v403_v38  ;;  %407 = vst [vmem:[#allocation3 + $0x40] sm:$0x77] %v406_v53  ;;  %v363_v59 = vrot.slane %v361_v48, 7  ;;  %v370_v60 = vrot.slane %v368_v50, 7  ;;  %v989_v63 = vcombine.low %v9197_v46, %v6994_v57 }
  0xed   :  { %v6985_v62 = vld.sshfl [vmem:[#allocation3 + $0x8] sm:$0x5f pattern:$0x76325410] }
  0xee   :  { %v6986_v0 = vld.sshfl [vmem:[#allocation3 + $0x10] sm:$0x5f pattern:$0x76325410]  ;;  %v437_v1 = vcombine.high %v6985_v62, %v6985_v62  ;;  %v502_v2 = vshrl.u32 %v6985_v62, 16  ;;  %v505_v3 = vshll.u32 %v6985_v62, 16  ;;  %v366_v4 = vor.u32 %v364_v49, %v363_v59 }
  0xef   :  { %v373_v5 = vor.u32 %v371_v51, %v370_v60  ;;  %v6995_v6 = vld.sshfl [vmem:[#allocation3 + $0x18] sm:$0xf pattern:$0x76325410]  ;;  %v445_v7 = vcombine.high %v6986_v0, %v6986_v0  ;;  %v997_v24 = vrot.slane %v989_v63, %v9207_v61  ;;  %v516_v28 = vshrl.u32 %v6986_v0, 16 }
  0xf0   :  { %v6996_v14 = vld.sshfl [vmem:[#allocation3 + $0x20] sm:$0xf pattern:$0x76325410]  ;;  %v504_v10 = vrot.slane %v502_v2, 6  ;;  %v507_v11 = vrot.slane %v505_v3, 7  ;;  %v1070_v13 = vcombine.low %v6994_v57, %v6995_v6  ;;  %v409_v15 = vsel %vm9177_vm7, %v366_v4, %v408_v54 }
  0xf1   :  { %v412_v20 = vsel %vm9177_vm7, %v373_v5, %v411_v56  ;;  %v990_v21 = vcombine.low %v6995_v6, %v6996_v14  ;;  %v6987_v22 = vld.sshfl [vmem:[#allocation3 + $0x18] sm:$0x5f pattern:$0x76325410]  ;;  %v511_v23 = vshll.u32 %v437_v1, 16  ;;  %v519_v29 = vshll.u32 %v6986_v0, 16 }
  0xf2   :  { %410 = vst [vmem:[#allocation3 + $0x48] sm:$0x77] %v409_v15  ;;  %413 = vst [vmem:[#allocation3 + $0x50] sm:$0x77] %v412_v20  ;;  %v508_v27 = vor.u32 %v507_v11, %v504_v10  ;;  %v453_v31 = vcombine.high %v6987_v22, %v6987_v22  ;;  %v525_v33 = vshll.u32 %v445_v7, 16  ;;  %v518_v36 = vrot.slane %v516_v28, 6 }
  0xf3   :  { %v6988_v25 = vld.sshfl [vmem:[#allocation3 + $0x20] sm:$0x5f pattern:$0x76325410]  ;;  %v1004_v55 = vrot.slane %v990_v21, %v9207_v61  ;;  %v513_v32 = vrot.slane %v511_v23, 7  ;;  %v9242_v37 = vrot.slane %v1070_v13, %v9207_v61  ;;  %v521_v44 = vrot.slane %v519_v29, 7 }
  0xf4   :  { %v9239_v19 = vld.sshfl [vmem:[#allocation3 + $0x38] sm:$0xf pattern:$0x76325410]  ;;  %v461_v34 = vcombine.high %v6988_v25, %v6988_v25  ;;  %v509_v35 = vrot.slane %v508_v27, 2  ;;  %v527_v45 = vrot.slane %v525_v33, 7  ;;  %v9256_v49 = vrot.slane %v1069_v12, %v9207_v61 }
  0xf5   :  { %v1005_v39 = vcombine.low %v997_v24, %v1004_v55  ;;  %v1006_v41 = vcombine.high %v997_v24, %v1004_v55  ;;  %v9244_v42 = vld.sshfl [vmem:[#allocation3 + $0x40] sm:$0xf pattern:$0x76325410]  ;;  %v530_v47 = vshrl.u32 %v6987_v22, 16  ;;  %v533_v48 = vshll.u32 %v6987_v22, 16 }
  0xf6   :  { %v1007_v46 = vcombine.low %v9239_v19, %v9244_v42  ;;  %v6989_v50 = vld.sshfl [vmem:[#allocation3 + $0x38] sm:$0x5f pattern:$0x76325410]  ;;  %v8201_v51 = vld [vmem:[%s11555_s3 + $0x360] ss:$8 sps:$4 sm:$0xff]   ;;  %v522_v52 = vor.u32 %v521_v44, %v518_v36  ;;  %v9266_v57 = vsel %vm9249_vm14, %v509_v35, %v513_v32  ;;  %v1086_v3 = vcombine.high %v9256_v49, %v9242_v37 }
  0xf7   :  { %1974 = vmatprep.mubr.bf16.mxu0 %v1006_v41  ;;  %v539_v38 = vshll.u32 %v453_v31, 16  ;;  %v544_v53 = vshrl.u32 %v6988_v25, 16  ;;  %v547_v54 = vshll.u32 %v6988_v25, 16  ;;  %v8209_v56 = vld [vmem:[%s11555_s3 + $0x354] ss:$8 sps:$4 sm:$0xff]   ;;  %v532_v59 = vrot.slane %v530_v47, 6 }
  0xf8   :  { %1975 = vmatmul.mubr.bf16.vlgmr.msra.gmra.mxu0 %v1005_v39  ;;  %v535_v60 = vrot.slane %v533_v48, 7  ;;  %v553_v62 = vshll.u32 %v461_v34, 16  ;;  %v1015_v0 = vrot.slane %v1007_v46, %v9207_v61  ;;  %v523_v1 = vrot.slane %v522_v52, 2  ;;  %v8207_v10 = vld [vmem:[%s11555_s3 + $0x350] ss:$8 sps:$4 sm:$0xff]  }
  0xf9   :  { %2049 = vmatpush1.bf16.msra.mxu0 %v8195_v30  ;;  %v9268_v63 = vld.sshfl [vmem:[#allocation3 + $0x48] sm:$0xf pattern:$0x76325410]  ;;  %v541_v2 = vrot.slane %v539_v38, 7  ;;  %v546_v6 = vrot.slane %v544_v53, 6  ;;  %v469_v8 = vcombine.high %v6989_v50, %v6989_v50 }
  0xfa   :  { %2050 = vmatprep.subr.bf16.mxu0 %v8203_v18  ;;  %v7000_v4 = vld.sshfl [vmem:[#allocation3 + $0x50] sm:$0xf pattern:$0x76325410]  ;;  %v536_v5 = vor.u32 %v535_v60, %v532_v59  ;;  %v549_v7 = vrot.slane %v547_v54, 7  ;;  %v9279_v11 = vsel %vm9249_vm14, %v523_v1, %v527_v45  ;;  %v555_v12 = vrot.slane %v553_v62, 7 }
  0xfb   :  { %v1008_v14 = vcombine.low %v9268_v63, %v7000_v4  ;;  %v6990_v13 = vld.sshfl [vmem:[#allocation3 + $0x40] sm:$0x5f pattern:$0x76325410]  ;;  %v558_v15 = vshrl.u32 %v6989_v50, 16  ;;  %v949_v22 = vcombine.low %v9266_v57, %v9279_v11  ;;  %v561_v29 = vshll.u32 %v6989_v50, 16 }
  0xfc   :  { %v537_v20 = vrot.slane %v536_v5, 2  ;;  %v550_v21 = vor.u32 %v549_v7, %v546_v6  ;;  %v6991_v23 = vld.sshfl [vmem:[#allocation3 + $0x48] sm:$0x5f pattern:$0x76325410]  ;;  %v477_v24 = vcombine.high %v6990_v13, %v6990_v13  ;;  %v567_v36 = vshll.u32 %v469_v8, 16 }
  0xfd   :  { %2051 = vmatpush1.bf16.msra.mxu0 %v8201_v51  ;;  %v1022_v25 = vrot.slane %v1008_v14, %v9207_v61  ;;  %v6992_v26 = vld.sshfl [vmem:[#allocation3 + $0x50] sm:$0x5f pattern:$0x76325410]  ;;  %v485_v27 = vcombine.high %v6991_v23, %v6991_v23  ;;  %v560_v28 = vrot.slane %v558_v15, 6  ;;  %v957_v31 = vrot.slane %v949_v22, %v9207_v61 }
  0xfe   :  { %2052 = vmatprep.subr.bf16.mxu0 %v8209_v56  ;;  %v9286_v55 = vsel %vm9249_vm14, %v537_v20, %v541_v2  ;;  %v551_v30 = vrot.slane %v550_v21, 2  ;;  %v8215_v32 = vld [vmem:[%s11555_s3 + $0x344] ss:$8 sps:$4 sm:$0xff]   ;;  %v493_v33 = vcombine.high %v6992_v26, %v6992_v26  ;;  %v563_v35 = vrot.slane %v561_v29, 7  ;;  %v8213_v47 = vld [vmem:[%s11555_s3 + $0x340] ss:$8 sps:$4 sm:$0xff]  }
  0xff   :  { %v1024_v18 = vcombine.high %v1015_v0, %v1022_v25  ;;  %v1023_v34 = vcombine.low %v1015_v0, %v1022_v25  ;;  %v572_v41 = vshrl.u32 %v6990_v13, 16  ;;  %v575_v44 = vshll.u32 %v6990_v13, 16  ;;  %v8221_v52 = vld [vmem:[%s11555_s3 + $0x334] ss:$8 sps:$4 sm:$0xff]   ;;  %v8210_v60 = vld [vmem:[%s11555_s3 + $0x270] ss:$8 sps:$4 sm:$0xff]  }
 0x100   :  { %v556_v39 = vsel %vm9249_vm14, %v551_v30, %v555_v12  ;;  %v581_v45 = vshll.u32 %v477_v24, 16  ;;  %v564_v48 = vor.u32 %v563_v35, %v560_v28  ;;  %v569_v50 = vrot.slane %v567_v36, 7  ;;  %v8218_v2 = vld [vmem:[%s11555_s3 + $0x264] ss:$8 sps:$4 sm:$0xff]   ;;  %v8219_v4 = vld [vmem:[%s11555_s3 + $0x330] ss:$8 sps:$4 sm:$0xff]  }
 0x101   :  { %1984 = vmatprep.mubr.bf16.mxu0 %v1024_v18  ;;  %v950_v46 = vcombine.low %v9286_v55, %v556_v39  ;;  %2053 = vmatpush1.bf16.msra.mxu0 %v8207_v10  ;;  %v586_v51 = vshrl.u32 %v6991_v23, 16  ;;  %v574_v38 = vrot.slane %v572_v41, 6  ;;  %v577_v53 = vrot.slane %v575_v44, 7  ;;  %v8227_v24 = vld [vmem:[%s11555_s3 + $0x324] ss:$8 sps:$4 sm:$0xff]  }
 0x102   :  { %1985 = vmatmul.mubr.bf16.gmra.mxu0 %v1023_v34  ;;  %2054 = vmatprep.subr.bf16.mxu0 %v8215_v32  ;;  %v583_v54 = vrot.slane %v581_v45, 7  ;;  %v589_v56 = vshll.u32 %v6991_v23, 16  ;;  %v565_v62 = vrot.slane %v564_v48, 2  ;;  %v595_v1 = vshll.u32 %v485_v27, 16  ;;  %v8216_v25 = vld [vmem:[%s11555_s3 + $0x260] ss:$8 sps:$4 sm:$0xff]  }
 0x103   :  { %v964_v59 = vrot.slane %v950_v46, %v9207_v61  ;;  %2080 = vmatprep.mubr.bf16.mxu0 %v1086_v3  ;;  %v588_v0 = vrot.slane %v586_v51, 6  ;;  %v578_v5 = vor.u32 %v577_v53, %v574_v38  ;;  %v600_v7 = vshrl.u32 %v6992_v26, 16  ;;  %v9325_v15 = vld.sshfl [vmem:[#allocation3] sm:$0x5a pattern:$0x76325410] }
 0x104   :  { %v591_v6 = vrot.slane %v589_v56, 7  ;;  %v603_v8 = vshll.u32 %v6992_v26, 16  ;;  %v9317_v3 = vsel %vm9249_vm14, %v565_v62, %v569_v50  ;;  %v597_v12 = vrot.slane %v595_v1, 7  ;;  %v8225_v36 = vld [vmem:[%s11555_s3 + $0x320] ss:$8 sps:$4 sm:$0xff]  }
 0x105   :  { %v9311_v14 = vcombine.high %v957_v31, %v964_v59  ;;  %v9313_v10 = vcombine.low %v957_v31, %v964_v59  ;;  %2055 = vmatpush1.bf16.msra.mxu0 %v8213_v47  ;;  %v579_v20 = vrot.slane %v578_v5, 2  ;;  %v602_v22 = vrot.slane %v600_v7, 6  ;;  %v9334_v27 = vld.sshfl [vmem:[#allocation3 + $0x8] sm:$0x5a pattern:$0x76325410] }
 0x106   :  { %2056 = vmatprep.subr.bf16.mxu0 %v8221_v52  ;;  %v592_v21 = vor.u32 %v591_v6, %v588_v0  ;;  %v605_v23 = vrot.slane %v603_v8, 7  ;;  %v609_v26 = vshll.u32 %v493_v33, 16  ;;  %v8224_v31 = vld [vmem:[%s11555_s3 + $0x254] ss:$8 sps:$4 sm:$0xff]   ;;  %v778_v35 = vsel %vm9249_vm14, %v9216_v9, %v777_v58  ;;  %v8222_v38 = vld [vmem:[%s11555_s3 + $0x250] ss:$8 sps:$4 sm:$0xff]  }
 0x107   :  { %1921 = vmatprep.mubr.bf16.mxu1 %v9311_v14  ;;  %v9339_v28 = vsel %vm9249_vm14, %v579_v20, %v583_v54  ;;  %v9351_v33 = vld.sshfl [vmem:[#allocation3 + $0x30] sm:$0x5a pattern:$0x76325410]  ;;  %v2267_v41 = vcombine.high %v9325_v15, %v9325_v15  ;;  %v1030_v58 = vcombine.low %v9279_v11, %v9286_v55  ;;  %v2148_v45 = vcombine.high %v9334_v27, %v9334_v27  ;;  %v8230_v59 = vld [vmem:[%s11555_s3 + $0x244] ss:$8 sps:$4 sm:$0xff]  }
 0x108   :  { %1922 = vmatmul.mubr.bf16.vlgmr.msra.gmra.mxu1 %v9313_v10  ;;  %v593_v29 = vrot.slane %v592_v21, 2  ;;  %v606_v30 = vor.u32 %v605_v23, %v602_v22  ;;  %v611_v18 = vrot.slane %v609_v26, 7  ;;  %v967_v34 = vcombine.low %v9317_v3, %v9339_v28  ;;  %v8233_v39 = vld [vmem:[%s11555_s3 + $0x314] ss:$8 sps:$4 sm:$0xff]  }
 0x109   :  { %1996 = vmatpush1.bf16.msra.mxu1 %v8210_v60  ;;  %2057 = vmatpush1.bf16.msra.mxu0 %v8219_v4  ;;  %v9374_v9 = vld.sshfl [vmem:[#allocation3 + $0x10] sm:$0x5a pattern:$0x76325410]  ;;  %v2299_v47 = vcombine.high %v9351_v33, %v9351_v33  ;;  %v1029_v50 = vcombine.low %v778_v35, %v9266_v57  ;;  %v7169_v55 = vrot.slane %v9325_v15, 9  ;;  %v2326_v54 = vrot.slane %v2267_v41, 7 }
 0x10a   :  { %1997 = vmatprep.subr.bf16.mxu1 %v8218_v2  ;;  %v9370_v44 = vsel %vm9249_vm14, %v593_v29, %v597_v12  ;;  %v607_v40 = vrot.slane %v606_v30, 2  ;;  %2058 = vmatprep.subr.bf16.mxu0 %v8227_v24  ;;  %v7147_v46 = vld.sshfl [vmem:[#allocation3 + $0x18] sm:$0x5a pattern:$0x76325410]  ;;  %v975_v52 = vrot.slane %v967_v34, %v9207_v61  ;;  %v2156_v53 = vcombine.high %v9374_v9, %v9374_v9 }
 0x10b   :  { %v8231_v57 = vld [vmem:[%s11555_s3 + $0x310] ss:$8 sps:$4 sm:$0xff]   ;;  %v9402_v56 = vrot.slane %v1030_v58, %v9207_v61  ;;  %v8239_v60 = vld [vmem:[%s11555_s3 + $0x304] ss:$8 sps:$4 sm:$0xff]   ;;  %v2164_v62 = vcombine.high %v7147_v46, %v7147_v46  ;;  %v2214_v0 = vrot.slane %v2148_v45, 7  ;;  %v7153_v4 = vrot.slane %v9334_v27, 9 }
 0x10c   :  { %v612_v48 = vsel %vm9249_vm14, %v607_v40, %v611_v18  ;;  %v8228_v2 = vld [vmem:[%s11555_s3 + $0x240] ss:$8 sps:$4 sm:$0xff]   ;;  %v7173_v5 = vrot.slane %v9351_v33, 9  ;;  %v2342_v6 = vrot.slane %v2299_v47, 7  ;;  %v9417_v7 = vrot.slane %v1029_v50, %v9207_v61  ;;  %v8236_v8 = vld [vmem:[%s11555_s3 + $0x234] ss:$8 sps:$4 sm:$0xff]  }
 0x10d   :  { %1998 = vmatpush1.bf16.msra.mxu1 %v8216_v25  ;;  %v968_v51 = vcombine.low %v9370_v44, %v612_v48  ;;  %2059 = vmatpush1.bf16.msra.mxu0 %v8225_v36  ;;  %v8237_v12 = vld [vmem:[%s11555_s3 + $0x300] ss:$8 sps:$4 sm:$0xff]   ;;  %v2222_v13 = vrot.slane %v2164_v62, 7  ;;  %v2218_v22 = vrot.slane %v2156_v53, 7  ;;  %v2327_v24 = vsel %vm9386_vm5, %v7169_v55, %v2326_v54  ;;  %v8234_v41 = vld [vmem:[%s11555_s3 + $0x230] ss:$8 sps:$4 sm:$0xff]  }
 0x10e   :  { %1999 = vmatprep.subr.bf16.mxu1 %v8224_v31  ;;  %2060 = vmatprep.subr.bf16.mxu0 %v8233_v39  ;;  %v7149_v15 = vld.sshfl [vmem:[#allocation3 + $0x38] sm:$0x5a pattern:$0x76325410]  ;;  %v9433_v25 = vcombine.high %v9417_v7, %v9402_v56  ;;  %v9437_v26 = vsel %vm9386_vm5, %v7153_v4, %v2214_v0  ;;  %v7155_v27 = vrot.slane %v7147_v46, 9  ;;  %v7154_v35 = vrot.slane %v9374_v9, 9 }
 0x10f   :  { %v982_v1 = vrot.slane %v968_v51, %v9207_v61  ;;  %v7150_v23 = vld.sshfl [vmem:[#allocation3 + $0x40] sm:$0x5a pattern:$0x76325410]  ;;  %v2180_v30 = vcombine.high %v7149_v15, %v7149_v15  ;;  %v8245_v31 = vld [vmem:[%s11555_s3 + $0x3f4] ss:$8 sps:$4 sm:$0xff]   ;;  %v2343_v46 = vsel %vm9386_vm5, %v7173_v5, %v2342_v6  ;;  %v2396_v55 = vcombine.low %v2327_v24, %v9437_v26 }
 0x110   :  { %v7151_v29 = vld.sshfl [vmem:[#allocation3 + $0x48] sm:$0x5a pattern:$0x76325410]  ;;  %v2188_v32 = vcombine.high %v7150_v23, %v7150_v23  ;;  %v7157_v18 = vrot.slane %v7149_v15, 9  ;;  %v7158_v34 = vrot.slane %v7150_v23, 9  ;;  %v9447_v36 = vsel %vm9386_vm5, %v7155_v27, %v2222_v13 }
 0x111   :  { %v9425_v20 = vcombine.high %v975_v52, %v982_v1  ;;  %v9427_v21 = vcombine.low %v975_v52, %v982_v1  ;;  %2000 = vmatpush1.bf16.msra.mxu1 %v8222_v38  ;;  %2061 = vmatpush1.bf16.msra.mxu0 %v8231_v57  ;;  %v2196_v33 = vcombine.high %v7151_v29, %v7151_v29  ;;  %v2230_v39 = vrot.slane %v2180_v30, 7  ;;  %v8242_v9 = vld [vmem:[%s11555_s3 + $0x224] ss:$8 sps:$4 sm:$0xff]   ;;  %v8243_v47 = vld [vmem:[%s11555_s3 + $0x3f0] ss:$8 sps:$4 sm:$0xff]  }
 0x112   :  { %2001 = vmatprep.subr.bf16.mxu1 %v8230_v59  ;;  %2062 = vmatprep.subr.bf16.mxu0 %v8239_v60  ;;  %v2234_v40 = vrot.slane %v2188_v32, 7  ;;  %v7159_v58 = vrot.slane %v7151_v29, 9  ;;  %v9463_v48 = vsel %vm9386_vm5, %v7154_v35, %v2218_v22  ;;  %v8251_v51 = vld [vmem:[%s11555_s3 + $0x3e4] ss:$8 sps:$4 sm:$0xff]   ;;  %v8240_v54 = vld [vmem:[%s11555_s3 + $0x220] ss:$8 sps:$4 sm:$0xff]   ;;  %v9488_v59 = vrot.slane %v2396_v55, %v9207_v61 }
 0x113   :  { %1931 = vmatprep.mubr.bf16.mxu1 %v9425_v20  ;;  %v2238_v45 = vrot.slane %v2196_v33, 7  ;;  %v9467_v50 = vsel %vm9386_vm5, %v7157_v18, %v2230_v39  ;;  %v2397_v57 = vcombine.low %v9463_v48, %v9447_v36  ;;  %v8248_v62 = vld [vmem:[%s11555_s3 + $0x214] ss:$8 sps:$4 sm:$0xff]   ;;  %v8249_v0 = vld [vmem:[%s11555_s3 + $0x3e0] ss:$8 sps:$4 sm:$0xff]  }
 0x114   :  { %1932 = vmatmul.mubr.bf16.gmra.mxu1 %v9427_v21  ;;  %v9475_v52 = vsel %vm9386_vm5, %v7158_v34, %v2234_v40  ;;  %v2414_v53 = vcombine.low %v2343_v46, %v9467_v50  ;;  %v8257_v1 = vld [vmem:[%s11555_s3 + $0x3d4] ss:$8 sps:$4 sm:$0xff]   ;;  %v8254_v15 = vld [vmem:[%s11555_s3 + $0x204] ss:$8 sps:$4 sm:$0xff]   ;;  %v8255_v22 = vld [vmem:[%s11555_s3 + $0x3d0] ss:$8 sps:$4 sm:$0xff]  }
 0x115   :  { %2027 = vmatprep.mubr.bf16.mxu1 %v9433_v25  ;;  %2002 = vmatpush1.bf16.msra.mxu1 %v8228_v2  ;;  %v9479_v38 = vsel %vm9386_vm5, %v7159_v58, %v2238_v45  ;;  %v9491_v60 = vrot.slane %v2397_v57, %v9207_v61  ;;  %v7005_v5 = vld.sshfl [vmem:[#allocation3 + $0x30] sm:$0x5f pattern:$0x76325410]  ;;  %v8263_v23 = vld [vmem:[%s11555_s3 + $0x3c4] ss:$8 sps:$4 sm:$0xff]  }
 0x116   :  { %2003 = vmatprep.subr.bf16.mxu1 %v8236_v8  ;;  %2063 = vmatpush1.bf16.msra.mxu0 %v8237_v12  ;;  %v2415_v2 = vcombine.low %v9475_v52, %v9479_v38  ;;  %v9505_v4 = vrot.slane %v2414_v53, %v9207_v61  ;;  %v8246_v12 = vld [vmem:[%s11555_s3 + $0x210] ss:$8 sps:$4 sm:$0xff]   ;;  %v822_v24 = vshrl.u32 %v7005_v5, 16  ;;  %v825_v27 = vshll.u32 %v7005_v5, 16  ;;  %v8252_v18 = vld [vmem:[%s11555_s3 + $0x200] ss:$8 sps:$4 sm:$0xff]  }
 0x117   :  { %2064 = vmatprep.subr.bf16.mxu0 %v8245_v31  ;;  %v9526_v29 = vld.sshfl [vmem:[#allocation3 + $0x18] sm:$0xf pattern:$0x76325410]  ;;  %v740_v34 = vcombine.high %v7005_v5, %v7005_v5  ;;  %v8261_v39 = vld [vmem:[%s11555_s3 + $0x3c0] ss:$8 sps:$4 sm:$0xff]  }
 0x118   :  { %v9515_v13 = vrot.slane %v2415_v2, %v9207_v61  ;;  %v7475_v32 = vld.sshfl [vmem:[#allocation3 + $0x20] sm:$0xf pattern:$0x76325410]  ;;  %v8260_v35 = vld [vmem:[%s11555_s3 + $0x2f4] ss:$8 sps:$4 sm:$0xff]  }
 0x119   :  { %2004 = vmatpush1.bf16.msra.mxu1 %v8234_v41  ;;  %v4339_v33 = vcombine.low %v9526_v29, %v7475_v32  ;;  %v824_v41 = vrot.slane %v822_v24, 6  ;;  %v827_v40 = vrot.slane %v825_v27, 7  ;;  %v8269_v58 = vld [vmem:[%s11555_s3 + $0x3b4] ss:$8 sps:$4 sm:$0xff]   ;;  %v831_v55 = vshll.u32 %v740_v34, 16 }
 0x11a   :  { %2005 = vmatprep.subr.bf16.mxu1 %v8242_v9  ;;  %2065 = vmatpush2.bf16.msra.mxu0 %v8243_v47  ;;  %v7466_v45 = vld.sshfl [vmem:[#allocation3 + $0x18] sm:$0x5f pattern:$0x76325410]  ;;  %v8266_v47 = vld [vmem:[%s11555_s3 + $0x2e4] ss:$8 sps:$4 sm:$0xff]  }
 0x11b   :  { %2066 = vmatprep.subr.bf16.mxu0 %v8251_v51  ;;  %v7467_v46 = vld.sshfl [vmem:[#allocation3 + $0x20] sm:$0x5f pattern:$0x76325410]  ;;  %v8258_v9 = vld [vmem:[%s11555_s3 + $0x2f0] ss:$8 sps:$4 sm:$0xff]   ;;  %v828_v53 = vor.u32 %v827_v40, %v824_v41 }
 0x11c   :  { %v8267_v51 = vld [vmem:[%s11555_s3 + $0x3b0] ss:$8 sps:$4 sm:$0xff]   ;;  %v8275_v57 = vld [vmem:[%s11555_s3 + $0x3a4] ss:$8 sps:$4 sm:$0xff]   ;;  %v3788_v2 = vshll.u32 %v7466_v45, 16  ;;  %v3799_v5 = vshrl.u32 %v7467_v46, 16 }
 0x11d   :  { %2006 = vmatpush1.bf16.msra.mxu1 %v8240_v54  ;;  %v3721_v54 = vcombine.high %v7466_v45, %v7466_v45  ;;  %v7013_v27 = vld.sshfl [vmem:[#allocation3 + $0x30] sm:$0xf pattern:$0x76325410]  ;;  %v833_v29 = vrot.slane %v831_v55, 7  ;;  %v829_v34 = vrot.slane %v828_v53, 2 }
 0x11e   :  { %2007 = vmatprep.subr.bf16.mxu1 %v8248_v62  ;;  %2067 = vmatpush2.bf16.msra.mxu0 %v8249_v0  ;;  %v3785_v62 = vshrl.u32 %v7466_v45, 16  ;;  %v8264_v0 = vld [vmem:[%s11555_s3 + $0x2e0] ss:$8 sps:$4 sm:$0xff]   ;;  %v3801_v41 = vrot.slane %v3799_v5, 6  ;;  %v8270_v40 = vld [vmem:[%s11555_s3 + $0x2d0] ss:$8 sps:$4 sm:$0xff]  }
 0x11f   :  { %2068 = vmatprep.subr.bf16.mxu0 %v8257_v1  ;;  %v3729_v1 = vcombine.high %v7467_v46, %v7467_v46  ;;  %v9566_v32 = vld.sshfl [vmem:[#allocation3 + $0x48] sm:$0xf pattern:$0x76325410]  ;;  %v8296_v6 = vld [vmem:[%s11555_s3 + $0x294] ss:$8 sps:$4 sm:$0xff]  }
 0x120   :  { %v3787_v24 = vrot.slane %v3785_v62, 6  ;;  %v9581_v53 = vld.sshfl [vmem:[#allocation3 + $0x10] sm:$0x5f pattern:$0x76325410] }
 0x121   :  { %2008 = vmatpush1.bf16.msra.mxu1 %v8246_v12  ;;  %v3802_v12 = vshll.u32 %v7467_v46, 16  ;;  %v3808_v45 = vshll.u32 %v3729_v1, 16  ;;  %v9574_v46 = vld.sshfl [vmem:[#allocation3 + $0x50] sm:$0xf pattern:$0x76325410] }
 0x122   :  { %2009 = vmatprep.subr.bf16.mxu1 %v8254_v15  ;;  %2069 = vmatpush2.bf16.msra.mxu0 %v8255_v22  ;;  %v8272_v15 = vld [vmem:[%s11555_s3 + $0x2d4] ss:$8 sps:$4 sm:$0xff]   ;;  %v8273_v22 = vld [vmem:[%s11555_s3 + $0x3a0] ss:$8 sps:$4 sm:$0xff]   ;;  %v8279_v1 = vld [vmem:[%s11555_s3 + $0x390] ss:$8 sps:$4 sm:$0xff]  }
 0x123   :  { %2070 = vmatprep.subr.bf16.mxu0 %v8263_v23  ;;  %v7473_v23 = vld.sshfl [vmem:[#allocation3 + $0x10] sm:$0xf pattern:$0x76325410] }
 0x125   :  { %2010 = vmatpush1.bf16.msra.mxu1 %v8252_v18  ;;  %v8281_v18 = vld [vmem:[%s11555_s3 + $0x394] ss:$8 sps:$4 sm:$0xff]  }
 0x126   :  { %2011 = vmatprep.subr.bf16.mxu1 %v8260_v35  ;;  %2071 = vmatpush2.bf16.msra.mxu0 %v8261_v39  ;;  %v3790_v35 = vrot.slane %v3788_v2, 7  ;;  %v3794_v39 = vshll.u32 %v3721_v54, 16  ;;  %v1087_v2 = vcombine.low %v7013_v27, %v9239_v19  ;;  %v3771_v27 = vshrl.u32 %v9581_v53, 16 }
 0x127   :  { %2072 = vmatprep.subr.bf16.mxu0 %v8269_v58  ;;  %v3804_v58 = vrot.slane %v3802_v12, 7 }
 0x128   :  { %v3796_v12 = vrot.slane %v3794_v39, 7 }
 0x129   :  { %2012 = vmatpush2.bf16.msra.mxu1 %v8258_v9  ;;  %v3791_v9 = vor.u32 %v3790_v35, %v3787_v24  ;;  %v3805_v54 = vor.u32 %v3804_v58, %v3801_v41  ;;  %v3810_v24 = vrot.slane %v3808_v45, 7  ;;  %v3774_v35 = vshll.u32 %v9581_v53, 16  ;;  %v8285_v58 = vld [vmem:[%s11555_s3 + $0x380] ss:$8 sps:$4 sm:$0xff]  }
 0x12a   :  { %2013 = vmatprep.subr.bf16.mxu1 %v8266_v47  ;;  %2073 = vmatpush2.bf16.msra.mxu0 %v8267_v51  ;;  %v7489_v47 = vld.sshfl [vmem:[#allocation3 + $0x8] sm:$0xf pattern:$0x76325410] }
 0x12b   :  { %2074 = vmatprep.subr.bf16.mxu0 %v8275_v57  ;;  %v8278_v51 = vld [vmem:[%s11555_s3 + $0x2c4] ss:$8 sps:$4 sm:$0xff]   ;;  %v4338_v62 = vcombine.low %v7489_v47, %v7473_v23  ;;  %v9584_v57 = vrot.slane %v4339_v33, %v9207_v61  ;;  %v3792_v5 = vrot.slane %v3791_v9, 2  ;;  %v8276_v23 = vld [vmem:[%s11555_s3 + $0x2c0] ss:$8 sps:$4 sm:$0xff]  }
 0x12c   :  { %v8287_v33 = vld [vmem:[%s11555_s3 + $0x384] ss:$8 sps:$4 sm:$0xff]  }
 0x12d   :  { %2014 = vmatpush2.bf16.msra.mxu1 %v8264_v0  ;;  %11594 = vst [vmem:[#allocation6_spill] sm:$0xff] %v9584_v57  ;;  %v1088_v0 = vcombine.low %v9244_v42, %v9268_v63  ;;  %v9601_v19 = vrot.slane %v4338_v62, %v9207_v61  ;;  %v8284_v42 = vld [vmem:[%s11555_s3 + $0x2b4] ss:$8 sps:$4 sm:$0xff]   ;;  %v9608_v63 = vsel %vm9249_vm14, %v829_v34, %v833_v29 }
 0x12e   :  { %2015 = vmatprep.subr.bf16.mxu1 %v8272_v15  ;;  %2075 = vmatpush2.bf16.msra.mxu0 %v8273_v22  ;;  %v9598_v15 = vld.sshfl [vmem:[#allocation3 + $0x20] sm:$0x5a pattern:$0x76325410]  ;;  %v3806_v22 = vrot.slane %v3805_v54, 2  ;;  %v1085_v54 = vcombine.low %v9256_v49, %v9242_v37 }
 0x12f   :  { %2076 = vmatprep.subr.bf16.mxu0 %v8281_v18  ;;  %v9613_v18 = vsel %vm9249_vm14, %v3792_v5, %v3796_v12  ;;  %v7470_v34 = vld.sshfl [vmem:[#allocation3 + $0x48] sm:$0x5f pattern:$0x76325410]  ;;  %v9631_v45 = vrot.slane %v1088_v0, %v9207_v61  ;;  %v8293_v62 = vld [vmem:[%s11555_s3 + $0x574] ss:$8 sps:$4 sm:$0xff]   ;;  %v2172_v8 = vcombine.high %v9598_v15, %v9598_v15 }
 0x130   :  { %v9618_v39 = vsel %vm9249_vm14, %v3806_v22, %v3810_v24  ;;  %v9633_v9 = vld.sshfl [vmem:[#allocation3 + $0x40] sm:$0x5f pattern:$0x76325410]  ;;  %v3753_v0 = vcombine.high %v7470_v34, %v7470_v34  ;;  %v3841_v12 = vshrl.u32 %v7470_v34, 16  ;;  %v3844_v22 = vshll.u32 %v7470_v34, 16 }
 0x131   :  { %2016 = vmatpush2.bf16.msra.mxu1 %v8270_v40  ;;  %v9628_v40 = vrot.slane %v1087_v2, %v9207_v61  ;;  %v7471_v2 = vld.sshfl [vmem:[#allocation3 + $0x50] sm:$0x5f pattern:$0x76325410]  ;;  %v8290_v5 = vld [vmem:[%s11555_s3 + $0x2a4] ss:$8 sps:$4 sm:$0xff]   ;;  %v3713_v24 = vcombine.high %v9581_v53, %v9581_v53 }
 0x132   :  { %2017 = vmatprep.subr.bf16.mxu1 %v8278_v51  ;;  %2077 = vmatpush2.bf16.msra.mxu0 %v8279_v1  ;;  %v8282_v51 = vld [vmem:[%s11555_s3 + $0x2b0] ss:$8 sps:$4 sm:$0xff]   ;;  %v1047_v1 = vcombine.low %v9608_v63, %v9317_v3  ;;  %v3761_v49 = vcombine.high %v7471_v2, %v7471_v2  ;;  %v3773_v3 = vrot.slane %v3771_v27, 6  ;;  %v3776_v63 = vrot.slane %v3774_v35, 7  ;;  %v8288_v27 = vld [vmem:[%s11555_s3 + $0x2a0] ss:$8 sps:$4 sm:$0xff]  }
 0x133   :  { %2078 = vmatprep.subr.bf16.mxu0 %v8287_v33  ;;  %v8291_v33 = vld [vmem:[%s11555_s3 + $0x570] ss:$8 sps:$4 sm:$0xff]   ;;  %v3827_v41 = vshrl.u32 %v9633_v9, 16  ;;  %v1104_v29 = vcombine.high %v9628_v40, %v9631_v45  ;;  %v3843_v35 = vrot.slane %v3841_v12, 6  ;;  %v3850_v30 = vshll.u32 %v3753_v0, 16 }
 0x134   :  { %v7481_v53 = vld.sshfl [vmem:[#allocation3 + $0x8] sm:$0x5f pattern:$0x76325410]  ;;  %v3855_v47 = vshrl.u32 %v7471_v2, 16  ;;  %v3858_v37 = vshll.u32 %v7471_v2, 16  ;;  %v3777_v34 = vor.u32 %v3776_v63, %v3773_v3  ;;  %v3745_v2 = vcombine.high %v9633_v9, %v9633_v9 }
 0x135   :  { %2018 = vmatpush2.bf16.msra.mxu1 %v8276_v23  ;;  %v8299_v23 = vld [vmem:[%s11555_s3 + $0x564] ss:$8 sps:$4 sm:$0xff]   ;;  %v3864_v31 = vshll.u32 %v3761_v49, 16  ;;  %v3780_v12 = vshll.u32 %v3713_v24, 16  ;;  %v3977_v55 = vcombine.high %v7481_v53, %v7481_v53  ;;  %v3852_v57 = vrot.slane %v3850_v30, 7 }
 0x136   :  { %2019 = vmatprep.subr.bf16.mxu1 %v8284_v42  ;;  %2079 = vmatpush2.bf16.msra.mxu0 %v8285_v58  ;;  %v3830_v42 = vshll.u32 %v9633_v9, 16  ;;  %v3846_v58 = vrot.slane %v3844_v22, 7  ;;  %v7477_v22 = vld.sshfl [vmem:[#allocation3 + $0x40] sm:$0xf pattern:$0x76325410]  ;;  %v9684_v63 = vrot.slane %v1047_v1, %v9207_v61  ;;  %v11595_v1 = vcombine.low %v9566_v32, %v9574_v46 }
 0x137   :  { %3258 = vmatprep.subr.bf16.mxu0 %v8293_v62  ;;  %v8297_v62 = vld [vmem:[%s11555_s3 + $0x560] ss:$8 sps:$4 sm:$0xff]   ;;  %v3860_v49 = vrot.slane %v3858_v37, 7  ;;  %v4035_v3 = vshrl.u32 %v7481_v53, 16  ;;  %v4038_v24 = vshll.u32 %v7481_v53, 16  ;;  %v3778_v30 = vrot.slane %v3777_v34, 2 }
 0x138   :  { %v3847_v0 = vor.u32 %v3846_v58, %v3843_v35  ;;  %v3832_v17 = vrot.slane %v3830_v42, 7  ;;  %v3866_v35 = vrot.slane %v3864_v31, 7  ;;  %v7493_v58 = vld.sshfl [vmem:[#allocation3 + $0x38] sm:$0xf pattern:$0x76325410] }
 0x139   :  { %2020 = vmatpush2.bf16.msra.mxu1 %v8282_v51  ;;  %2081 = vmatmul.mubr.bf16.vlgmr.msra.gmra.mxu0 %v1085_v54  ;;  %v3829_v51 = vrot.slane %v3827_v41, 6  ;;  %v3857_v54 = vrot.slane %v3855_v47, 6  ;;  %v8294_v41 = vld [vmem:[%s11555_s3 + $0x290] ss:$8 sps:$4 sm:$0xff]   ;;  %v8302_v9 = vld [vmem:[%s11555_s3 + $0x284] ss:$8 sps:$4 sm:$0xff]   ;;  %v4356_v37 = vcombine.low %v7493_v58, %v7477_v22 }
 0x13a   :  { %2021 = vmatprep.subr.bf16.mxu1 %v8290_v5  ;;  %2090 = vmatprep.mubr.bf16.mxu0 %v1104_v29  ;;  %v3848_v29 = vrot.slane %v3847_v0, 2  ;;  %v4044_v47 = vshll.u32 %v3977_v55, 16  ;;  %v8303_v31 = vld [vmem:[%s11555_s3 + $0x550] ss:$8 sps:$4 sm:$0xff]   ;;  %v4040_v42 = vrot.slane %v4038_v24, 7  ;;  %v3782_v0 = vrot.slane %v3780_v12, 7 }
 0x13b   :  { %3259 = vmatpush1.bf16.msra.mxu0 %v8291_v33  ;;  %v3861_v5 = vor.u32 %v3860_v49, %v3857_v54  ;;  %v9696_v33 = vrot.slane %v11595_v1, %v9207_v61  ;;  %v3833_v34 = vor.u32 %v3832_v17, %v3829_v51  ;;  %v3836_v55 = vshll.u32 %v3745_v2, 16  ;;  %v7485_v54 = vld.sshfl [vmem:[#allocation3 + $0x38] sm:$0x5f pattern:$0x76325410] }
 0x13c   :  { %3260 = vmatprep.subr.bf16.mxu0 %v8299_v23  ;;  %v2226_v23 = vrot.slane %v2172_v8, 7  ;;  %v9702_v22 = vrot.slane %v4356_v37, %v9207_v61  ;;  %v9709_v32 = vsel %vm9249_vm14, %v3848_v29, %v3852_v57  ;;  %v4009_v17 = vcombine.high %v7485_v54, %v7485_v54  ;;  %v8308_v57 = vld [vmem:[%s11555_s3 + $0x474] ss:$8 sps:$4 sm:$0xff]  }
 0x13d   :  { %2022 = vmatpush2.bf16.msra.mxu1 %v8288_v27  ;;  %v3862_v53 = vrot.slane %v3861_v5, 2  ;;  %v4037_v27 = vrot.slane %v4035_v3, 6  ;;  %v9726_v12 = vsel %vm9249_vm14, %v3778_v30, %v3782_v0  ;;  %v4046_v2 = vrot.slane %v4044_v47, 7  ;;  %v8317_v47 = vld [vmem:[%s11555_s3 + $0x534] ss:$8 sps:$4 sm:$0xff]  }
 0x13e   :  { %2023 = vmatprep.subr.bf16.mxu1 %v8296_v6  ;;  %v8311_v6 = vld [vmem:[%s11555_s3 + $0x544] ss:$8 sps:$4 sm:$0xff]   ;;  %v4373_v51 = vcombine.high %v9702_v22, %v9696_v33  ;;  %v4372_v49 = vcombine.low %v9702_v22, %v9696_v33  ;;  %v4091_v3 = vshrl.u32 %v7485_v54, 16  ;;  %v4094_v24 = vshll.u32 %v7485_v54, 16 }
 0x13f   :  { %3261 = vmatpush1.bf16.msra.mxu0 %v8297_v62  ;;  %v9713_v8 = vsel %vm9249_vm14, %v3862_v53, %v3866_v35  ;;  %v4041_v46 = vor.u32 %v4040_v42, %v4037_v27  ;;  %v8300_v62 = vld [vmem:[%s11555_s3 + $0x280] ss:$8 sps:$4 sm:$0xff]   ;;  %v4100_v29 = vshll.u32 %v4009_v17, 16  ;;  %v11597_v5 = vcombine.low %v9339_v28, %v9370_v44 }
 0x140   :  { %3262 = vmatprep.subr.bf16.mxu0 %v8305_v16  ;;  %v11596_v16 = vcombine.low %v9628_v40, %v9631_v45  ;;  %v8309_v40 = vld [vmem:[%s11555_s3 + $0x540] ss:$8 sps:$4 sm:$0xff]   ;;  %v11598_v58 = vrot.slane %v9598_v15, 9  ;;  %v3834_v37 = vrot.slane %v3833_v34, 2  ;;  %v4093_v44 = vrot.slane %v4091_v3, 6 }
 0x141   :  { %2024 = vmatpush2.bf16.msra.mxu1 %v8294_v41  ;;  %v4042_v45 = vrot.slane %v4041_v46, 2  ;;  %v9740_v35 = vrot.slane %v11597_v5, %v9207_v61  ;;  %v3838_v41 = vrot.slane %v3836_v55, 7  ;;  %v7754_v30 = vld.sshfl [vmem:[#allocation3 + $0x18] sm:$0x5a pattern:$0x76325410]  ;;  %v9755_v15 = vcombine.low %v9417_v7, %v9402_v56 }
 0x142   :  { %2091 = vmatmul.mubr.bf16.gmra.mxu0 %v11596_v16  ;;  %2025 = vmatprep.subr.bf16.mxu1 %v8302_v9  ;;  %v4317_v9 = vcombine.low %v9709_v32, %v9713_v8  ;;  %v4096_v1 = vrot.slane %v4094_v24, 7  ;;  %v11599_v27 = vcombine.low %v9613_v18, %v9618_v39  ;;  %v4102_v0 = vrot.slane %v4100_v29, 7  ;;  %v7755_v34 = vld.sshfl [vmem:[#allocation3 + $0x20] sm:$0x5a pattern:$0x76325410] }
 0x143   :  { %3290 = vmatprep.mubr.bf16.mxu0 %v9311_v14  ;;  %3263 = vmatpush1.bf16.msra.mxu0 %v8303_v31  ;;  %v2227_v14 = vsel %vm9386_vm5, %v11598_v58, %v2226_v23  ;;  %v4047_v28 = vsel %vm9249_vm14, %v4042_v45, %v4046_v2  ;;  %v8306_v31 = vld [vmem:[%s11555_s3 + $0x470] ss:$8 sps:$4 sm:$0xff]   ;;  %v8314_v23 = vld [vmem:[%s11555_s3 + $0x464] ss:$8 sps:$4 sm:$0xff]   ;;  %v5426_v55 = vcombine.high %v7754_v30, %v7754_v30  ;;  %v7763_v24 = vrot.slane %v7755_v34, 9 }
 0x144   :  { %3264 = vmatprep.subr.bf16.mxu0 %v8311_v6  ;;  %v4298_v53 = vcombine.low %v4047_v28, %v9726_v12  ;;  %v4313_v42 = vrot.slane %v11599_v27, %v9207_v61  ;;  %v2357_v56 = vcombine.low %v9447_v36, %v2227_v14  ;;  %v4097_v7 = vor.u32 %v4096_v1, %v4093_v44  ;;  %v8315_v6 = vld [vmem:[%s11555_s3 + $0x530] ss:$8 sps:$4 sm:$0xff]   ;;  %v8323_v16 = vld [vmem:[%s11555_s3 + $0x524] ss:$8 sps:$4 sm:$0xff]   ;;  %v8320_v5 = vld [vmem:[%s11555_s3 + $0x454] ss:$8 sps:$4 sm:$0xff]  }
 0x145   :  { %2026 = vmatpush2.bf16.msra.mxu1 %v8300_v62  ;;  %v9771_v54 = vcombine.high %v9684_v63, %v9740_v35  ;;  %v2356_v46 = vcombine.low %v9437_v26, %v9463_v48  ;;  %v9779_v62 = vld.sshfl [vmem:[#allocation3 + $0x10] sm:$0x5a pattern:$0x76325410]  ;;  %v5434_v36 = vcombine.high %v7755_v34, %v7755_v34  ;;  %v5481_v45 = vrot.slane %v5426_v55, 7 }
 0x146   :  { %3205 = vmatprep.subr.bf16.mxu1 %v8308_v57  ;;  %v4306_v17 = vrot.slane %v4298_v53, %v9207_v61  ;;  %v9787_v57 = vsel %vm9249_vm14, %v3834_v37, %v3838_v41  ;;  %v4098_v2 = vrot.slane %v4097_v7, 2  ;;  %v8312_v26 = vld [vmem:[%s11555_s3 + $0x460] ss:$8 sps:$4 sm:$0xff]   ;;  %v9801_v58 = vrot.slane %v2357_v56, %v9207_v61  ;;  %v8329_v27 = vld [vmem:[%s11555_s3 + $0x514] ss:$8 sps:$4 sm:$0xff]  }
 0x147   :  { %3265 = vmatpush1.bf16.msra.mxu0 %v8309_v40  ;;  %v7762_v40 = vrot.slane %v7754_v30, 9  ;;  %v5485_v29 = vrot.slane %v5434_v36, 7  ;;  %v5418_v41 = vcombine.high %v9779_v62, %v9779_v62  ;;  %v8321_v37 = vld [vmem:[%s11555_s3 + $0x520] ss:$8 sps:$4 sm:$0xff]   ;;  %v4331_v44 = vrot.slane %v4317_v9, %v9207_v61  ;;  %v8318_v7 = vld [vmem:[%s11555_s3 + $0x450] ss:$8 sps:$4 sm:$0xff]  }
 0x148   :  { %2028 = vmatmul.mubr.bf16.vlgmr.msra.gmra.mxu1 %v9755_v15  ;;  %3266 = vmatprep.subr.bf16.mxu0 %v8317_v47  ;;  %v9793_v48 = vcombine.low %v4306_v17, %v4313_v42  ;;  %v9795_v3 = vcombine.high %v4306_v17, %v4313_v42  ;;  %v4103_v14 = vsel %vm9249_vm14, %v4098_v2, %v4102_v0  ;;  %v7758_v47 = vld.sshfl [vmem:[#allocation3 + $0x48] sm:$0x5a pattern:$0x76325410] }
 0x149   :  { %2037 = vmatprep.mubr.bf16.mxu1 %v9771_v54  ;;  %3206 = vmatpush1.bf16.msra.mxu1 %v8306_v31  ;;  %v9809_v30 = vsel %vm9386_vm5, %v7762_v40, %v5481_v45  ;;  %v4316_v28 = vcombine.low %v4103_v14, %v9787_v57  ;;  %v9818_v1 = vsel %vm9386_vm5, %v7763_v24, %v5485_v29  ;;  %v7757_v31 = vld.sshfl [vmem:[#allocation3 + $0x40] sm:$0x5a pattern:$0x76325410]  ;;  %v7766_v17 = vrot.slane %v7758_v47, 9 }
 0x14a   :  { %11600 = vst [vmem:[#allocation7_spill] sm:$0xff] %v9793_v48  ;;  %3207 = vmatprep.subr.bf16.mxu1 %v8314_v23  ;;  %v5458_v23 = vcombine.high %v7758_v47, %v7758_v47  ;;  %v9821_v53 = vrot.slane %v2356_v46, %v9207_v61  ;;  %v7759_v42 = vld.sshfl [vmem:[#allocation3 + $0x50] sm:$0x5a pattern:$0x76325410]  ;;  %v5660_v56 = vcombine.low %v9809_v30, %v9818_v1  ;;  %v5477_v40 = vrot.slane %v5418_v41, 7 }
 0x14b   :  { %3267 = vmatpush1.bf16.msra.mxu0 %v8315_v6  ;;  %v9830_v9 = vcombine.low %v9684_v63, %v9740_v35  ;;  %v8326_v0 = vld [vmem:[%s11555_s3 + $0x444] ss:$8 sps:$4 sm:$0xff]   ;;  %v4324_v34 = vrot.slane %v4316_v28, %v9207_v61  ;;  %v5466_v55 = vcombine.high %v7759_v42, %v7759_v42  ;;  %v5450_v46 = vcombine.high %v7757_v31, %v7757_v31  ;;  %v8327_v35 = vld [vmem:[%s11555_s3 + $0x510] ss:$8 sps:$4 sm:$0xff]   ;;  %v8332_v47 = vld [vmem:[%s11555_s3 + $0x434] ss:$8 sps:$4 sm:$0xff]  }
 0x14c   :  { %3268 = vmatprep.subr.bf16.mxu0 %v8323_v16  ;;  %v2373_v6 = vcombine.high %v9821_v53, %v9801_v58  ;;  %v5497_v36 = vrot.slane %v5458_v23, 7  ;;  %v7769_v63 = vld.sshfl [vmem:[#allocation3 + $0x8] sm:$0x5a pattern:$0x76325410]  ;;  %v7767_v45 = vrot.slane %v7759_v42, 9 }
 0x14d   :  { %3208 = vmatpush1.bf16.msra.mxu1 %v8312_v26  ;;  %v9844_v16 = vcombine.high %v4324_v34, %v4331_v44  ;;  %v9846_v2 = vcombine.low %v4324_v34, %v4331_v44  ;;  %v8335_v26 = vld [vmem:[%s11555_s3 + $0x504] ss:$8 sps:$4 sm:$0xff]   ;;  %v5501_v29 = vrot.slane %v5466_v55, 7  ;;  %v7761_v14 = vrot.slane %v9779_v62, 9 }
 0x14e   :  { %3209 = vmatprep.subr.bf16.mxu1 %v8320_v5  ;;  %v9854_v24 = vsel %vm9386_vm5, %v7766_v17, %v5497_v36  ;;  %v8324_v5 = vld [vmem:[%s11555_s3 + $0x440] ss:$8 sps:$4 sm:$0xff]   ;;  %v5530_v41 = vcombine.high %v7769_v63, %v7769_v63  ;;  %v7765_v28 = vrot.slane %v7757_v31, 9  ;;  %v5493_v44 = vrot.slane %v5450_v46, 7  ;;  %v8341_v31 = vld [vmem:[%s11555_s3 + $0x5f4] ss:$8 sps:$4 sm:$0xff]  }
 0x14f   :  { %3269 = vmatpush1.bf16.msra.mxu0 %v8321_v37  ;;  %11601 = vst [vmem:[#allocation8_spill] sm:$0xff] %v9844_v16  ;;  %11602 = vst [vmem:[#allocation9_spill] sm:$0xff] %v9846_v2  ;;  %v8333_v37 = vld [vmem:[%s11555_s3 + $0x500] ss:$8 sps:$4 sm:$0xff]   ;;  %v9868_v23 = vsel %vm9386_vm5, %v7767_v45, %v5501_v29  ;;  %v9872_v62 = vsel %vm9386_vm5, %v7761_v14, %v5477_v40  ;;  %v8338_v17 = vld [vmem:[%s11555_s3 + $0x424] ss:$8 sps:$4 sm:$0xff]  }
 0x150   :  { %2038 = vmatmul.mubr.bf16.gmra.mxu1 %v9830_v9  ;;  %3270 = vmatprep.subr.bf16.mxu0 %v8329_v27  ;;  %v7777_v27 = vrot.slane %v7769_v63, 9  ;;  %v5589_v42 = vrot.slane %v5530_v41, 7  ;;  %v9889_v36 = vsel %vm9386_vm5, %v7765_v28, %v5493_v44  ;;  %v8339_v45 = vld [vmem:[%s11555_s3 + $0x5f0] ss:$8 sps:$4 sm:$0xff]   ;;  %v8345_v44 = vld [vmem:[%s11555_s3 + $0x5e0] ss:$8 sps:$4 sm:$0xff]  }
 0x151   :  { %3210 = vmatpush1.bf16.msra.mxu1 %v8318_v7  ;;  %3237 = vmatprep.mubr.bf16.mxu1 %v2373_v6  ;;  %v7773_v7 = vld.sshfl [vmem:[#allocation3 + $0x38] sm:$0x5a pattern:$0x76325410] }
 0x152   :  { %3211 = vmatprep.subr.bf16.mxu1 %v8326_v0  ;;  %v5678_v0 = vcombine.low %v9854_v24, %v9868_v23  ;;  %v5562_v34 = vcombine.high %v7773_v7, %v7773_v7  ;;  %v7781_v55 = vrot.slane %v7773_v7, 9  ;;  %v8330_v6 = vld [vmem:[%s11555_s3 + $0x430] ss:$8 sps:$4 sm:$0xff]   ;;  %v5590_v46 = vsel %vm9386_vm5, %v7777_v27, %v5589_v42  ;;  %v8353_v42 = vld [vmem:[%s11555_s3 + $0x5d4] ss:$8 sps:$4 sm:$0xff]  }
 0x153   :  { %3271 = vmatpush1.bf16.msra.mxu0 %v8327_v35  ;;  %v5659_v63 = vcombine.low %v5590_v46, %v9872_v62  ;;  %v9893_v35 = vrot.slane %v5660_v56, %v9207_v61  ;;  %v8336_v56 = vld [vmem:[%s11555_s3 + $0x420] ss:$8 sps:$4 sm:$0xff]   ;;  %v8342_v7 = vld [vmem:[%s11555_s3 + $0x410] ss:$8 sps:$4 sm:$0xff]  }
 0x154   :  { %3272 = vmatprep.subr.bf16.mxu0 %v8335_v26  ;;  %v5605_v40 = vrot.slane %v5562_v34, 7  ;;  %v8347_v26 = vld [vmem:[%s11555_s3 + $0x5e4] ss:$8 sps:$4 sm:$0xff]   ;;  %v9911_v41 = vrot.slane %v5678_v0, %v9207_v61  ;;  %v8348_v46 = vld [vmem:[%s11555_s3 + $0x400] ss:$8 sps:$4 sm:$0xff]  }
 0x155   :  { %3212 = vmatpush1.bf16.msra.mxu1 %v8324_v5  ;;  %11603 = vst [vmem:[#allocation10_spill] sm:$0xff] %v9893_v35  ;;  %v9902_v29 = vrot.slane %v5659_v63, %v9207_v61  ;;  %v8350_v34 = vld [vmem:[%s11555_s3 + $0x404] ss:$8 sps:$4 sm:$0xff]   ;;  %v8357_v63 = vld [vmem:[%s11555_s3 + $0x5c0] ss:$8 sps:$4 sm:$0xff]  }
 0x156   :  { %3213 = vmatprep.subr.bf16.mxu1 %v8332_v47  ;;  %v5606_v5 = vsel %vm9386_vm5, %v7781_v55, %v5605_v40  ;;  %11605 = vst [vmem:[#allocation12_spill] sm:$0xff] %v9911_v41  ;;  %v8344_v47 = vld [vmem:[%s11555_s3 + $0x414] ss:$8 sps:$4 sm:$0xff]   ;;  %v8351_v55 = vld [vmem:[%s11555_s3 + $0x5d0] ss:$8 sps:$4 sm:$0xff]   ;;  %v11616_v41 = vld [vmem:[#allocation5_spill] sm:$0xff] }
 0x157   :  { %3273 = vmatpush1.bf16.msra.mxu0 %v8333_v37  ;;  %11604 = vst [vmem:[#allocation11_spill] sm:$0xff] %v9902_v29  ;;  %v5677_v14 = vcombine.low %v5606_v5, %v9889_v36  ;;  %v8365_v40 = vld [vmem:[%s11555_s3 + $0x5b4] ss:$8 sps:$4 sm:$0xff]   ;;  %v8363_v5 = vld [vmem:[%s11555_s3 + $0x5b0] ss:$8 sps:$4 sm:$0xff]  }
 0x158   :  { %3274 = vmatprep.subr.bf16.mxu0 %v8341_v31  ;;  %v8750_v37 = vld [vmem:[%s11555_s3 + $0xcd0] ss:$8 sps:$4 sm:$0xff]  }
 0x159   :  { %3214 = vmatpush1.bf16.msra.mxu1 %v8330_v6  ;;  %v9924_v27 = vrot.slane %v5677_v14, %v9207_v61  ;;  %v8359_v6 = vld [vmem:[%s11555_s3 + $0x5c4] ss:$8 sps:$4 sm:$0xff]   ;;  %v8360_v14 = vld [vmem:[%s11555_s3 + $0x4e0] ss:$8 sps:$4 sm:$0xff]  }
 0x15a   :  { %3215 = vmatprep.subr.bf16.mxu1 %v8338_v17  ;;  %v8356_v17 = vld [vmem:[%s11555_s3 + $0x4f4] ss:$8 sps:$4 sm:$0xff]  }
 0x15b   :  { %3275 = vmatpush2.bf16.msra.mxu0 %v8339_v45  ;;  %11606 = vst [vmem:[#allocation13_spill] sm:$0xff] %v9924_v27  ;;  %v8354_v45 = vld [vmem:[%s11555_s3 + $0x4f0] ss:$8 sps:$4 sm:$0xff]  }
 0x15c   :  { %3276 = vmatprep.subr.bf16.mxu0 %v8347_v26  ;;  %v8362_v26 = vld [vmem:[%s11555_s3 + $0x4e4] ss:$8 sps:$4 sm:$0xff]  }
 0x15d   :  { %3216 = vmatpush1.bf16.msra.mxu1 %v8336_v56  ;;  %v8371_v56 = vld [vmem:[%s11555_s3 + $0x5a4] ss:$8 sps:$4 sm:$0xff]  }
 0x15e   :  { %3217 = vmatprep.subr.bf16.mxu1 %v8344_v47  ;;  %v8368_v47 = vld [vmem:[%s11555_s3 + $0x4d4] ss:$8 sps:$4 sm:$0xff]  }
 0x15f   :  { %3277 = vmatpush2.bf16.msra.mxu0 %v8345_v44  ;;  %v8369_v44 = vld [vmem:[%s11555_s3 + $0x5a0] ss:$8 sps:$4 sm:$0xff]  }
 0x160   :  { %3278 = vmatprep.subr.bf16.mxu0 %v8353_v42  ;;  %v8377_v42 = vld [vmem:[%s11555_s3 + $0x594] ss:$8 sps:$4 sm:$0xff]  }
 0x161   :  { %3218 = vmatpush1.bf16.msra.mxu1 %v8342_v7  ;;  %v8366_v7 = vld [vmem:[%s11555_s3 + $0x4d0] ss:$8 sps:$4 sm:$0xff]  }
 0x162   :  { %3219 = vmatprep.subr.bf16.mxu1 %v8350_v34  ;;  %v8374_v34 = vld [vmem:[%s11555_s3 + $0x4c4] ss:$8 sps:$4 sm:$0xff]  }
 0x163   :  { %3279 = vmatpush2.bf16.msra.mxu0 %v8351_v55  ;;  %v8375_v55 = vld [vmem:[%s11555_s3 + $0x590] ss:$8 sps:$4 sm:$0xff]  }
 0x164   :  { %3280 = vmatprep.subr.bf16.mxu0 %v8359_v6  ;;  %v8383_v6 = vld [vmem:[%s11555_s3 + $0x584] ss:$8 sps:$4 sm:$0xff]  }
 0x165   :  { %3220 = vmatpush1.bf16.msra.mxu1 %v8348_v46  ;;  %v8372_v46 = vld [vmem:[%s11555_s3 + $0x4c0] ss:$8 sps:$4 sm:$0xff]  }
 0x166   :  { %3221 = vmatprep.subr.bf16.mxu1 %v8356_v17  ;;  %v7152_v17 = vld.sshfl [vmem:[#allocation3 + $0x50] sm:$0x5a pattern:$0x76325410] }
 0x167   :  { %3281 = vmatpush2.bf16.msra.mxu0 %v8357_v63  ;;  %v8380_v63 = vld [vmem:[%s11555_s3 + $0x4b4] ss:$8 sps:$4 sm:$0xff]  }
 0x168   :  { %3282 = vmatprep.subr.bf16.mxu0 %v8365_v40  ;;  %v8381_v40 = vld [vmem:[%s11555_s3 + $0x580] ss:$8 sps:$4 sm:$0xff]  }
 0x169   :  { %3222 = vmatpush2.bf16.msra.mxu1 %v8354_v45  ;;  %v8389_v45 = vld [vmem:[%s11555_s3 + $0x774] ss:$8 sps:$4 sm:$0xff]  }
 0x16a   :  { %3223 = vmatprep.subr.bf16.mxu1 %v8362_v26  ;;  %v2204_v26 = vcombine.high %v7152_v17, %v7152_v17 }
 0x16b   :  { %3283 = vmatpush2.bf16.msra.mxu0 %v8363_v5  ;;  %v8378_v5 = vld [vmem:[%s11555_s3 + $0x4b0] ss:$8 sps:$4 sm:$0xff]  }
 0x16c   :  { %3284 = vmatprep.subr.bf16.mxu0 %v8371_v56  ;;  %v8386_v56 = vld [vmem:[%s11555_s3 + $0x4a4] ss:$8 sps:$4 sm:$0xff]  }
 0x16d   :  { %3224 = vmatpush2.bf16.msra.mxu1 %v8360_v14  ;;  %v8387_v14 = vld [vmem:[%s11555_s3 + $0x770] ss:$8 sps:$4 sm:$0xff]  }
 0x16e   :  { %3225 = vmatprep.subr.bf16.mxu1 %v8368_v47  ;;  %v8395_v47 = vld [vmem:[%s11555_s3 + $0x764] ss:$8 sps:$4 sm:$0xff]  }
 0x16f   :  { %3285 = vmatpush2.bf16.msra.mxu0 %v8369_v44  ;;  %v7160_v44 = vrot.slane %v7152_v17, 9  ;;  %v8399_v17 = vld [vmem:[%s11555_s3 + $0x750] ss:$8 sps:$4 sm:$0xff]  }
 0x170   :  { %3286 = vmatprep.subr.bf16.mxu0 %v8377_v42  ;;  %v2242_v42 = vrot.slane %v2204_v26, 7  ;;  %v8396_v26 = vld [vmem:[%s11555_s3 + $0x480] ss:$8 sps:$4 sm:$0xff]  }
 0x171   :  { %3226 = vmatpush2.bf16.msra.mxu1 %v8366_v7  ;;  %v8384_v7 = vld [vmem:[%s11555_s3 + $0x4a0] ss:$8 sps:$4 sm:$0xff]  }
 0x172   :  { %3227 = vmatprep.subr.bf16.mxu1 %v8374_v34  ;;  %v8392_v34 = vld [vmem:[%s11555_s3 + $0x494] ss:$8 sps:$4 sm:$0xff]  }
 0x173   :  { %3287 = vmatpush2.bf16.msra.mxu0 %v8375_v55  ;;  %v8393_v55 = vld [vmem:[%s11555_s3 + $0x760] ss:$8 sps:$4 sm:$0xff]  }
 0x174   :  { %3288 = vmatprep.subr.bf16.mxu0 %v8383_v6  ;;  %v8401_v6 = vld [vmem:[%s11555_s3 + $0x754] ss:$8 sps:$4 sm:$0xff]  }
 0x175   :  { %3228 = vmatpush2.bf16.msra.mxu1 %v8372_v46  ;;  %v2243_v46 = vsel %vm9386_vm5, %v7160_v44, %v2242_v42  ;;  %v8411_v44 = vld [vmem:[%s11555_s3 + $0x730] ss:$8 sps:$4 sm:$0xff]   ;;  %v8419_v42 = vld [vmem:[%s11555_s3 + $0x724] ss:$8 sps:$4 sm:$0xff]  }
 0x176   :  { %3229 = vmatprep.subr.bf16.mxu1 %v8380_v63  ;;  %v2374_v63 = vcombine.low %v9467_v50, %v9475_v52 }
 0x177   :  { %3289 = vmatpush2.bf16.msra.mxu0 %v8381_v40  ;;  %v2375_v40 = vcombine.low %v9479_v38, %v2243_v46  ;;  %v8405_v38 = vld [vmem:[%s11555_s3 + $0x740] ss:$8 sps:$4 sm:$0xff]   ;;  %v8422_v46 = vld [vmem:[%s11555_s3 + $0x644] ss:$8 sps:$4 sm:$0xff]  }
 0x178   :  { %3364 = vmatprep.subr.bf16.mxu0 %v8389_v45  ;;  %v8407_v45 = vld [vmem:[%s11555_s3 + $0x744] ss:$8 sps:$4 sm:$0xff]   ;;  %v2382_v50 = vrot.slane %v2374_v63, %v9207_v61  ;;  %v8420_v63 = vld [vmem:[%s11555_s3 + $0x640] ss:$8 sps:$4 sm:$0xff]  }
 0x179   :  { %3230 = vmatpush2.bf16.msra.mxu1 %v8378_v5  ;;  %v8404_v5 = vld [vmem:[%s11555_s3 + $0x674] ss:$8 sps:$4 sm:$0xff]   ;;  %v2389_v52 = vrot.slane %v2375_v40, %v9207_v61 }
 0x17a   :  { %3231 = vmatprep.subr.bf16.mxu1 %v8386_v56  ;;  %3291 = vmatmul.mubr.bf16.vlgmr.msra.gmra.mxu0 %v9313_v10  ;;  %v8390_v10 = vld [vmem:[%s11555_s3 + $0x490] ss:$8 sps:$4 sm:$0xff]   ;;  %v8428_v40 = vld [vmem:[%s11555_s3 + $0x634] ss:$8 sps:$4 sm:$0xff]  }
 0x17b   :  { %3300 = vmatprep.mubr.bf16.mxu0 %v9425_v20  ;;  %3365 = vmatpush1.bf16.msra.mxu0 %v8387_v14  ;;  %v8398_v20 = vld [vmem:[%s11555_s3 + $0x484] ss:$8 sps:$4 sm:$0xff]   ;;  %v8402_v56 = vld [vmem:[%s11555_s3 + $0x670] ss:$8 sps:$4 sm:$0xff]  }
 0x17c   :  { %3366 = vmatprep.subr.bf16.mxu0 %v8395_v47  ;;  %v8410_v14 = vld [vmem:[%s11555_s3 + $0x664] ss:$8 sps:$4 sm:$0xff]   ;;  %v2391_v47 = vcombine.high %v2382_v50, %v2389_v52 }
 0x17d   :  { %3232 = vmatpush2.bf16.msra.mxu1 %v8384_v7  ;;  %v8417_v7 = vld [vmem:[%s11555_s3 + $0x720] ss:$8 sps:$4 sm:$0xff]  }
 0x17e   :  { %3233 = vmatprep.subr.bf16.mxu1 %v8392_v34  ;;  %v8425_v34 = vld [vmem:[%s11555_s3 + $0x714] ss:$8 sps:$4 sm:$0xff]  }
 0x17f   :  { %3367 = vmatpush1.bf16.msra.mxu0 %v8393_v55  ;;  %v8414_v55 = vld [vmem:[%s11555_s3 + $0x650] ss:$8 sps:$4 sm:$0xff]  }
 0x180   :  { %3368 = vmatprep.subr.bf16.mxu0 %v8401_v6  ;;  %v2390_v6 = vcombine.low %v2382_v50, %v2389_v52  ;;  %v8434_v50 = vld [vmem:[%s11555_s3 + $0x624] ss:$8 sps:$4 sm:$0xff]   ;;  %v8435_v52 = vld [vmem:[%s11555_s3 + $0x7f0] ss:$8 sps:$4 sm:$0xff]  }
 0x181   :  { %3234 = vmatpush2.bf16.msra.mxu1 %v8390_v10  ;;  %v8423_v10 = vld [vmem:[%s11555_s3 + $0x710] ss:$8 sps:$4 sm:$0xff]  }
 0x182   :  { %3235 = vmatprep.subr.bf16.mxu1 %v8398_v20  ;;  %3301 = vmatmul.mubr.bf16.gmra.mxu0 %v9427_v21  ;;  %v8413_v21 = vld [vmem:[%s11555_s3 + $0x734] ss:$8 sps:$4 sm:$0xff]   ;;  %v8431_v20 = vld [vmem:[%s11555_s3 + $0x704] ss:$8 sps:$4 sm:$0xff]  }
 0x183   :  { %3369 = vmatpush1.bf16.msra.mxu0 %v8399_v17  ;;  %3396 = vmatprep.mubr.bf16.mxu0 %v9433_v25  ;;  %v2372_v25 = vcombine.low %v9821_v53, %v9801_v58  ;;  %v8408_v58 = vld [vmem:[%s11555_s3 + $0x660] ss:$8 sps:$4 sm:$0xff]   ;;  %v8416_v53 = vld [vmem:[%s11555_s3 + $0x654] ss:$8 sps:$4 sm:$0xff]   ;;  %v11607_v17 = vcombine.high %v9488_v59, %v9491_v60 }
 0x184   :  { %3370 = vmatprep.subr.bf16.mxu0 %v8407_v45  ;;  %v8429_v45 = vld [vmem:[%s11555_s3 + $0x700] ss:$8 sps:$4 sm:$0xff]  }
 0x185   :  { %3236 = vmatpush2.bf16.msra.mxu1 %v8396_v26  ;;  %v8437_v26 = vld [vmem:[%s11555_s3 + $0x7f4] ss:$8 sps:$4 sm:$0xff]  }
 0x186   :  { %3311 = vmatprep.subr.bf16.mxu1 %v8404_v5  ;;  %v8426_v5 = vld [vmem:[%s11555_s3 + $0x630] ss:$8 sps:$4 sm:$0xff]  }
 0x187   :  { %3371 = vmatpush1.bf16.msra.mxu0 %v8405_v38  ;;  %v8443_v38 = vld [vmem:[%s11555_s3 + $0x7e4] ss:$8 sps:$4 sm:$0xff]  }
 0x188   :  { %3238 = vmatmul.mubr.bf16.vlgmr.msra.gmra.mxu1 %v2372_v25  ;;  %3372 = vmatprep.subr.bf16.mxu0 %v8413_v21  ;;  %v8432_v21 = vld [vmem:[%s11555_s3 + $0x620] ss:$8 sps:$4 sm:$0xff]  }
 0x189   :  { %3247 = vmatprep.mubr.bf16.mxu1 %v2391_v47  ;;  %3312 = vmatpush1.bf16.msra.mxu1 %v8402_v56  ;;  %v8440_v56 = vld [vmem:[%s11555_s3 + $0x614] ss:$8 sps:$4 sm:$0xff]   ;;  %v8441_v25 = vld [vmem:[%s11555_s3 + $0x7e0] ss:$8 sps:$4 sm:$0xff]   ;;  %v8438_v47 = vld [vmem:[%s11555_s3 + $0x610] ss:$8 sps:$4 sm:$0xff]  }
 0x18a   :  { %3313 = vmatprep.subr.bf16.mxu1 %v8410_v14  ;;  %v8449_v14 = vld [vmem:[%s11555_s3 + $0x7d4] ss:$8 sps:$4 sm:$0xff]  }
 0x18b   :  { %3373 = vmatpush1.bf16.msra.mxu0 %v8411_v44  ;;  %v8446_v44 = vld [vmem:[%s11555_s3 + $0x604] ss:$8 sps:$4 sm:$0xff]  }
 0x18c   :  { %3374 = vmatprep.subr.bf16.mxu0 %v8419_v42  ;;  %v8447_v42 = vld [vmem:[%s11555_s3 + $0x7d0] ss:$8 sps:$4 sm:$0xff]  }
 0x18d   :  { %3314 = vmatpush1.bf16.msra.mxu1 %v8408_v58  ;;  %v8455_v58 = vld [vmem:[%s11555_s3 + $0x7c4] ss:$8 sps:$4 sm:$0xff]  }
 0x18e   :  { %3315 = vmatprep.subr.bf16.mxu1 %v8416_v53  ;;  %v8444_v53 = vld [vmem:[%s11555_s3 + $0x600] ss:$8 sps:$4 sm:$0xff]  }
 0x18f   :  { %3375 = vmatpush1.bf16.msra.mxu0 %v8417_v7  ;;  %v8452_v7 = vld [vmem:[%s11555_s3 + $0x6f4] ss:$8 sps:$4 sm:$0xff]  }
 0x190   :  { %3248 = vmatmul.mubr.bf16.gmra.mxu1 %v2390_v6  ;;  %3376 = vmatprep.subr.bf16.mxu0 %v8425_v34  ;;  %v8453_v34 = vld [vmem:[%s11555_s3 + $0x7c0] ss:$8 sps:$4 sm:$0xff]   ;;  %v8450_v6 = vld [vmem:[%s11555_s3 + $0x6f0] ss:$8 sps:$4 sm:$0xff]  }
 0x191   :  { %3316 = vmatpush1.bf16.msra.mxu1 %v8414_v55  ;;  %3343 = vmatprep.mubr.bf16.mxu1 %v11607_v17  ;;  %v8461_v55 = vld [vmem:[%s11555_s3 + $0x7b4] ss:$8 sps:$4 sm:$0xff]   ;;  %v8456_v17 = vld [vmem:[%s11555_s3 + $0x6e0] ss:$8 sps:$4 sm:$0xff]  }
 0x192   :  { %3317 = vmatprep.subr.bf16.mxu1 %v8422_v46  ;;  %v8458_v46 = vld [vmem:[%s11555_s3 + $0x6e4] ss:$8 sps:$4 sm:$0xff]  }
 0x193   :  { %3377 = vmatpush1.bf16.msra.mxu0 %v8423_v10  ;;  %v8459_v10 = vld [vmem:[%s11555_s3 + $0x7b0] ss:$8 sps:$4 sm:$0xff]  }
 0x194   :  { %3378 = vmatprep.subr.bf16.mxu0 %v8431_v20  ;;  %v8467_v20 = vld [vmem:[%s11555_s3 + $0x7a4] ss:$8 sps:$4 sm:$0xff]  }
 0x195   :  { %3318 = vmatpush1.bf16.msra.mxu1 %v8420_v63  ;;  %v8464_v63 = vld [vmem:[%s11555_s3 + $0x6d4] ss:$8 sps:$4 sm:$0xff]  }
 0x196   :  { %3319 = vmatprep.subr.bf16.mxu1 %v8428_v40  ;;  %v8465_v40 = vld [vmem:[%s11555_s3 + $0x7a0] ss:$8 sps:$4 sm:$0xff]  }
 0x197   :  { %3379 = vmatpush1.bf16.msra.mxu0 %v8429_v45  ;;  %v8473_v45 = vld [vmem:[%s11555_s3 + $0x794] ss:$8 sps:$4 sm:$0xff]  }
 0x198   :  { %3380 = vmatprep.subr.bf16.mxu0 %v8437_v26  ;;  %v8462_v26 = vld [vmem:[%s11555_s3 + $0x6d0] ss:$8 sps:$4 sm:$0xff]  }
 0x199   :  { %3320 = vmatpush1.bf16.msra.mxu1 %v8426_v5  ;;  %v8470_v5 = vld [vmem:[%s11555_s3 + $0x6c4] ss:$8 sps:$4 sm:$0xff]  }
 0x19a   :  { %3321 = vmatprep.subr.bf16.mxu1 %v8434_v50  ;;  %v8471_v50 = vld [vmem:[%s11555_s3 + $0x790] ss:$8 sps:$4 sm:$0xff]  }
 0x19b   :  { %3381 = vmatpush2.bf16.msra.mxu0 %v8435_v52  ;;  %v8479_v52 = vld [vmem:[%s11555_s3 + $0x784] ss:$8 sps:$4 sm:$0xff]  }
 0x19c   :  { %3382 = vmatprep.subr.bf16.mxu0 %v8443_v38  ;;  %v8468_v38 = vld [vmem:[%s11555_s3 + $0x6c0] ss:$8 sps:$4 sm:$0xff]  }
 0x19d   :  { %3322 = vmatpush1.bf16.msra.mxu1 %v8432_v21  ;;  %v7468_v21 = vld.sshfl [vmem:[#allocation3 + $0x28] sm:$0x5f pattern:$0x76325410] }
 0x19e   :  { %3323 = vmatprep.subr.bf16.mxu1 %v8440_v56  ;;  %v8476_v56 = vld [vmem:[%s11555_s3 + $0x6b4] ss:$8 sps:$4 sm:$0xff]  }
 0x19f   :  { %3383 = vmatpush2.bf16.msra.mxu0 %v8441_v25  ;;  %v8477_v25 = vld [vmem:[%s11555_s3 + $0x780] ss:$8 sps:$4 sm:$0xff]  }
 0x1a0   :  { %3384 = vmatprep.subr.bf16.mxu0 %v8449_v14  ;;  %v8485_v14 = vld [vmem:[%s11555_s3 + $0x974] ss:$8 sps:$4 sm:$0xff]  }
 0x1a1   :  { %3324 = vmatpush1.bf16.msra.mxu1 %v8438_v47  ;;  %v3813_v47 = vshrl.u32 %v7468_v21, 16 }
 0x1a2   :  { %3325 = vmatprep.subr.bf16.mxu1 %v8446_v44  ;;  %v3816_v44 = vshll.u32 %v7468_v21, 16 }
 0x1a3   :  { %3385 = vmatpush2.bf16.msra.mxu0 %v8447_v42  ;;  %v8474_v42 = vld [vmem:[%s11555_s3 + $0x6b0] ss:$8 sps:$4 sm:$0xff]  }
 0x1a4   :  { %3386 = vmatprep.subr.bf16.mxu0 %v8455_v58  ;;  %v8482_v58 = vld [vmem:[%s11555_s3 + $0x6a4] ss:$8 sps:$4 sm:$0xff]  }
 0x1a5   :  { %3326 = vmatpush1.bf16.msra.mxu1 %v8444_v53  ;;  %v7476_v53 = vld.sshfl [vmem:[#allocation3 + $0x28] sm:$0xf pattern:$0x76325410] }
 0x1a6   :  { %3327 = vmatprep.subr.bf16.mxu1 %v8452_v7  ;;  %v8483_v7 = vld [vmem:[%s11555_s3 + $0x970] ss:$8 sps:$4 sm:$0xff]  }
 0x1a7   :  { %3387 = vmatpush2.bf16.msra.mxu0 %v8453_v34  ;;  %v8491_v34 = vld [vmem:[%s11555_s3 + $0x964] ss:$8 sps:$4 sm:$0xff]  }
 0x1a8   :  { %3388 = vmatprep.subr.bf16.mxu0 %v8461_v55  ;;  %v3737_v55 = vcombine.high %v7468_v21, %v7468_v21 }
 0x1a9   :  { %3328 = vmatpush2.bf16.msra.mxu1 %v8450_v6  ;;  %v3815_v6 = vrot.slane %v3813_v47, 6 }
 0x1aa   :  { %3329 = vmatprep.subr.bf16.mxu1 %v8458_v46  ;;  %v3818_v46 = vrot.slane %v3816_v44, 7 }
 0x1ab   :  { %3389 = vmatpush2.bf16.msra.mxu0 %v8459_v10  ;;  %v8480_v10 = vld [vmem:[%s11555_s3 + $0x6a0] ss:$8 sps:$4 sm:$0xff]  }
 0x1ac   :  { %3390 = vmatprep.subr.bf16.mxu0 %v8467_v20  ;;  %v8873_v20 = vld.sshfl [vmem:[#allocation3 + $0x18] sm:$0xf pattern:$0x76325410] }
 0x1ad   :  { %3330 = vmatpush2.bf16.msra.mxu1 %v8456_v17  ;;  %v8874_v17 = vld.sshfl [vmem:[#allocation3 + $0x10] sm:$0xf pattern:$0x76325410] }
 0x1ae   :  { %3331 = vmatprep.subr.bf16.mxu1 %v8464_v63  ;;  %v4258_v63 = vcombine.low %v8874_v17, %v8873_v20  ;;  %v11608_v17 = vcombine.low %v9488_v59, %v9491_v60  ;;  %v8512_v59 = vld [vmem:[%s11555_s3 + $0x854] ss:$8 sps:$4 sm:$0xff]  }
 0x1af   :  { %3391 = vmatpush2.bf16.msra.mxu0 %v8465_v40  ;;  %v8875_v40 = vld.sshfl [vmem:[#allocation3 + $0x20] sm:$0xf pattern:$0x76325410] }
 0x1b0   :  { %3392 = vmatprep.subr.bf16.mxu0 %v8473_v45  ;;  %v4259_v45 = vcombine.low %v8875_v40, %v7476_v53  ;;  %v10243_v21 = vrot.slane %v4258_v63, %v9207_v61  ;;  %v8500_v53 = vld [vmem:[%s11555_s3 + $0x874] ss:$8 sps:$4 sm:$0xff]   ;;  %v8515_v63 = vld [vmem:[%s11555_s3 + $0x924] ss:$8 sps:$4 sm:$0xff]   ;;  %v11609_v40 = vcombine.high %v9505_v4, %v9515_v13 }
 0x1b1   :  { %3332 = vmatpush2.bf16.msra.mxu1 %v8462_v26  ;;  %v8488_v26 = vld [vmem:[%s11555_s3 + $0x694] ss:$8 sps:$4 sm:$0xff]  }
 0x1b2   :  { %3333 = vmatprep.subr.bf16.mxu1 %v8470_v5  ;;  %v8489_v5 = vld [vmem:[%s11555_s3 + $0x960] ss:$8 sps:$4 sm:$0xff]  }
 0x1b3   :  { %3393 = vmatpush2.bf16.msra.mxu0 %v8471_v50  ;;  %v8497_v50 = vld [vmem:[%s11555_s3 + $0x954] ss:$8 sps:$4 sm:$0xff]  }
 0x1b4   :  { %3394 = vmatprep.subr.bf16.mxu0 %v8479_v52  ;;  %v3819_v52 = vor.u32 %v3818_v46, %v3815_v6  ;;  %v8506_v6 = vld [vmem:[%s11555_s3 + $0x864] ss:$8 sps:$4 sm:$0xff]   ;;  %v8507_v46 = vld [vmem:[%s11555_s3 + $0x930] ss:$8 sps:$4 sm:$0xff]  }
 0x1b5   :  { %3334 = vmatpush2.bf16.msra.mxu1 %v8468_v38  ;;  %v3822_v38 = vshll.u32 %v3737_v55, 16 }
 0x1b6   :  { %3335 = vmatprep.subr.bf16.mxu1 %v8476_v56  ;;  %v8494_v56 = vld [vmem:[%s11555_s3 + $0x684] ss:$8 sps:$4 sm:$0xff]   ;;  %v3820_v47 = vrot.slane %v3819_v52, 2  ;;  %v8519_v52 = vld [vmem:[%s11555_s3 + $0x910] ss:$8 sps:$4 sm:$0xff]  }
 0x1b7   :  { %3395 = vmatpush2.bf16.msra.mxu0 %v8477_v25  ;;  %v8495_v25 = vld [vmem:[%s11555_s3 + $0x950] ss:$8 sps:$4 sm:$0xff]   ;;  %v3824_v44 = vrot.slane %v3822_v38, 7  ;;  %v11610_v38 = vcombine.low %v9505_v4, %v9515_v13  ;;  %v8525_v4 = vld [vmem:[%s11555_s3 + $0x900] ss:$8 sps:$4 sm:$0xff]  }
 0x1b8   :  { %5212 = vmatprep.subr.bf16.mxu0 %v8485_v14  ;;  %v8503_v14 = vld [vmem:[%s11555_s3 + $0x944] ss:$8 sps:$4 sm:$0xff]   ;;  %v8533_v13 = vld [vmem:[%s11555_s3 + $0x9f4] ss:$8 sps:$4 sm:$0xff]  }
 0x1b9   :  { %3336 = vmatpush2.bf16.msra.mxu1 %v8474_v42  ;;  %v8492_v42 = vld [vmem:[%s11555_s3 + $0x680] ss:$8 sps:$4 sm:$0xff]   ;;  %v3825_v55 = vsel %vm9249_vm14, %v3820_v47, %v3824_v44  ;;  %v8530_v47 = vld [vmem:[%s11555_s3 + $0x824] ss:$8 sps:$4 sm:$0xff]   ;;  %v8531_v44 = vld [vmem:[%s11555_s3 + $0x9f0] ss:$8 sps:$4 sm:$0xff]  }
 0x1ba   :  { %3337 = vmatprep.subr.bf16.mxu1 %v8482_v58  ;;  %3397 = vmatmul.mubr.bf16.vlgmr.msra.gmra.mxu0 %v9755_v15  ;;  %v8486_v15 = vld [vmem:[%s11555_s3 + $0x690] ss:$8 sps:$4 sm:$0xff]   ;;  %v4219_v20 = vcombine.low %v9618_v39, %v3825_v55 }
 0x1bb   :  { %3406 = vmatprep.mubr.bf16.mxu0 %v9771_v54  ;;  %5213 = vmatpush1.bf16.msra.mxu0 %v8483_v7  ;;  %v10246_v54 = vrot.slane %v4259_v45, %v9207_v61  ;;  %v8501_v7 = vld [vmem:[%s11555_s3 + $0x940] ss:$8 sps:$4 sm:$0xff]   ;;  %v8521_v45 = vld [vmem:[%s11555_s3 + $0x914] ss:$8 sps:$4 sm:$0xff]   ;;  %v8534_v55 = vld [vmem:[%s11555_s3 + $0x810] ss:$8 sps:$4 sm:$0xff]  }
 0x1bc   :  { %5214 = vmatprep.subr.bf16.mxu0 %v8491_v34  ;;  %v8509_v34 = vld [vmem:[%s11555_s3 + $0x934] ss:$8 sps:$4 sm:$0xff]   ;;  %v10305_v39 = vrot.slane %v4219_v20, %v9207_v61 }
 0x1bd   :  { %3338 = vmatpush2.bf16.msra.mxu1 %v8480_v10  ;;  %v4275_v58 = vcombine.high %v10243_v21, %v10246_v54  ;;  %v4218_v10 = vcombine.low %v9726_v12, %v9613_v18  ;;  %v8504_v18 = vld [vmem:[%s11555_s3 + $0x860] ss:$8 sps:$4 sm:$0xff]   ;;  %v8548_v20 = vld [vmem:[%s11555_s3 + $0x8f4] ss:$8 sps:$4 sm:$0xff]  }
 0x1be   :  { %3339 = vmatprep.subr.bf16.mxu1 %v8488_v26  ;;  %v8513_v12 = vld [vmem:[%s11555_s3 + $0x920] ss:$8 sps:$4 sm:$0xff]   ;;  %v8510_v26 = vld [vmem:[%s11555_s3 + $0x850] ss:$8 sps:$4 sm:$0xff]  }
 0x1bf   :  { %5215 = vmatpush1.bf16.msra.mxu0 %v8489_v5  ;;  %v10302_v60 = vrot.slane %v4218_v10, %v9207_v61  ;;  %v8518_v5 = vld [vmem:[%s11555_s3 + $0x844] ss:$8 sps:$4 sm:$0xff]   ;;  %v8540_v10 = vld [vmem:[%s11555_s3 + $0x800] ss:$8 sps:$4 sm:$0xff]  }
 0x1c0   :  { %5216 = vmatprep.subr.bf16.mxu0 %v8497_v50 }
 0x1c1   :  { %3340 = vmatpush2.bf16.msra.mxu1 %v8486_v15  ;;  %v10321_v50 = vcombine.high %v10302_v60, %v10305_v39  ;;  %v8527_v15 = vld [vmem:[%s11555_s3 + $0x904] ss:$8 sps:$4 sm:$0xff]  }
 0x1c2   :  { %3341 = vmatprep.subr.bf16.mxu1 %v8494_v56  ;;  %3407 = vmatmul.mubr.bf16.gmra.mxu0 %v9830_v9  ;;  %v8498_v9 = vld [vmem:[%s11555_s3 + $0x870] ss:$8 sps:$4 sm:$0xff]   ;;  %v8516_v56 = vld [vmem:[%s11555_s3 + $0x840] ss:$8 sps:$4 sm:$0xff]  }
 0x1c3   :  { %5217 = vmatpush1.bf16.msra.mxu0 %v8495_v25  ;;  %5244 = vmatprep.mubr.bf16.mxu0 %v4275_v58  ;;  %v8524_v25 = vld [vmem:[%s11555_s3 + $0x834] ss:$8 sps:$4 sm:$0xff]   ;;  %v8528_v58 = vld [vmem:[%s11555_s3 + $0x820] ss:$8 sps:$4 sm:$0xff]  }
 0x1c4   :  { %5218 = vmatprep.subr.bf16.mxu0 %v8503_v14  ;;  %v8522_v14 = vld [vmem:[%s11555_s3 + $0x830] ss:$8 sps:$4 sm:$0xff]  }
 0x1c5   :  { %3342 = vmatpush2.bf16.msra.mxu1 %v8492_v42  ;;  %v8539_v42 = vld [vmem:[%s11555_s3 + $0x9e4] ss:$8 sps:$4 sm:$0xff]  }
 0x1c6   :  { %5159 = vmatprep.subr.bf16.mxu1 %v8500_v53  ;;  %v8536_v53 = vld [vmem:[%s11555_s3 + $0x814] ss:$8 sps:$4 sm:$0xff]  }
 0x1c7   :  { %5219 = vmatpush1.bf16.msra.mxu0 %v8501_v7  ;;  %v8537_v7 = vld [vmem:[%s11555_s3 + $0x9e0] ss:$8 sps:$4 sm:$0xff]  }
 0x1c8   :  { %3344 = vmatmul.mubr.bf16.vlgmr.msra.gmra.mxu1 %v11608_v17  ;;  %5220 = vmatprep.subr.bf16.mxu0 %v8509_v34  ;;  %v8545_v34 = vld [vmem:[%s11555_s3 + $0x9d4] ss:$8 sps:$4 sm:$0xff]   ;;  %v8549_v17 = vld [vmem:[%s11555_s3 + $0x9c0] ss:$8 sps:$4 sm:$0xff]  }
 0x1c9   :  { %3353 = vmatprep.mubr.bf16.mxu1 %v11609_v40  ;;  %5160 = vmatpush1.bf16.msra.mxu1 %v8498_v9  ;;  %v8542_v9 = vld [vmem:[%s11555_s3 + $0x804] ss:$8 sps:$4 sm:$0xff]   ;;  %v8546_v40 = vld [vmem:[%s11555_s3 + $0x8f0] ss:$8 sps:$4 sm:$0xff]  }
 0x1ca   :  { %5161 = vmatprep.subr.bf16.mxu1 %v8506_v6  ;;  %v8543_v6 = vld [vmem:[%s11555_s3 + $0x9d0] ss:$8 sps:$4 sm:$0xff]  }
 0x1cb   :  { %5221 = vmatpush1.bf16.msra.mxu0 %v8507_v46  ;;  %v8551_v46 = vld [vmem:[%s11555_s3 + $0x9c4] ss:$8 sps:$4 sm:$0xff]  }
 0x1cc   :  { %5222 = vmatprep.subr.bf16.mxu0 %v8515_v63  ;;  %v8557_v63 = vld [vmem:[%s11555_s3 + $0x9b4] ss:$8 sps:$4 sm:$0xff]  }
 0x1cd   :  { %5162 = vmatpush1.bf16.msra.mxu1 %v8504_v18  ;;  %v8554_v18 = vld [vmem:[%s11555_s3 + $0x8e4] ss:$8 sps:$4 sm:$0xff]  }
 0x1ce   :  { %5163 = vmatprep.subr.bf16.mxu1 %v8512_v59  ;;  %v8555_v59 = vld [vmem:[%s11555_s3 + $0x9b0] ss:$8 sps:$4 sm:$0xff]  }
 0x1cf   :  { %5223 = vmatpush1.bf16.msra.mxu0 %v8513_v12  ;;  %v8563_v12 = vld [vmem:[%s11555_s3 + $0x9a4] ss:$8 sps:$4 sm:$0xff]  }
 0x1d0   :  { %3354 = vmatmul.mubr.bf16.gmra.mxu1 %v11610_v38  ;;  %5224 = vmatprep.subr.bf16.mxu0 %v8521_v45  ;;  %v8552_v45 = vld [vmem:[%s11555_s3 + $0x8e0] ss:$8 sps:$4 sm:$0xff]   ;;  %v8569_v38 = vld [vmem:[%s11555_s3 + $0x994] ss:$8 sps:$4 sm:$0xff]  }
 0x1d1   :  { %5164 = vmatpush1.bf16.msra.mxu1 %v8510_v26  ;;  %5191 = vmatprep.mubr.bf16.mxu1 %v10321_v50  ;;  %v7472_v26 = vld.sshfl [vmem:[#allocation3 + $0x58] sm:$0x5f pattern:$0x76325410] }
 0x1d2   :  { %5165 = vmatprep.subr.bf16.mxu1 %v8518_v5  ;;  %v8560_v5 = vld [vmem:[%s11555_s3 + $0x8d4] ss:$8 sps:$4 sm:$0xff]  }
 0x1d3   :  { %5225 = vmatpush1.bf16.msra.mxu0 %v8519_v52  ;;  %v8561_v52 = vld [vmem:[%s11555_s3 + $0x9a0] ss:$8 sps:$4 sm:$0xff]  }
 0x1d4   :  { %5226 = vmatprep.subr.bf16.mxu0 %v8527_v15  ;;  %v3869_v15 = vshrl.u32 %v7472_v26, 16 }
 0x1d5   :  { %5166 = vmatpush1.bf16.msra.mxu1 %v8516_v56  ;;  %v3872_v56 = vshll.u32 %v7472_v26, 16 }
 0x1d6   :  { %5167 = vmatprep.subr.bf16.mxu1 %v8524_v25  ;;  %v8558_v25 = vld [vmem:[%s11555_s3 + $0x8d0] ss:$8 sps:$4 sm:$0xff]  }
 0x1d7   :  { %5227 = vmatpush1.bf16.msra.mxu0 %v8525_v4  ;;  %v8566_v4 = vld [vmem:[%s11555_s3 + $0x8c4] ss:$8 sps:$4 sm:$0xff]  }
 0x1d8   :  { %5228 = vmatprep.subr.bf16.mxu0 %v8533_v13  ;;  %v7480_v13 = vld.sshfl [vmem:[#allocation3 + $0x58] sm:$0xf pattern:$0x76325410] }
 0x1d9   :  { %5168 = vmatpush1.bf16.msra.mxu1 %v8522_v14  ;;  %v8567_v14 = vld [vmem:[%s11555_s3 + $0x990] ss:$8 sps:$4 sm:$0xff]  }
 0x1da   :  { %5169 = vmatprep.subr.bf16.mxu1 %v8530_v47  ;;  %v8575_v47 = vld [vmem:[%s11555_s3 + $0x984] ss:$8 sps:$4 sm:$0xff]  }
 0x1db   :  { %5229 = vmatpush2.bf16.msra.mxu0 %v8531_v44  ;;  %v3769_v44 = vcombine.high %v7472_v26, %v7472_v26  ;;  %v4274_v26 = vcombine.low %v10243_v21, %v10246_v54  ;;  %v8585_v21 = vld [vmem:[%s11555_s3 + $0xb60] ss:$8 sps:$4 sm:$0xff]   ;;  %v8593_v54 = vld [vmem:[%s11555_s3 + $0xb54] ss:$8 sps:$4 sm:$0xff]  }
 0x1dc   :  { %5230 = vmatprep.subr.bf16.mxu0 %v8539_v42  ;;  %v3871_v42 = vrot.slane %v3869_v15, 6  ;;  %v8576_v15 = vld [vmem:[%s11555_s3 + $0x8a0] ss:$8 sps:$4 sm:$0xff]  }
 0x1dd   :  { %5170 = vmatpush1.bf16.msra.mxu1 %v8528_v58  ;;  %v3874_v58 = vrot.slane %v3872_v56, 7 }
 0x1de   :  { %5171 = vmatprep.subr.bf16.mxu1 %v8536_v53  ;;  %v8564_v53 = vld [vmem:[%s11555_s3 + $0x8c0] ss:$8 sps:$4 sm:$0xff]  }
 0x1df   :  { %5231 = vmatpush2.bf16.msra.mxu0 %v8537_v7  ;;  %v8876_v7 = vld.sshfl [vmem:[#allocation3 + $0x48] sm:$0xf pattern:$0x76325410] }
 0x1e0   :  { %5232 = vmatprep.subr.bf16.mxu0 %v8545_v34  ;;  %v8877_v34 = vld.sshfl [vmem:[#allocation3 + $0x40] sm:$0xf pattern:$0x76325410] }
 0x1e1   :  { %5172 = vmatpush1.bf16.msra.mxu1 %v8534_v55  ;;  %v4276_v55 = vcombine.low %v8877_v34, %v8876_v7  ;;  %v8596_v7 = vld [vmem:[%s11555_s3 + $0xa74] ss:$8 sps:$4 sm:$0xff]  }
 0x1e2   :  { %5173 = vmatprep.subr.bf16.mxu1 %v8542_v9  ;;  %v8878_v9 = vld.sshfl [vmem:[#allocation3 + $0x50] sm:$0xf pattern:$0x76325410] }
 0x1e3   :  { %5233 = vmatpush2.bf16.msra.mxu0 %v8543_v6  ;;  %v4277_v6 = vcombine.low %v8878_v9, %v7480_v13  ;;  %v8582_v13 = vld [vmem:[%s11555_s3 + $0x890] ss:$8 sps:$4 sm:$0xff]   ;;  %v8605_v9 = vld [vmem:[%s11555_s3 + $0xb34] ss:$8 sps:$4 sm:$0xff]  }
 0x1e4   :  { %5234 = vmatprep.subr.bf16.mxu0 %v8551_v46  ;;  %v8572_v46 = vld [vmem:[%s11555_s3 + $0x8b4] ss:$8 sps:$4 sm:$0xff]  }
 0x1e5   :  { %5174 = vmatpush1.bf16.msra.mxu1 %v8540_v10  ;;  %v8573_v10 = vld [vmem:[%s11555_s3 + $0x980] ss:$8 sps:$4 sm:$0xff]  }
 0x1e6   :  { %5175 = vmatprep.subr.bf16.mxu1 %v8548_v20  ;;  %v8581_v20 = vld [vmem:[%s11555_s3 + $0xb74] ss:$8 sps:$4 sm:$0xff]  }
 0x1e7   :  { %5235 = vmatpush2.bf16.msra.mxu0 %v8549_v17  ;;  %v3875_v17 = vor.u32 %v3874_v58, %v3871_v42  ;;  %v8599_v58 = vld [vmem:[%s11555_s3 + $0xb44] ss:$8 sps:$4 sm:$0xff]  }
 0x1e8   :  { %5236 = vmatprep.subr.bf16.mxu0 %v8557_v63  ;;  %v3878_v63 = vshll.u32 %v3769_v44, 16  ;;  %v4236_v44 = vcombine.low %v9787_v57, %v9709_v32  ;;  %v11611_v32 = vld [vmem:[#allocation6_spill] sm:$0xff] }
 0x1e9   :  { %5176 = vmatpush2.bf16.msra.mxu1 %v8546_v40  ;;  %v8570_v40 = vld [vmem:[%s11555_s3 + $0x8b0] ss:$8 sps:$4 sm:$0xff]  }
 0x1ea   :  { %5177 = vmatprep.subr.bf16.mxu1 %v8554_v18  ;;  %v4284_v18 = vrot.slane %v4276_v55, %v9207_v61  ;;  %v4244_v57 = vrot.slane %v4236_v44, %v9207_v61  ;;  %v8597_v55 = vld [vmem:[%s11555_s3 + $0xb40] ss:$8 sps:$4 sm:$0xff]   ;;  %v8641_v44 = vld [vmem:[%s11555_s3 + $0xbd4] ss:$8 sps:$4 sm:$0xff]  }
 0x1eb   :  { %5237 = vmatpush2.bf16.msra.mxu0 %v8555_v59  ;;  %v4291_v59 = vrot.slane %v4277_v6, %v9207_v61  ;;  %v8594_v6 = vld [vmem:[%s11555_s3 + $0xa70] ss:$8 sps:$4 sm:$0xff]  }
 0x1ec   :  { %5238 = vmatprep.subr.bf16.mxu0 %v8563_v12  ;;  %v8578_v12 = vld [vmem:[%s11555_s3 + $0x8a4] ss:$8 sps:$4 sm:$0xff]  }
 0x1ed   :  { %5178 = vmatpush2.bf16.msra.mxu1 %v8552_v45  ;;  %v8579_v45 = vld [vmem:[%s11555_s3 + $0xb70] ss:$8 sps:$4 sm:$0xff]   ;;  %v4293_v56 = vcombine.high %v4284_v18, %v4291_v59  ;;  %v4292_v42 = vcombine.low %v4284_v18, %v4291_v59  ;;  %v8617_v18 = vld [vmem:[%s11555_s3 + $0xb14] ss:$8 sps:$4 sm:$0xff]  }
 0x1ee   :  { %5179 = vmatprep.subr.bf16.mxu1 %v8560_v5  ;;  %v8587_v5 = vld [vmem:[%s11555_s3 + $0xb64] ss:$8 sps:$4 sm:$0xff]   ;;  %v8606_v59 = vld [vmem:[%s11555_s3 + $0xa50] ss:$8 sps:$4 sm:$0xff]  }
 0x1ef   :  { %5239 = vmatpush2.bf16.msra.mxu0 %v8561_v52  ;;  %v3876_v52 = vrot.slane %v3875_v17, 2  ;;  %v8603_v17 = vld [vmem:[%s11555_s3 + $0xb30] ss:$8 sps:$4 sm:$0xff]  }
 0x1f0   :  { %5240 = vmatprep.subr.bf16.mxu0 %v8569_v38  ;;  %v3880_v38 = vrot.slane %v3878_v63, 7  ;;  %v8608_v63 = vld [vmem:[%s11555_s3 + $0xa54] ss:$8 sps:$4 sm:$0xff]  }
 0x1f1   :  { %5180 = vmatpush2.bf16.msra.mxu1 %v8558_v25  ;;  %v8584_v25 = vld [vmem:[%s11555_s3 + $0x894] ss:$8 sps:$4 sm:$0xff]  }
 0x1f2   :  { %5181 = vmatprep.subr.bf16.mxu1 %v8566_v4  ;;  %v3881_v4 = vsel %vm9249_vm14, %v3876_v52, %v3880_v38  ;;  %v8612_v52 = vld [vmem:[%s11555_s3 + $0xa40] ss:$8 sps:$4 sm:$0xff]   ;;  %v8620_v38 = vld [vmem:[%s11555_s3 + $0xa34] ss:$8 sps:$4 sm:$0xff]  }
 0x1f3   :  { %5241 = vmatpush2.bf16.msra.mxu0 %v8567_v14  ;;  %v8590_v14 = vld [vmem:[%s11555_s3 + $0x884] ss:$8 sps:$4 sm:$0xff]   ;;  %v4237_v43 = vcombine.low %v9713_v8, %v3881_v4  ;;  %v11612_v8 = vcombine.high %v9601_v19, %v11611_v32 }
 0x1f4   :  { %5242 = vmatprep.subr.bf16.mxu0 %v8575_v47  ;;  %v8591_v47 = vld [vmem:[%s11555_s3 + $0xb50] ss:$8 sps:$4 sm:$0xff]   ;;  %v8635_v4 = vld [vmem:[%s11555_s3 + $0xbe4] ss:$8 sps:$4 sm:$0xff]  }
 0x1f5   :  { %5182 = vmatpush2.bf16.msra.mxu1 %v8564_v53  ;;  %v8588_v53 = vld [vmem:[%s11555_s3 + $0x880] ss:$8 sps:$4 sm:$0xff]   ;;  %v4251_v34 = vrot.slane %v4237_v43, %v9207_v61  ;;  %v8630_v43 = vld [vmem:[%s11555_s3 + $0xa10] ss:$8 sps:$4 sm:$0xff]  }
 0x1f6   :  { %5183 = vmatprep.subr.bf16.mxu1 %v8572_v46  ;;  %v10508_v46 = vcombine.low %v10302_v60, %v10305_v39  ;;  %v8611_v60 = vld [vmem:[%s11555_s3 + $0xb24] ss:$8 sps:$4 sm:$0xff]   ;;  %v8600_v39 = vld [vmem:[%s11555_s3 + $0xa60] ss:$8 sps:$4 sm:$0xff]  }
 0x1f7   :  { %5243 = vmatpush2.bf16.msra.mxu0 %v8573_v10  ;;  %v8602_v10 = vld [vmem:[%s11555_s3 + $0xa64] ss:$8 sps:$4 sm:$0xff]  }
 0x1f8   :  { %5318 = vmatprep.subr.bf16.mxu0 %v8581_v20  ;;  %v10513_v20 = vcombine.high %v4244_v57, %v4251_v34 }
 0x1f9   :  { %5184 = vmatpush2.bf16.msra.mxu1 %v8570_v40  ;;  %v8609_v40 = vld [vmem:[%s11555_s3 + $0xb20] ss:$8 sps:$4 sm:$0xff]  }
 0x1fa   :  { %5185 = vmatprep.subr.bf16.mxu1 %v8578_v12  ;;  %5245 = vmatmul.mubr.bf16.vlgmr.msra.gmra.mxu0 %v4274_v26  ;;  %v10538_v12 = vcombine.low %v4244_v57, %v4251_v34  ;;  %v8615_v26 = vld [vmem:[%s11555_s3 + $0xb10] ss:$8 sps:$4 sm:$0xff]   ;;  %v8645_v57 = vld [vmem:[%s11555_s3 + $0xbc0] ss:$8 sps:$4 sm:$0xff]   ;;  %v8653_v34 = vld [vmem:[%s11555_s3 + $0xbb4] ss:$8 sps:$4 sm:$0xff]  }
 0x1fb   :  { %5254 = vmatprep.mubr.bf16.mxu0 %v4293_v56  ;;  %5319 = vmatpush1.bf16.msra.mxu0 %v8579_v45  ;;  %v8614_v45 = vld [vmem:[%s11555_s3 + $0xa44] ss:$8 sps:$4 sm:$0xff]   ;;  %v8629_v56 = vld [vmem:[%s11555_s3 + $0xbf4] ss:$8 sps:$4 sm:$0xff]  }
 0x1fc   :  { %5320 = vmatprep.subr.bf16.mxu0 %v8587_v5  ;;  %v8623_v5 = vld [vmem:[%s11555_s3 + $0xb04] ss:$8 sps:$4 sm:$0xff]  }
 0x1fd   :  { %5186 = vmatpush2.bf16.msra.mxu1 %v8576_v15  ;;  %v8621_v15 = vld [vmem:[%s11555_s3 + $0xb00] ss:$8 sps:$4 sm:$0xff]  }
 0x1fe   :  { %5187 = vmatprep.subr.bf16.mxu1 %v8584_v25  ;;  %v8618_v25 = vld [vmem:[%s11555_s3 + $0xa30] ss:$8 sps:$4 sm:$0xff]  }
 0x1ff   :  { %5321 = vmatpush1.bf16.msra.mxu0 %v8585_v21  ;;  %v8626_v21 = vld [vmem:[%s11555_s3 + $0xa24] ss:$8 sps:$4 sm:$0xff]  }
 0x200   :  { %5322 = vmatprep.subr.bf16.mxu0 %v8593_v54  ;;  %v8627_v54 = vld [vmem:[%s11555_s3 + $0xbf0] ss:$8 sps:$4 sm:$0xff]  }
 0x201   :  { %5188 = vmatpush2.bf16.msra.mxu1 %v8582_v13  ;;  %v8624_v13 = vld [vmem:[%s11555_s3 + $0xa20] ss:$8 sps:$4 sm:$0xff]  }
 0x202   :  { %5189 = vmatprep.subr.bf16.mxu1 %v8590_v14  ;;  %5255 = vmatmul.mubr.bf16.gmra.mxu0 %v4292_v42  ;;  %v8632_v14 = vld [vmem:[%s11555_s3 + $0xa14] ss:$8 sps:$4 sm:$0xff]   ;;  %v8638_v42 = vld [vmem:[%s11555_s3 + $0xa04] ss:$8 sps:$4 sm:$0xff]  }
 0x203   :  { %5323 = vmatpush1.bf16.msra.mxu0 %v8591_v47  ;;  %5350 = vmatprep.mubr.bf16.mxu0 %v11612_v8  ;;  %v8633_v47 = vld [vmem:[%s11555_s3 + $0xbe0] ss:$8 sps:$4 sm:$0xff]   ;;  %v8644_v8 = vld [vmem:[%s11555_s3 + $0xaf4] ss:$8 sps:$4 sm:$0xff]  }
 0x204   :  { %5324 = vmatprep.subr.bf16.mxu0 %v8599_v58  ;;  %v8639_v58 = vld [vmem:[%s11555_s3 + $0xbd0] ss:$8 sps:$4 sm:$0xff]  }
 0x205   :  { %5190 = vmatpush2.bf16.msra.mxu1 %v8588_v53  ;;  %v8647_v53 = vld [vmem:[%s11555_s3 + $0xbc4] ss:$8 sps:$4 sm:$0xff]  }
 0x206   :  { %5265 = vmatprep.subr.bf16.mxu1 %v8596_v7  ;;  %v8636_v7 = vld [vmem:[%s11555_s3 + $0xa00] ss:$8 sps:$4 sm:$0xff]  }
 0x207   :  { %5325 = vmatpush1.bf16.msra.mxu0 %v8597_v55  ;;  %v10611_v55 = vpop.f32.mrf.mxu0 }
 0x208   :  { %5192 = vmatmul.mubr.bf16.vlgmr.msra.gmra.mxu1 %v10508_v46  ;;  %5326 = vmatprep.subr.bf16.mxu0 %v8605_v9  ;;  %v8642_v9 = vld [vmem:[%s11555_s3 + $0xaf0] ss:$8 sps:$4 sm:$0xff]  }
 0x209   :  { %5201 = vmatprep.mubr.bf16.mxu1 %v10513_v20  ;;  %5266 = vmatpush1.bf16.msra.mxu1 %v8594_v6  ;;  %v8650_v6 = vld [vmem:[%s11555_s3 + $0xae4] ss:$8 sps:$4 sm:$0xff]  }
 0x20a   :  { %5267 = vmatprep.subr.bf16.mxu1 %v8602_v10  ;;  %v8651_v10 = vld [vmem:[%s11555_s3 + $0xbb0] ss:$8 sps:$4 sm:$0xff]  }
 0x20b   :  { %5327 = vmatpush1.bf16.msra.mxu0 %v8603_v17  ;;  %v8659_v17 = vld [vmem:[%s11555_s3 + $0xba4] ss:$8 sps:$4 sm:$0xff]  }
 0x20c   :  { %5328 = vmatprep.subr.bf16.mxu0 %v8611_v60  ;;  %v10625_v60 = vpop.f32.mrf.mxu0 }
 0x20d   :  { %5268 = vmatpush1.bf16.msra.mxu1 %v8600_v39  ;;  %v8648_v39 = vld [vmem:[%s11555_s3 + $0xae0] ss:$8 sps:$4 sm:$0xff]  }
 0x20e   :  { %5269 = vmatprep.subr.bf16.mxu1 %v8608_v63  ;;  %v8656_v63 = vld [vmem:[%s11555_s3 + $0xad4] ss:$8 sps:$4 sm:$0xff]  }
 0x20f   :  { %5329 = vmatpush1.bf16.msra.mxu0 %v8609_v40  ;;  %v8657_v40 = vld [vmem:[%s11555_s3 + $0xba0] ss:$8 sps:$4 sm:$0xff]  }
 0x210   :  { %5202 = vmatmul.mubr.bf16.gmra.mxu1 %v10538_v12  ;;  %5330 = vmatprep.subr.bf16.mxu0 %v8617_v18  ;;  %v8665_v18 = vld [vmem:[%s11555_s3 + $0xb94] ss:$8 sps:$4 sm:$0xff]  }
 0x211   :  { %5270 = vmatpush1.bf16.msra.mxu1 %v8606_v59  ;;  %5297 = vmatprep.mubr.bf16.mxu1 %v9795_v3  ;;  %v10639_v59 = vpop.f32.mrf.mxu0 }
 0x212   :  { %5271 = vmatprep.subr.bf16.mxu1 %v8614_v45  ;;  %v8654_v45 = vld [vmem:[%s11555_s3 + $0xad0] ss:$8 sps:$4 sm:$0xff]  }
 0x213   :  { %5331 = vmatpush1.bf16.msra.mxu0 %v8615_v26  ;;  %v8662_v26 = vld [vmem:[%s11555_s3 + $0xac4] ss:$8 sps:$4 sm:$0xff]  }
 0x214   :  { %5332 = vmatprep.subr.bf16.mxu0 %v8623_v5  ;;  %v8663_v5 = vld [vmem:[%s11555_s3 + $0xb90] ss:$8 sps:$4 sm:$0xff]  }
 0x215   :  { %5272 = vmatpush1.bf16.msra.mxu1 %v8612_v52  ;;  %v10650_v52 = vpop.f32.mrf.mxu1 }
 0x216   :  { %5273 = vmatprep.subr.bf16.mxu1 %v8620_v38  ;;  %v8671_v38 = vld [vmem:[%s11555_s3 + $0xb84] ss:$8 sps:$4 sm:$0xff]  }
 0x217   :  { %5333 = vmatpush1.bf16.msra.mxu0 %v8621_v15  ;;  %v10655_v15 = vpop.f32.mrf.mxu0 }
 0x218   :  { %5334 = vmatprep.subr.bf16.mxu0 %v8629_v56  ;;  %v8660_v56 = vld [vmem:[%s11555_s3 + $0xac0] ss:$8 sps:$4 sm:$0xff]  }
 0x219   :  { %5274 = vmatpush1.bf16.msra.mxu1 %v8618_v25  ;;  %v8668_v25 = vld [vmem:[%s11555_s3 + $0xab4] ss:$8 sps:$4 sm:$0xff]  }
 0x21a   :  { %5275 = vmatprep.subr.bf16.mxu1 %v8626_v21  ;;  %v10663_v21 = vpop.f32.mrf.mxu0 }
 0x21b   :  { %5335 = vmatpush2.bf16.msra.mxu0 %v8627_v54  ;;  %v8669_v54 = vld [vmem:[%s11555_s3 + $0xb80] ss:$8 sps:$4 sm:$0xff]  }
 0x21c   :  { %5336 = vmatprep.subr.bf16.mxu0 %v8635_v4  ;;  %v10668_v4 = vpop.f32.mrf.mxu1 }
 0x21d   :  { %5276 = vmatpush1.bf16.msra.mxu1 %v8624_v13  ;;  %v8677_v13 = vld [vmem:[%s11555_s3 + $0xd74] ss:$8 sps:$4 sm:$0xff]  }
 0x21e   :  { %5277 = vmatprep.subr.bf16.mxu1 %v8632_v14  ;;  %v8666_v14 = vld [vmem:[%s11555_s3 + $0xab0] ss:$8 sps:$4 sm:$0xff]  }
 0x21f   :  { %5337 = vmatpush2.bf16.msra.mxu0 %v8633_v47  ;;  %v8674_v47 = vld [vmem:[%s11555_s3 + $0xaa4] ss:$8 sps:$4 sm:$0xff]  }
 0x220   :  { %5338 = vmatprep.subr.bf16.mxu0 %v8641_v44  ;;  %v10679_v44 = vpop.f32.mrf.mxu0 }
 0x221   :  { %5278 = vmatpush1.bf16.msra.mxu1 %v8630_v43  ;;  %v8675_v43 = vld [vmem:[%s11555_s3 + $0xd70] ss:$8 sps:$4 sm:$0xff]  }
 0x222   :  { %5279 = vmatprep.subr.bf16.mxu1 %v8638_v42  ;;  %v10684_v42 = vpop.f32.mrf.mxu1 }
 0x223   :  { %5339 = vmatpush2.bf16.msra.mxu0 %v8639_v58  ;;  %v8683_v58 = vld [vmem:[%s11555_s3 + $0xd64] ss:$8 sps:$4 sm:$0xff]  }
 0x224   :  { %5340 = vmatprep.subr.bf16.mxu0 %v8647_v53  ;;  %v8672_v53 = vld [vmem:[%s11555_s3 + $0xaa0] ss:$8 sps:$4 sm:$0xff]  }
 0x225   :  { %5280 = vmatpush1.bf16.msra.mxu1 %v8636_v7  ;;  %v7756_v7 = vld.sshfl [vmem:[#allocation3 + $0x28] sm:$0x5a pattern:$0x76325410] }
 0x226   :  { %5281 = vmatprep.subr.bf16.mxu1 %v8644_v8  ;;  %v11613_v8 = vcombine.low %v9601_v19, %v11611_v32  ;;  %v8689_v19 = vld [vmem:[%s11555_s3 + $0xd54] ss:$8 sps:$4 sm:$0xff]   ;;  %v5442_v32 = vcombine.high %v7756_v7, %v7756_v7 }
 0x227   :  { %5341 = vmatpush2.bf16.msra.mxu0 %v8645_v57  ;;  %v8680_v57 = vld [vmem:[%s11555_s3 + $0xa94] ss:$8 sps:$4 sm:$0xff]  }
 0x228   :  { %5342 = vmatprep.subr.bf16.mxu0 %v8653_v34  ;;  %v10698_v34 = vpop.f32.mrf.mxu0 }
 0x229   :  { %5282 = vmatpush2.bf16.msra.mxu1 %v8642_v9  ;;  %v8681_v9 = vld [vmem:[%s11555_s3 + $0xd60] ss:$8 sps:$4 sm:$0xff]  }
 0x22a   :  { %5283 = vmatprep.subr.bf16.mxu1 %v8650_v6  ;;  %v10706_v6 = vpop.f32.mrf.mxu1 }
 0x22b   :  { %5343 = vmatpush2.bf16.msra.mxu0 %v8651_v10  ;;  %v8678_v10 = vld [vmem:[%s11555_s3 + $0xa90] ss:$8 sps:$4 sm:$0xff]  }
 0x22c   :  { %5344 = vmatprep.subr.bf16.mxu0 %v8659_v17  ;;  %v10714_v17 = vpop.f32.mrf.mxu1 }
 0x22d   :  { %5284 = vmatpush2.bf16.msra.mxu1 %v8648_v39  ;;  %v10719_v39 = vpop.f32.mrf.mxu0 }
 0x22e   :  { %5285 = vmatprep.subr.bf16.mxu1 %v8656_v63  ;;  %v8687_v63 = vld [vmem:[%s11555_s3 + $0xd50] ss:$8 sps:$4 sm:$0xff]  }
 0x22f   :  { %5345 = vmatpush2.bf16.msra.mxu0 %v8657_v40  ;;  %v8695_v40 = vld [vmem:[%s11555_s3 + $0xd44] ss:$8 sps:$4 sm:$0xff]  }
 0x230   :  { %5346 = vmatprep.subr.bf16.mxu0 %v8665_v18  ;;  %v7764_v18 = vrot.slane %v7756_v7, 9  ;;  %v8696_v7 = vld [vmem:[%s11555_s3 + $0xc60] ss:$8 sps:$4 sm:$0xff]  }
 0x231   :  { %5286 = vmatpush2.bf16.msra.mxu1 %v8654_v45  ;;  %v5489_v45 = vrot.slane %v5442_v32, 7 }
 0x232   :  { %5287 = vmatprep.subr.bf16.mxu1 %v8662_v26  ;;  %v10727_v26 = vpop.f32.mrf.mxu0 }
 0x233   :  { %5347 = vmatpush2.bf16.msra.mxu0 %v8663_v5  ;;  %v8684_v5 = vld [vmem:[%s11555_s3 + $0xa80] ss:$8 sps:$4 sm:$0xff]   ;;  %v5490_v33 = vsel %vm9386_vm5, %v7764_v18, %v5489_v45  ;;  %v8719_v45 = vld [vmem:[%s11555_s3 + $0xd04] ss:$8 sps:$4 sm:$0xff]  }
 0x234   :  { %5348 = vmatprep.subr.bf16.mxu0 %v8671_v38  ;;  %v10732_v38 = vpop.f32.mrf.mxu1  ;;  %v10749_v22 = vpop.f32.mrf.mxu0 }
 0x235   :  { %5288 = vmatpush2.bf16.msra.mxu1 %v8660_v56  ;;  %v8692_v56 = vld [vmem:[%s11555_s3 + $0xc74] ss:$8 sps:$4 sm:$0xff]  }
 0x236   :  { %5289 = vmatprep.subr.bf16.mxu1 %v8668_v25  ;;  %v8693_v25 = vld [vmem:[%s11555_s3 + $0xd40] ss:$8 sps:$4 sm:$0xff]  }
 0x237   :  { %5349 = vmatpush2.bf16.msra.mxu0 %v8669_v54  ;;  %v8701_v54 = vld [vmem:[%s11555_s3 + $0xd34] ss:$8 sps:$4 sm:$0xff]  }
 0x238   :  { %6521 = vmatprep.subr.bf16.mxu0 %v8677_v13  ;;  %v8698_v13 = vld [vmem:[%s11555_s3 + $0xc64] ss:$8 sps:$4 sm:$0xff]  }
 0x239   :  { %5290 = vmatpush2.bf16.msra.mxu1 %v8666_v14  ;;  %v8699_v14 = vld [vmem:[%s11555_s3 + $0xd30] ss:$8 sps:$4 sm:$0xff]  }
 0x23a   :  { %5291 = vmatprep.subr.bf16.mxu1 %v8674_v47  ;;  %5351 = vmatmul.mubr.bf16.vlgmr.msra.gmra.mxu0 %v11613_v8  ;;  %v5619_v47 = vcombine.low %v9872_v62, %v9809_v30  ;;  %v8704_v30 = vld [vmem:[%s11555_s3 + $0xc54] ss:$8 sps:$4 sm:$0xff]  }
 0x23b   :  { %5360 = vmatprep.mubr.bf16.mxu0 %v4373_v51  ;;  %6522 = vmatpush1.bf16.msra.mxu0 %v8675_v43  ;;  %v8686_v51 = vld [vmem:[%s11555_s3 + $0xa84] ss:$8 sps:$4 sm:$0xff]   ;;  %v5620_v43 = vcombine.low %v9818_v1, %v5490_v33 }
 0x23c   :  { %6523 = vmatprep.subr.bf16.mxu0 %v8683_v58  ;;  %v8707_v58 = vld [vmem:[%s11555_s3 + $0xd24] ss:$8 sps:$4 sm:$0xff]   ;;  %v10781_v1 = vrot.slane %v5619_v47, %v9207_v61 }
 0x23d   :  { %5292 = vmatpush2.bf16.msra.mxu1 %v8672_v53  ;;  %v10769_v53 = vpop.f32.mrf.mxu0  ;;  %v10784_v62 = vrot.slane %v5620_v43, %v9207_v61  ;;  %v8722_v47 = vld [vmem:[%s11555_s3 + $0xc24] ss:$8 sps:$4 sm:$0xff]   ;;  %v8723_v43 = vld [vmem:[%s11555_s3 + $0xdf0] ss:$8 sps:$4 sm:$0xff]  }
 0x23e   :  { %5293 = vmatprep.subr.bf16.mxu1 %v8680_v57  ;;  %v8705_v57 = vld [vmem:[%s11555_s3 + $0xd20] ss:$8 sps:$4 sm:$0xff]  }
 0x23f   :  { %6524 = vmatpush1.bf16.msra.mxu0 %v8681_v9  ;;  %v10794_v32 = vpop.f32.mrf.mxu0 }
 0x240   :  { %6525 = vmatprep.subr.bf16.mxu0 %v8689_v19  ;;  %v8713_v19 = vld [vmem:[%s11555_s3 + $0xd14] ss:$8 sps:$4 sm:$0xff]  }
 0x241   :  { %5294 = vmatpush2.bf16.msra.mxu1 %v8678_v10  ;;  %v8702_v10 = vld [vmem:[%s11555_s3 + $0xc50] ss:$8 sps:$4 sm:$0xff]  }
 0x242   :  { %5295 = vmatprep.subr.bf16.mxu1 %v8686_v51  ;;  %5361 = vmatmul.mubr.bf16.gmra.mxu0 %v4372_v49  ;;  %v8690_v49 = vld [vmem:[%s11555_s3 + $0xc70] ss:$8 sps:$4 sm:$0xff]   ;;  %v8710_v51 = vld [vmem:[%s11555_s3 + $0xc44] ss:$8 sps:$4 sm:$0xff]  }
 0x243   :  { %6526 = vmatpush1.bf16.msra.mxu0 %v8687_v63  ;;  %6553 = vmatprep.mubr.bf16.mxu0 %v10321_v50  ;;  %v10754_v50 = vpop.f32.mrf.mxu1  ;;  %v5636_v63 = vcombine.high %v10781_v1, %v10784_v62 }
 0x244   :  { %6527 = vmatprep.subr.bf16.mxu0 %v8695_v40  ;;  %v8711_v40 = vld [vmem:[%s11555_s3 + $0xd10] ss:$8 sps:$4 sm:$0xff]  }
 0x245   :  { %5296 = vmatpush2.bf16.msra.mxu1 %v8684_v5  ;;  %v10775_v8 = vpop.f32.mrf.mxu1  ;;  %v10813_v5 = vpop.f32.mrf.mxu0 }
 0x246   :  { %6468 = vmatprep.subr.bf16.mxu1 %v8692_v56  ;;  %v8708_v56 = vld [vmem:[%s11555_s3 + $0xc40] ss:$8 sps:$4 sm:$0xff]  }
 0x247   :  { %6528 = vmatpush1.bf16.msra.mxu0 %v8693_v25  ;;  %v10789_v9 = vpop.f32.mrf.mxu1  ;;  %v8716_v25 = vld [vmem:[%s11555_s3 + $0xc34] ss:$8 sps:$4 sm:$0xff]  }
 0x248   :  { %5298 = vmatmul.mubr.bf16.vlgmr.msra.gmra.mxu1 %v9793_v48  ;;  %6529 = vmatprep.subr.bf16.mxu0 %v8701_v54  ;;  %v8717_v54 = vld [vmem:[%s11555_s3 + $0xd00] ss:$8 sps:$4 sm:$0xff]  }
 0x249   :  { %5307 = vmatprep.mubr.bf16.mxu1 %v9844_v16  ;;  %6469 = vmatpush1.bf16.msra.mxu1 %v8690_v49  ;;  %v10807_v18 = vpop.f32.mrf.mxu1  ;;  %v8725_v49 = vld [vmem:[%s11555_s3 + $0xdf4] ss:$8 sps:$4 sm:$0xff]   ;;  %v11618_v16 = vld [vmem:[#allocation4_spill] sm:$0xff] }
 0x24a   :  { %6470 = vmatprep.subr.bf16.mxu1 %v8698_v13  ;;  %v10829_v13 = vpop.f32.mrf.mxu0 }
 0x24b   :  { %6530 = vmatpush1.bf16.msra.mxu0 %v8699_v14  ;;  %v10824_v33 = vpop.f32.mrf.mxu1  ;;  %v8714_v14 = vld [vmem:[%s11555_s3 + $0xc30] ss:$8 sps:$4 sm:$0xff]  }
 0x24c   :  { %6531 = vmatprep.subr.bf16.mxu0 %v8707_v58 }
 0x24d   :  { %6471 = vmatpush1.bf16.msra.mxu1 %v8696_v7  ;;  %v10840_v58 = vpop.f32.mrf.mxu1  ;;  %v8731_v7 = vld [vmem:[%s11555_s3 + $0xde4] ss:$8 sps:$4 sm:$0xff]  }
 0x24e   :  { %6472 = vmatprep.subr.bf16.mxu1 %v8704_v30  ;;  %v10845_v30 = vpop.f32.mrf.mxu0 }
 0x24f   :  { %6532 = vmatpush1.bf16.msra.mxu0 %v8705_v57  ;;  %v8720_v57 = vld [vmem:[%s11555_s3 + $0xc20] ss:$8 sps:$4 sm:$0xff]  }
 0x250   :  { %5308 = vmatmul.mubr.bf16.gmra.mxu1 %v9846_v2  ;;  %6533 = vmatprep.subr.bf16.mxu0 %v8713_v19  ;;  %v8728_v19 = vld [vmem:[%s11555_s3 + $0xc14] ss:$8 sps:$4 sm:$0xff]  }
 0x251   :  { %6473 = vmatpush1.bf16.msra.mxu1 %v8702_v10  ;;  %6500 = vmatprep.mubr.bf16.mxu1 %v5636_v63  ;;  %v8729_v10 = vld [vmem:[%s11555_s3 + $0xde0] ss:$8 sps:$4 sm:$0xff]   ;;  %v8737_v63 = vld [vmem:[%s11555_s3 + $0xdd4] ss:$8 sps:$4 sm:$0xff]  }
 0x252   :  { %6474 = vmatprep.subr.bf16.mxu1 %v8710_v51  ;;  %v10856_v51 = vpop.f32.mrf.mxu1 }
 0x253   :  { %6534 = vmatpush1.bf16.msra.mxu0 %v8711_v40  ;;  %v10861_v40 = vpop.f32.mrf.mxu0 }
 0x254   :  { %6535 = vmatprep.subr.bf16.mxu0 %v8719_v45  ;;  %v8726_v45 = vld [vmem:[%s11555_s3 + $0xc10] ss:$8 sps:$4 sm:$0xff]  }
 0x255   :  { %6475 = vmatpush1.bf16.msra.mxu1 %v8708_v56  ;;  %v8734_v56 = vld [vmem:[%s11555_s3 + $0xc04] ss:$8 sps:$4 sm:$0xff]  }
 0x256   :  { %6476 = vmatprep.subr.bf16.mxu1 %v8716_v25  ;;  %v10869_v25 = vpop.f32.mrf.mxu0 }
 0x257   :  { %6536 = vmatpush1.bf16.msra.mxu0 %v8717_v54  ;;  %v8735_v54 = vld [vmem:[%s11555_s3 + $0xdd0] ss:$8 sps:$4 sm:$0xff]  }
 0x258   :  { %6537 = vmatprep.subr.bf16.mxu0 %v8725_v49  ;;  %v10874_v49 = vpop.f32.mrf.mxu1 }
 0x259   :  { %6477 = vmatpush1.bf16.msra.mxu1 %v8714_v14  ;;  %v8743_v14 = vld [vmem:[%s11555_s3 + $0xdc4] ss:$8 sps:$4 sm:$0xff]  }
 0x25a   :  { %6478 = vmatprep.subr.bf16.mxu1 %v8722_v47  ;;  %v8732_v47 = vld [vmem:[%s11555_s3 + $0xc00] ss:$8 sps:$4 sm:$0xff]  }
 0x25b   :  { %6538 = vmatpush2.bf16.msra.mxu0 %v8723_v43  ;;  %v8740_v43 = vld [vmem:[%s11555_s3 + $0xcf4] ss:$8 sps:$4 sm:$0xff]  }
 0x25c   :  { %6539 = vmatprep.subr.bf16.mxu0 %v8731_v7  ;;  %v10885_v7 = vpop.f32.mrf.mxu0 }
 0x25d   :  { %6479 = vmatpush1.bf16.msra.mxu1 %v8720_v57  ;;  %v8741_v57 = vld [vmem:[%s11555_s3 + $0xdc0] ss:$8 sps:$4 sm:$0xff]  }
 0x25e   :  { %6480 = vmatprep.subr.bf16.mxu1 %v8728_v19  ;;  %v10890_v19 = vpop.f32.mrf.mxu1 }
 0x25f   :  { %6540 = vmatpush2.bf16.msra.mxu0 %v8729_v10  ;;  %v8749_v10 = vld [vmem:[%s11555_s3 + $0xdb4] ss:$8 sps:$4 sm:$0xff]  }
 0x260   :  { %6541 = vmatprep.subr.bf16.mxu0 %v8737_v63  ;;  %v8738_v63 = vld [vmem:[%s11555_s3 + $0xcf0] ss:$8 sps:$4 sm:$0xff]  }
 0x261   :  { %6481 = vmatpush1.bf16.msra.mxu1 %v8726_v45  ;;  %v8746_v45 = vld [vmem:[%s11555_s3 + $0xce4] ss:$8 sps:$4 sm:$0xff]  }
 0x262   :  { %6482 = vmatprep.subr.bf16.mxu1 %v8734_v56  ;;  %v10901_v56 = vpop.f32.mrf.mxu0 }
 0x263   :  { %6542 = vmatpush2.bf16.msra.mxu0 %v8735_v54  ;;  %11614 = vst [vmem:[#allocation6_spill] sm:$0xff] %v10901_v56  ;;  %v8747_v54 = vld [vmem:[%s11555_s3 + $0xdb0] ss:$8 sps:$4 sm:$0xff]  }
 0x264   :  { %6543 = vmatprep.subr.bf16.mxu0 %v8743_v14  ;;  %v10906_v14 = vpop.f32.mrf.mxu1  ;;  %v10919_v0 = vpop.f32.mrf.mxu0 }
 0x265   :  { %6483 = vmatpush1.bf16.msra.mxu1 %v8732_v47  ;;  %v8755_v47 = vld [vmem:[%s11555_s3 + $0xda4] ss:$8 sps:$4 sm:$0xff]   ;;  %11615 = vst [vmem:[#allocation14_spill] sm:$0xff] %v10919_v0 }
 0x266   :  { %6484 = vmatprep.subr.bf16.mxu1 %v8740_v43  ;;  %v8744_v43 = vld [vmem:[%s11555_s3 + $0xce0] ss:$8 sps:$4 sm:$0xff]   ;;  %v10914_v31 = vpop.f32.mrf.mxu1  ;;  %v10941_v2 = vpop.f32.mrf.mxu0 }
 0x267   :  { %6544 = vmatpush2.bf16.msra.mxu0 %v8741_v57  ;;  %v8752_v57 = vld [vmem:[%s11555_s3 + $0xcd4] ss:$8 sps:$4 sm:$0xff]   ;;  %11617 = vst [vmem:[#allocation15_spill] sm:$0xff] %v10941_v2 }
 0x268   :  { %6545 = vmatprep.subr.bf16.mxu0 %v8749_v10  ;;  %v8753_v10 = vld [vmem:[%s11555_s3 + $0xda0] ss:$8 sps:$4 sm:$0xff]   ;;  %v10933_v28 = vpop.f32.mrf.mxu1  ;;  %v10962_v2 = vpop.f32.mrf.mxu0 }
 0x269   :  { %6485 = vmatpush2.bf16.msra.mxu1 %v8738_v63  ;;  %v8761_v63 = vld [vmem:[%s11555_s3 + $0xd94] ss:$8 sps:$4 sm:$0xff]   ;;  %11619 = vst [vmem:[#allocation16_spill] sm:$0xff] %v10962_v2 }
 0x26a   :  { %6486 = vmatprep.subr.bf16.mxu1 %v8746_v45  ;;  %v1237_v45 = vld [vmem:[%s11557_s4] sm:$0x3]  ;;  %v10955_v29 = vpop.f32.mrf.mxu1 }
 0x26b   :  { %6546 = vmatpush2.bf16.msra.mxu0 %v8747_v54  ;;  %v8758_v54 = vld [vmem:[%s11555_s3 + $0xcc4] ss:$8 sps:$4 sm:$0xff]   ;;  %v10939_v27 = vrot.slane %v1237_v45, %v11616_v41  ;;  %v10950_v48 = vrot.slane %v1237_v45, %v11618_v16  ;;  %v8756_v41 = vld [vmem:[%s11555_s3 + $0xcc0] ss:$8 sps:$4 sm:$0xff]  }
 0x26c   :  { %6547 = vmatprep.subr.bf16.mxu0 %v8755_v47  ;;  %v7760_v47 = vld.sshfl [vmem:[#allocation3 + $0x58] sm:$0x5a pattern:$0x76325410]  ;;  %v10979_v56 = vpop.f32.mrf.mxu1 }
 0x26d   :  { %6487 = vmatpush2.bf16.msra.mxu1 %v8744_v43  ;;  %v8759_v43 = vld [vmem:[%s11555_s3 + $0xd90] ss:$8 sps:$4 sm:$0xff]   ;;  %v5474_v35 = vcombine.high %v7760_v47, %v7760_v47  ;;  %v1930_v45 = vadd.f32 %v10706_v6, %v10939_v27  ;;  %v1924_v16 = vadd.f32 %v10650_v52, %v10950_v48  ;;  %v1928_v0 = vadd.f32 %v10684_v42, %v10950_v48  ;;  %v8770_v6 = vld [vmem:[%s11555_s3 + $0xca4] ss:$8 sps:$4 sm:$0xff]   ;;  %v10985_v52 = vpop.f32.mrf.mxu0 }
 0x26e   :  { %6488 = vmatprep.subr.bf16.mxu1 %v8752_v57  ;;  %v8767_v57 = vld [vmem:[%s11555_s3 + $0xd84] ss:$8 sps:$4 sm:$0xff]  }
 0x26f   :  { %6548 = vmatpush2.bf16.msra.mxu0 %v8753_v10  ;;  %v8764_v10 = vld [vmem:[%s11555_s3 + $0xcb4] ss:$8 sps:$4 sm:$0xff]   ;;  %v5505_v2 = vrot.slane %v5474_v35, 7  ;;  %v1983_v35 = vadd.f32 %v10655_v15, %v1930_v45  ;;  %v8779_v42 = vld [vmem:[%s11555_s3 + $0xf64] ss:$8 sps:$4 sm:$0xff]   ;;  %v11014_v11 = vpop.f32.mrf.mxu0 }
 0x270   :  { %6549 = vmatprep.subr.bf16.mxu0 %v8761_v63  ;;  %v1926_v63 = vadd.f32 %v10668_v4, %v10939_v27  ;;  %v8762_v4 = vld [vmem:[%s11555_s3 + $0xcb0] ss:$8 sps:$4 sm:$0xff]  }
 0x271   :  { %6489 = vmatpush2.bf16.msra.mxu1 %v8750_v37  ;;  %v8765_v37 = vld [vmem:[%s11555_s3 + $0xd80] ss:$8 sps:$4 sm:$0xff]   ;;  %v2036_v45 = vadd.f32 %v10840_v58, %v1983_v35 }
 0x272   :  { %6490 = vmatprep.subr.bf16.mxu1 %v8758_v54  ;;  %v8773_v54 = vld [vmem:[%s11555_s3 + $0xf74] ss:$8 sps:$4 sm:$0xff]  }
 0x273   :  { %6550 = vmatpush2.bf16.msra.mxu0 %v8759_v43  ;;  %v7768_v43 = vrot.slane %v7760_v47, 9  ;;  %v1936_v47 = vadd.f32 %v10732_v38, %v10939_v27 }
 0x274   :  { %6551 = vmatprep.subr.bf16.mxu0 %v8767_v57  ;;  %v1979_v57 = vadd.f32 %v10625_v60, %v1926_v63  ;;  %v8768_v63 = vld [vmem:[%s11555_s3 + $0xca0] ss:$8 sps:$4 sm:$0xff]  }
 0x275   :  { %6491 = vmatpush2.bf16.msra.mxu1 %v8756_v41  ;;  %v8771_v41 = vld [vmem:[%s11555_s3 + $0xf70] ss:$8 sps:$4 sm:$0xff]   ;;  %v5506_v15 = vsel %vm9386_vm5, %v7768_v43, %v5505_v2  ;;  %v8777_v2 = vld [vmem:[%s11555_s3 + $0xf60] ss:$8 sps:$4 sm:$0xff]  }
 0x276   :  { %6492 = vmatprep.subr.bf16.mxu1 %v8764_v10  ;;  %v1977_v10 = vadd.f32 %v10611_v55, %v1924_v16  ;;  %v2032_v60 = vadd.f32 %v10807_v18, %v1979_v57  ;;  %v8776_v16 = vld [vmem:[%s11555_s3 + $0xc94] ss:$8 sps:$4 sm:$0xff]   ;;  %v1934_v55 = vadd.f32 %v10714_v17, %v10950_v48  ;;  %v5638_v17 = vcombine.low %v9868_v23, %v5506_v15  ;;  %v8782_v23 = vld [vmem:[%s11555_s3 + $0xc84] ss:$8 sps:$4 sm:$0xff]  }
 0x277   :  { %6552 = vmatpush2.bf16.msra.mxu0 %v8765_v37  ;;  %v1981_v37 = vadd.f32 %v10639_v59, %v1928_v0  ;;  %v5637_v59 = vcombine.low %v9889_v36, %v9854_v24  ;;  %v3240_v15 = vadd.f32 %v10914_v31, %v10950_v48  ;;  %v8797_v31 = vld [vmem:[%s11555_s3 + $0xf34] ss:$8 sps:$4 sm:$0xff]  }
 0x278   :  { %6627 = vmatprep.subr.bf16.mxu0 %v8773_v54  ;;  %v11005_v54 = vpop.f32.mrf.mxu1  ;;  %v2030_v38 = vadd.f32 %v10789_v9, %v1977_v10  ;;  %v1989_v9 = vadd.f32 %v10679_v44, %v1936_v47  ;;  %v2085_v18 = vadd.f32 %v10749_v22, %v2032_v60  ;;  %v1987_v36 = vadd.f32 %v10663_v21, %v1934_v55 }
 0x279   :  { %6493 = vmatpush2.bf16.msra.mxu1 %v8762_v4  ;;  %v2034_v0 = vadd.f32 %v10824_v33, %v1981_v37  ;;  %v8774_v33 = vld [vmem:[%s11555_s3 + $0xc90] ss:$8 sps:$4 sm:$0xff]   ;;  %v11037_v4 = vadd.f32 %v10794_v32, %v2036_v45  ;;  %v1938_v32 = vadd.f32 %v10754_v50, %v10950_v48  ;;  %v11059_v21 = vrot.slane %v5638_v17, %v9207_v61  ;;  %v8789_v37 = vld [vmem:[%s11555_s3 + $0xf40] ss:$8 sps:$4 sm:$0xff]  }
 0x27a   :  { %6494 = vmatprep.subr.bf16.mxu1 %v8770_v6  ;;  %6554 = vmatmul.mubr.bf16.vlgmr.msra.gmra.mxu0 %v10508_v46  ;;  %v8785_v46 = vld [vmem:[%s11555_s3 + $0xf54] ss:$8 sps:$4 sm:$0xff]   ;;  %v11031_v58 = vpop.f32.mrf.mxu0  ;;  %v11039_v24 = vpop.f32.mrf.mxu1  ;;  %v2083_v44 = vadd.f32 %v10727_v26, %v2030_v38  ;;  %v2042_v22 = vadd.f32 %v10874_v49, %v1989_v9  ;;  %v11056_v6 = vrot.slane %v5637_v59, %v9207_v61  ;;  %v8791_v26 = vld [vmem:[%s11555_s3 + $0xf44] ss:$8 sps:$4 sm:$0xff]   ;;  %v8786_v38 = vld [vmem:[%s11555_s3 + $0xe70] ss:$8 sps:$4 sm:$0xff]  }
 0x27b   :  { %6563 = vmatprep.mubr.bf16.mxu0 %v10513_v20  ;;  %6628 = vmatpush1.bf16.msra.mxu0 %v8771_v41  ;;  %v1940_v20 = vadd.f32 %v10775_v8, %v10939_v27  ;;  %v8783_v8 = vld [vmem:[%s11555_s3 + $0xf50] ss:$8 sps:$4 sm:$0xff]   ;;  %v11053_v43 = vadd.f32 %v10769_v53, %v2034_v0  ;;  %v7433_v41 = vcombine.low %v2085_v18, %v2085_v18  ;;  %v8780_v53 = vld [vmem:[%s11555_s3 + $0xc80] ss:$8 sps:$4 sm:$0xff]  }
 0x27c   :  { %6629 = vmatprep.subr.bf16.mxu0 %v8779_v42  ;;  %v2109_v57 = vcombine.low %v2083_v44, %v2085_v18  ;;  %v2040_v50 = vadd.f32 %v10856_v51, %v1987_v36  ;;  %v11066_v35 = vpop.f32.mrf.mxu0  ;;  %v2110_v42 = vcombine.high %v2083_v44, %v2085_v18  ;;  %v7434_v47 = vcombine.high %v2085_v18, %v2085_v18  ;;  %v11073_v60 = vpop.f32.mrf.mxu1  ;;  %v8795_v18 = vld [vmem:[%s11555_s3 + $0xf30] ss:$8 sps:$4 sm:$0xff]   ;;  %v8803_v36 = vld [vmem:[%s11555_s3 + $0xf24] ss:$8 sps:$4 sm:$0xff]  }
 0x27d   :  { %6495 = vmatpush2.bf16.msra.mxu1 %v8768_v63  ;;  %v1993_v49 = vadd.f32 %v10719_v39, %v1940_v20  ;;  %v2111_v10 = vcombine.low %v11053_v43, %v11037_v4  ;;  %v8788_v39 = vld [vmem:[%s11555_s3 + $0xe74] ss:$8 sps:$4 sm:$0xff]   ;;  %v7435_v51 = vcombine.low %v11037_v4, %v11037_v4  ;;  %v2095_v63 = vadd.f32 %v10829_v13, %v2042_v22 }
 0x27e   :  { %6496 = vmatprep.subr.bf16.mxu1 %v8776_v16  ;;  %v5635_v45 = vcombine.low %v10781_v1, %v10784_v62  ;;  %v5654_v16 = vcombine.high %v11056_v6, %v11059_v21  ;;  %v11098_v13 = vpack.c.bf16 %v7433_v41, %v2109_v57  ;;  %v2093_v55 = vadd.f32 %v10813_v5, %v2040_v50  ;;  %v11104_v62 = vpop.f32.mrf.mxu0 }
 0x27f   :  { %6630 = vmatpush1.bf16.msra.mxu0 %v8777_v2  ;;  %v3242_v1 = vadd.f32 %v10933_v28, %v10939_v27  ;;  %v11109_v2 = vpack.c.bf16 %v7434_v47, %v2110_v42  ;;  %v2112_v0 = vcombine.high %v11053_v43, %v11037_v4  ;;  %v7436_v5 = vcombine.high %v11037_v4, %v11037_v4  ;;  %v8794_v28 = vld [vmem:[%s11555_s3 + $0xe64] ss:$8 sps:$4 sm:$0xff]  }
 0x280   :  { %6631 = vmatprep.subr.bf16.mxu0 %v8785_v46  ;;  %v11116_v46 = vpop.f32.mrf.mxu1  ;;  %v11121_v59 = vpack.c.bf16 %v7435_v51, %v2111_v10  ;;  %v2113_v17 = vcombine.low %v2093_v55, %v2095_v63  ;;  %v2114_v9 = vcombine.high %v2093_v55, %v2095_v63  ;;  %v3293_v20 = vadd.f32 %v10869_v25, %v3240_v15  ;;  %v11135_v25 = vpop.f32.mrf.mxu0  ;;  %v11620_v10 = vld [vmem:[#allocation6_spill] sm:$0xff] }
 0x281   :  { %6497 = vmatpush2.bf16.msra.mxu1 %v8774_v33  ;;  %v7437_v33 = vcombine.low %v2095_v63, %v2095_v63  ;;  %v3244_v4 = vadd.f32 %v10955_v29, %v10950_v48  ;;  %v8792_v29 = vld [vmem:[%s11555_s3 + $0xe60] ss:$8 sps:$4 sm:$0xff]   ;;  %v3562_v43 = vrot.slane %v11109_v2, %v9207_v61  ;;  %v11154_v41 = vpack.c.bf16 %v7436_v5, %v2112_v0  ;;  %v11621_v55 = vld [vmem:[#allocation14_spill] sm:$0xff] }
 0x282   :  { %6498 = vmatprep.subr.bf16.mxu1 %v8782_v23  ;;  %6564 = vmatmul.mubr.bf16.gmra.mxu0 %v10538_v12  ;;  %v1991_v12 = vadd.f32 %v10698_v34, %v1938_v32  ;;  %v2046_v34 = vadd.f32 %v10906_v14, %v1993_v49  ;;  %v3545_v32 = vrot.slane %v11098_v13, %v9207_v61  ;;  %v8818_v13 = vld [vmem:[%s11555_s3 + $0xe24] ss:$8 sps:$4 sm:$0xff]  }
 0x283   :  { %6632 = vmatpush1.bf16.msra.mxu0 %v8783_v8  ;;  %6659 = vmatprep.mubr.bf16.mxu0 %v9795_v3  ;;  %v5653_v3 = vcombine.low %v11056_v6, %v11059_v21  ;;  %v3295_v8 = vadd.f32 %v10885_v7, %v3242_v1  ;;  %v8800_v7 = vld [vmem:[%s11555_s3 + $0xe54] ss:$8 sps:$4 sm:$0xff]   ;;  %v3579_v57 = vrot.slane %v11121_v59, %v9207_v61  ;;  %v8804_v6 = vld [vmem:[%s11555_s3 + $0xe40] ss:$8 sps:$4 sm:$0xff]  }
 0x284   :  { %6633 = vmatprep.subr.bf16.mxu0 %v8791_v26  ;;  %v2044_v14 = vadd.f32 %v10890_v19, %v1991_v12  ;;  %v7438_v19 = vcombine.high %v2095_v63, %v2095_v63  ;;  %v11133_v44 = vadd.f32 %v10861_v40, %v2046_v34  ;;  %v3246_v40 = vadd.f32 %v10979_v56, %v10939_v27  ;;  %v8801_v56 = vld [vmem:[%s11555_s3 + $0xf20] ss:$8 sps:$4 sm:$0xff]  }
 0x285   :  { %6499 = vmatpush2.bf16.msra.mxu1 %v8780_v53  ;;  %v3250_v26 = vadd.f32 %v11005_v54, %v10950_v48  ;;  %v11162_v54 = vpack.c.bf16 %v7437_v33, %v2113_v17  ;;  %v3252_v47 = vadd.f32 %v11039_v24, %v10939_v27  ;;  %v8798_v24 = vld [vmem:[%s11555_s3 + $0xe50] ss:$8 sps:$4 sm:$0xff]   ;;  %v8815_v33 = vld [vmem:[%s11555_s3 + $0xf04] ss:$8 sps:$4 sm:$0xff]  }
 0x286   :  { %6574 = vmatprep.subr.bf16.mxu1 %v8788_v39  ;;  %v11157_v50 = vadd.f32 %v10845_v30, %v2044_v14  ;;  %v11164_v42 = vpack.c.bf16 %v7438_v19, %v2114_v9  ;;  %v3297_v39 = vadd.f32 %v11620_v10, %v3244_v4  ;;  %v8809_v30 = vld [vmem:[%s11555_s3 + $0xf14] ss:$8 sps:$4 sm:$0xff]   ;;  %v3299_v34 = vadd.f32 %v11621_v55, %v3246_v40 }
 0x287   :  { %6634 = vmatpush1.bf16.msra.mxu0 %v8789_v37  ;;  %v3408_v37 = vpop.f32.mrf.mxu0  ;;  %v7440_v21 = vcombine.high %v11133_v44, %v11133_v44 }
 0x288   :  { %v3345_v23 = vpop.f32.mrf.mxu1  ;;  %6501 = vmatmul.mubr.bf16.vlgmr.msra.gmra.mxu1 %v5635_v45  ;;  %6635 = vmatprep.subr.bf16.mxu0 %v8797_v31  ;;  %v2115_v63 = vcombine.low %v11157_v50, %v11133_v44  ;;  %v2116_v15 = vcombine.high %v11157_v50, %v11133_v44 }
 0x289   :  { %v3346_v22 = vadd.f32 %v3345_v23, %v3293_v20  ;;  %6510 = vmatprep.mubr.bf16.mxu1 %v5654_v16  ;;  %6575 = vmatpush1.bf16.msra.mxu1 %v8786_v38  ;;  %v3254_v16 = vadd.f32 %v11073_v60, %v10950_v48  ;;  %v11622_v38 = vld [vmem:[#allocation15_spill] sm:$0xff]  ;;  %v7439_v60 = vcombine.low %v11133_v44, %v11133_v44  ;;  %v11623_v20 = vld [vmem:[#allocation16_spill] sm:$0xff]  ;;  %v3410_v19 = vpop.f32.mrf.mxu0 }
 0x28a   :  { %v3347_v49 = vpop.f32.mrf.mxu1  ;;  %6576 = vmatprep.subr.bf16.mxu1 %v8794_v28  ;;  %v3303_v0 = vadd.f32 %v11622_v38, %v3250_v26  ;;  %v8807_v48 = vld [vmem:[%s11555_s3 + $0xf10] ss:$8 sps:$4 sm:$0xff]   ;;  %v7463_v59 = vpack.c.bf16 %v7440_v21, %v2116_v15 }
 0x28b   :  { %v3348_v53 = vadd.f32 %v3347_v49, %v3295_v8  ;;  %6636 = vmatpush1.bf16.msra.mxu0 %v8795_v18  ;;  %v3399_v12 = vadd.f32 %v11031_v58, %v3346_v22  ;;  %v8806_v58 = vld [vmem:[%s11555_s3 + $0xe44] ss:$8 sps:$4 sm:$0xff]   ;;  %v3305_v18 = vadd.f32 %v11623_v20, %v3252_v47  ;;  %v11624_v22 = vld [vmem:[#allocation11_spill] sm:$0xff]  ;;  %v11625_v8 = vld [vmem:[#allocation10_spill] sm:$0xff]  ;;  %v3307_v10 = vadd.f32 %v10985_v52, %v3254_v16 }
 0x28c   :  { %v3349_v51 = vpop.f32.mrf.mxu1  ;;  %6637 = vmatprep.subr.bf16.mxu0 %v8803_v36 }
 0x28d   :  { %v3401_v45 = vadd.f32 %v11066_v35, %v3348_v53  ;;  %6577 = vmatpush1.bf16.msra.mxu1 %v8792_v29  ;;  %v3350_v31 = vadd.f32 %v3349_v51, %v3297_v39  ;;  %v11626_v29 = vcombine.high %v11624_v22, %v11625_v8 }
 0x28e   :  { %v3351_v1 = vpop.f32.mrf.mxu1  ;;  %6578 = vmatprep.subr.bf16.mxu1 %v8800_v7  ;;  %v8812_v7 = vld [vmem:[%s11555_s3 + $0xe34] ss:$8 sps:$4 sm:$0xff]  }
 0x28f   :  { %v3425_v35 = vcombine.low %v3399_v12, %v3401_v45  ;;  %v3426_v5 = vcombine.high %v3399_v12, %v3401_v45  ;;  %v7441_v14 = vcombine.low %v3401_v45, %v3401_v45  ;;  %v7442_v28 = vcombine.high %v3401_v45, %v3401_v45  ;;  %6638 = vmatpush1.bf16.msra.mxu0 %v8801_v56  ;;  %v3412_v45 = vpop.f32.mrf.mxu0 }
 0x290   :  { %v3352_v17 = vadd.f32 %v3351_v1, %v3299_v34  ;;  %v3355_v9 = vpop.f32.mrf.mxu1  ;;  %6511 = vmatmul.mubr.bf16.gmra.mxu1 %v5653_v3  ;;  %6639 = vmatprep.subr.bf16.mxu0 %v8809_v30  ;;  %v3256_v3 = vadd.f32 %v11116_v46, %v10939_v27  ;;  %v3403_v40 = vadd.f32 %v11104_v62, %v3350_v31  ;;  %v8813_v27 = vld [vmem:[%s11555_s3 + $0xf00] ss:$8 sps:$4 sm:$0xff]   ;;  %v8821_v30 = vld [vmem:[%s11555_s3 + $0xff4] ss:$8 sps:$4 sm:$0xff]   ;;  %v8810_v31 = vld [vmem:[%s11555_s3 + $0xe30] ss:$8 sps:$4 sm:$0xff]  }
 0x291   :  { %v7450_v4 = vpack.c.bf16 %v7441_v14, %v3425_v35  ;;  %v7452_v23 = vpack.c.bf16 %v7442_v28, %v3426_v5  ;;  %v3356_v36 = vadd.f32 %v3355_v9, %v3303_v0  ;;  %6579 = vmatpush1.bf16.msra.mxu1 %v8798_v24  ;;  %6606 = vmatprep.mubr.bf16.mxu1 %v11626_v29  ;;  %v8827_v28 = vld [vmem:[%s11555_s3 + $0xfe4] ss:$8 sps:$4 sm:$0xff]   ;;  %v3414_v9 = vpop.f32.mrf.mxu0  ;;  %v8825_v29 = vld [vmem:[%s11555_s3 + $0xfe0] ss:$8 sps:$4 sm:$0xff]  }
 0x292   :  { %v3405_v26 = vadd.f32 %v11135_v25, %v3352_v17  ;;  %v3357_v49 = vpop.f32.mrf.mxu1  ;;  %6580 = vmatprep.subr.bf16.mxu1 %v8806_v58  ;;  %v3309_v38 = vadd.f32 %v11014_v11, %v3256_v3  ;;  %v8819_v11 = vld [vmem:[%s11555_s3 + $0xff0] ss:$8 sps:$4 sm:$0xff]   ;;  %v3596_v58 = vrot.slane %v11154_v41, %v9207_v61  ;;  %v3630_v17 = vrot.slane %v11164_v42, %v9207_v61  ;;  %v8816_v41 = vld [vmem:[%s11555_s3 + $0xe20] ss:$8 sps:$4 sm:$0xff]  }
 0x293   :  { %v3552_v53 = vrot.slane %v7450_v4, %v9207_v61  ;;  %v3569_v56 = vrot.slane %v7452_v23, %v9207_v61  ;;  %v3358_v47 = vadd.f32 %v3357_v49, %v3305_v18  ;;  %6640 = vmatpush1.bf16.msra.mxu0 %v8807_v48  ;;  %v3409_v24 = vadd.f32 %v3408_v37, %v3356_v36  ;;  %v8822_v3 = vld [vmem:[%s11555_s3 + $0xe10] ss:$8 sps:$4 sm:$0xff]   ;;  %v8830_v49 = vld [vmem:[%s11555_s3 + $0xe04] ss:$8 sps:$4 sm:$0xff]  }
 0x294   :  { %v3427_v62 = vcombine.low %v3403_v40, %v3405_v26  ;;  %v3428_v46 = vcombine.high %v3403_v40, %v3405_v26  ;;  %v7443_v25 = vcombine.low %v3405_v26, %v3405_v26  ;;  %v7444_v39 = vcombine.high %v3405_v26, %v3405_v26  ;;  %v3359_v51 = vpop.f32.mrf.mxu1  ;;  %6641 = vmatprep.subr.bf16.mxu0 %v8815_v33 }
 0x295   :  { %v3553_v12 = vcombine.low %v3545_v32, %v3552_v53  ;;  %v3570_v52 = vcombine.low %v3562_v43, %v3569_v56  ;;  %v3411_v16 = vadd.f32 %v3410_v19, %v3358_v47  ;;  %6581 = vmatpush1.bf16.msra.mxu1 %v8804_v6  ;;  %v3360_v1 = vadd.f32 %v3359_v51, %v3307_v10  ;;  %v8837_v51 = vld [vmem:[%s11555_s3 + $0xfc0] ss:$8 sps:$4 sm:$0xff]  }
 0x296   :  { %v7454_v55 = vpack.c.bf16 %v7443_v25, %v3427_v62  ;;  %v7456_v34 = vpack.c.bf16 %v7444_v39, %v3428_v46  ;;  %v3361_v0 = vpop.f32.mrf.mxu1  ;;  %6582 = vmatprep.subr.bf16.mxu1 %v8812_v7  ;;  %v3613_v48 = vrot.slane %v11162_v54, %v9207_v61  ;;  %v8824_v54 = vld [vmem:[%s11555_s3 + $0xe14] ss:$8 sps:$4 sm:$0xff]   ;;  %v7461_v42 = vpack.c.bf16 %v7439_v60, %v2115_v63  ;;  %v8831_v7 = vld [vmem:[%s11555_s3 + $0xfd0] ss:$8 sps:$4 sm:$0xff]   ;;  %v8828_v62 = vld [vmem:[%s11555_s3 + $0xe00] ss:$8 sps:$4 sm:$0xff]  }
 0x297   :  { %3681 = vst [vmem:[%s11558_s5] sm:$0xff] %v3553_v12  ;;  %3682 = vst [vmem:[%s11558_s5 + $0x10] sm:$0xff] %v3570_v52  ;;  %v3429_v2 = vcombine.low %v3409_v24, %v3411_v16  ;;  %v3430_v32 = vcombine.high %v3409_v24, %v3411_v16  ;;  %v7445_v43 = vcombine.low %v3411_v16, %v3411_v16  ;;  %6642 = vmatpush1.bf16.msra.mxu0 %v8813_v27  ;;  %v8833_v60 = vld [vmem:[%s11555_s3 + $0xfd4] ss:$8 sps:$4 sm:$0xff]   ;;  %v8839_v27 = vld [vmem:[%s11555_s3 + $0xfc4] ss:$8 sps:$4 sm:$0xff]  }
 0x298   :  { %v7446_v37 = vcombine.high %v3411_v16, %v3411_v16  ;;  %v3586_v35 = vrot.slane %v7454_v55, %v9207_v61  ;;  %v3603_v5 = vrot.slane %v7456_v34, %v9207_v61  ;;  %v3362_v14 = vadd.f32 %v3361_v0, %v3309_v38  ;;  %6643 = vmatprep.subr.bf16.mxu0 %v8821_v30  ;;  %v8836_v39 = vld [vmem:[%s11555_s3 + $0xef4] ss:$8 sps:$4 sm:$0xff]   ;;  %v8834_v12 = vld [vmem:[%s11555_s3 + $0xef0] ss:$8 sps:$4 sm:$0xff]   ;;  %v8842_v52 = vld [vmem:[%s11555_s3 + $0xee4] ss:$8 sps:$4 sm:$0xff]  }
 0x299   :  { %v7458_v20 = vpack.c.bf16 %v7445_v43, %v3429_v2  ;;  %6583 = vmatpush1.bf16.msra.mxu1 %v8810_v31  ;;  %v3413_v4 = vadd.f32 %v3412_v45, %v3360_v1  ;;  %v3647_v53 = vrot.slane %v7461_v42, %v9207_v61  ;;  %v3664_v56 = vrot.slane %v7463_v59, %v9207_v61  ;;  %v8845_v30 = vld [vmem:[%s11555_s3 + $0xfb4] ss:$8 sps:$4 sm:$0xff]   ;;  %v8843_v45 = vld [vmem:[%s11555_s3 + $0xfb0] ss:$8 sps:$4 sm:$0xff]   ;;  %v8851_v24 = vld [vmem:[%s11555_s3 + $0xfa4] ss:$8 sps:$4 sm:$0xff]  }
 0x29a   :  { %v7460_v18 = vpack.c.bf16 %v7446_v37, %v3430_v32  ;;  %v3587_v33 = vcombine.low %v3579_v57, %v3586_v35  ;;  %v3604_v19 = vcombine.low %v3596_v58, %v3603_v5  ;;  %v3415_v23 = vadd.f32 %v3414_v9, %v3362_v14  ;;  %6584 = vmatprep.subr.bf16.mxu1 %v8818_v13  ;;  %v8840_v16 = vld [vmem:[%s11555_s3 + $0xee0] ss:$8 sps:$4 sm:$0xff]   ;;  %v8848_v31 = vld [vmem:[%s11555_s3 + $0xed4] ss:$8 sps:$4 sm:$0xff]   ;;  %v8846_v1 = vld [vmem:[%s11555_s3 + $0xed0] ss:$8 sps:$4 sm:$0xff]  }
 0x29b   :  { %v3620_v57 = vrot.slane %v7458_v20, %v9207_v61  ;;  %6644 = vmatpush2.bf16.msra.mxu0 %v8819_v11  ;;  %v8849_v55 = vld [vmem:[%s11555_s3 + $0xfa0] ss:$8 sps:$4 sm:$0xff]   ;;  %v8857_v34 = vld [vmem:[%s11555_s3 + $0xf94] ss:$8 sps:$4 sm:$0xff]   ;;  %v8854_v38 = vld [vmem:[%s11555_s3 + $0xec4] ss:$8 sps:$4 sm:$0xff]   ;;  %v11630_v20 = vcombine.low %v11624_v22, %v11625_v8 }
 0x29c   :  { %v3637_v36 = vrot.slane %v7460_v18, %v9207_v61  ;;  %3683 = vst [vmem:[%s11558_s5 + $0x20] sm:$0xff] %v3587_v33  ;;  %3684 = vst [vmem:[%s11558_s5 + $0x30] sm:$0xff] %v3604_v19  ;;  %v3431_v50 = vcombine.low %v3413_v4, %v3415_v23  ;;  %v3432_v44 = vcombine.high %v3413_v4, %v3415_v23  ;;  %6645 = vmatprep.subr.bf16.mxu0 %v8827_v28  ;;  %v8855_v0 = vld [vmem:[%s11555_s3 + $0xf90] ss:$8 sps:$4 sm:$0xff]   ;;  %v8863_v13 = vld [vmem:[%s11555_s3 + $0xf84] ss:$8 sps:$4 sm:$0xff]  }
 0x29d   :  { %v7447_v63 = vcombine.low %v3415_v23, %v3415_v23  ;;  %v7448_v15 = vcombine.high %v3415_v23, %v3415_v23  ;;  %v3621_v6 = vcombine.low %v3613_v48, %v3620_v57  ;;  %6585 = vmatpush1.bf16.msra.mxu1 %v8816_v41  ;;  %v8852_v2 = vld [vmem:[%s11555_s3 + $0xec0] ss:$8 sps:$4 sm:$0xff]   ;;  %v8860_v32 = vld [vmem:[%s11555_s3 + $0xeb4] ss:$8 sps:$4 sm:$0xff]   ;;  %v8858_v37 = vld [vmem:[%s11555_s3 + $0xeb0] ss:$8 sps:$4 sm:$0xff]  }
 0x29e   :  { %v3638_v21 = vcombine.low %v3630_v17, %v3637_v36  ;;  %6586 = vmatprep.subr.bf16.mxu1 %v8824_v54  ;;  %v8861_v43 = vld [vmem:[%s11555_s3 + $0xf80] ss:$8 sps:$4 sm:$0xff]   ;;  %v8866_v11 = vld [vmem:[%s11555_s3 + $0xea4] ss:$8 sps:$4 sm:$0xff]   ;;  %v11627_v35 = vld [vmem:[#allocation7_spill] sm:$0xff] }
 0x29f   :  { %v7462_v40 = vpack.c.bf16 %v7447_v63, %v3431_v50  ;;  %v7464_v26 = vpack.c.bf16 %v7448_v15, %v3432_v44  ;;  %3685 = vst [vmem:[%s11558_s5 + $0x40] sm:$0xff] %v3621_v6  ;;  %6646 = vmatpush2.bf16.msra.mxu0 %v8825_v29  ;;  %v8864_v58 = vld [vmem:[%s11555_s3 + $0xea0] ss:$8 sps:$4 sm:$0xff]   ;;  %v8869_v5 = vld [vmem:[%s11555_s3 + $0xe94] ss:$8 sps:$4 sm:$0xff]  }
 0x2a0   :  { %3686 = vst [vmem:[%s11558_s5 + $0x50] sm:$0xff] %v3638_v21  ;;  %6647 = vmatprep.subr.bf16.mxu0 %v8833_v60  ;;  %v11628_v14 = vld [vmem:[#allocation8_spill] sm:$0xff]  ;;  %v8867_v28 = vld [vmem:[%s11555_s3 + $0xe90] ss:$8 sps:$4 sm:$0xff]   ;;  %v11629_v9 = vld [vmem:[#allocation9_spill] sm:$0xff] }
 0x2a1   :  { %v3654_v47 = vrot.slane %v7462_v40, %v9207_v61  ;;  %v3671_v10 = vrot.slane %v7464_v26, %v9207_v61  ;;  %6587 = vmatpush1.bf16.msra.mxu1 %v8822_v3  ;;  %v8872_v48 = vld [vmem:[%s11555_s3 + $0xe84] ss:$8 sps:$4 sm:$0xff]   ;;  %v8870_v17 = vld [vmem:[%s11555_s3 + $0xe80] ss:$8 sps:$4 sm:$0xff]  }
 0x2a2   :  { %6588 = vmatprep.subr.bf16.mxu1 %v8830_v49  ;;  %v11631_v18 = vld [vmem:[#allocation13_spill] sm:$0xff]  ;;  %v11632_v41 = vld [vmem:[#allocation12_spill] sm:$0xff] }
 0x2a3   :  { %v3655_v46 = vcombine.low %v3647_v53, %v3654_v47  ;;  %v3672_v25 = vcombine.low %v3664_v56, %v3671_v10  ;;  %6648 = vmatpush2.bf16.msra.mxu0 %v8831_v7  ;;  %v11633_v33 = vcombine.high %v11631_v18, %v11632_v41  ;;  %v11634_v19 = vcombine.low %v11631_v18, %v11632_v41 }
 0x2a4   :  { %6649 = vmatprep.subr.bf16.mxu0 %v8839_v27 }
 0x2a5   :  { %3687 = vst [vmem:[%s11558_s5 + $0x60] sm:$0xff] %v3655_v46  ;;  %3688 = vst [vmem:[%s11558_s5 + $0x70] sm:$0xff] %v3672_v25  ;;  %6589 = vmatpush1.bf16.msra.mxu1 %v8828_v62 }
 0x2a6   :  { %6590 = vmatprep.subr.bf16.mxu1 %v8836_v39 }
 0x2a7   :  { %6650 = vmatpush2.bf16.msra.mxu0 %v8837_v51 }
 0x2a8   :  { %6651 = vmatprep.subr.bf16.mxu0 %v8845_v30 }
 0x2a9   :  { %6591 = vmatpush2.bf16.msra.mxu1 %v8834_v12 }
 0x2aa   :  { %6592 = vmatprep.subr.bf16.mxu1 %v8842_v52 }
 0x2ab   :  { %6652 = vmatpush2.bf16.msra.mxu0 %v8843_v45 }
 0x2ac   :  { %6653 = vmatprep.subr.bf16.mxu0 %v8851_v24 }
 0x2ad   :  { %6593 = vmatpush2.bf16.msra.mxu1 %v8840_v16  ;;  %v4507_v16 = vld [vmem:[%s11557_s4] sm:$0x3] }
 0x2ae   :  { %6594 = vmatprep.subr.bf16.mxu1 %v8848_v31 }
 0x2af   :  { %6654 = vmatpush2.bf16.msra.mxu0 %v8849_v55  ;;  %v11635_v55 = vld [vmem:[#allocation5_spill] sm:$0xff] }
 0x2b0   :  { %6655 = vmatprep.subr.bf16.mxu0 %v8857_v34  ;;  %v11436_v34 = vrot.slane %v4507_v16, %v11635_v55 }
 0x2b1   :  { %6595 = vmatpush2.bf16.msra.mxu1 %v8846_v1 }
 0x2b2   :  { %6596 = vmatprep.subr.bf16.mxu1 %v8854_v38  ;;  %v11636_v38 = vld [vmem:[#allocation4_spill] sm:$0xff] }
 0x2b3   :  { %6656 = vmatpush2.bf16.msra.mxu0 %v8855_v0  ;;  %v11441_v0 = vrot.slane %v4507_v16, %v11636_v38 }
 0x2b4   :  { %6657 = vmatprep.subr.bf16.mxu0 %v8863_v13 }
 0x2b5   :  { %6597 = vmatpush2.bf16.msra.mxu1 %v8852_v2 }
 0x2b6   :  { %6598 = vmatprep.subr.bf16.mxu1 %v8860_v32 }
 0x2b7   :  { %6658 = vmatpush2.bf16.msra.mxu0 %v8861_v43 }
 0x2b9   :  { %6599 = vmatpush2.bf16.msra.mxu1 %v8858_v37 }
 0x2ba   :  { %6600 = vmatprep.subr.bf16.mxu1 %v8866_v11  ;;  %6660 = vmatmul.mubr.bf16.vlgmr.msra.gmra.mxu0 %v11627_v35  ;;  %v5246_v4 = vpop.f32.mrf.mxu0 }
 0x2bb   :  { %6669 = vmatprep.mubr.bf16.mxu0 %v11628_v14 }
 0x2bc   :  { %v5248_v23 = vpop.f32.mrf.mxu0 }
 0x2bd   :  { %6601 = vmatpush2.bf16.msra.mxu1 %v8864_v58 }
 0x2be   :  { %6602 = vmatprep.subr.bf16.mxu1 %v8869_v5  ;;  %v5250_v54 = vpop.f32.mrf.mxu0 }
 0x2c0   :  { %v5252_v59 = vpop.f32.mrf.mxu0 }
 0x2c1   :  { %6603 = vmatpush2.bf16.msra.mxu1 %v8867_v28 }
 0x2c2   :  { %6604 = vmatprep.subr.bf16.mxu1 %v8872_v48  ;;  %6670 = vmatmul.mubr.bf16.gmra.mxu0 %v11629_v9  ;;  %v5256_v36 = vpop.f32.mrf.mxu0 }
 0x2c4   :  { %v5258_v50 = vpop.f32.mrf.mxu0 }
 0x2c5   :  { %6605 = vmatpush2.bf16.msra.mxu1 %v8870_v17 }
 0x2c6   :  { %v11410_v22 = vpop.f32.mrf.mxu0 }
 0x2c8   :  { %6607 = vmatmul.mubr.bf16.vlgmr.msra.gmra.mxu1 %v11630_v20  ;;  %v5193_v42 = vpop.f32.mrf.mxu1  ;;  %v11412_v63 = vpop.f32.mrf.mxu0 }
 0x2c9   :  { %6616 = vmatprep.mubr.bf16.mxu1 %v11633_v33  ;;  %v5194_v43 = vadd.f32 %v5193_v42, %v11441_v0 }
 0x2ca   :  { %v5195_v57 = vpop.f32.mrf.mxu1 }
 0x2cb   :  { %v5196_v2 = vadd.f32 %v5195_v57, %v11436_v34  ;;  %v5247_v14 = vadd.f32 %v5246_v4, %v5194_v43 }
 0x2cc   :  { %v5197_v29 = vpop.f32.mrf.mxu1 }
 0x2cd   :  { %v5198_v58 = vadd.f32 %v5197_v29, %v11441_v0  ;;  %v5249_v35 = vadd.f32 %v5248_v23, %v5196_v2 }
 0x2ce   :  { %v5199_v44 = vpop.f32.mrf.mxu1 }
 0x2cf   :  { %v5200_v37 = vadd.f32 %v5199_v44, %v11436_v34  ;;  %v5251_v18 = vadd.f32 %v5250_v54, %v5198_v58 }
 0x2d0   :  { %6617 = vmatmul.mubr.bf16.gmra.mxu1 %v11634_v19  ;;  %v5203_v8 = vpop.f32.mrf.mxu1 }
 0x2d1   :  { %v5253_v48 = vadd.f32 %v5252_v59, %v5200_v37  ;;  %v5204_v19 = vadd.f32 %v5203_v8, %v11441_v0 }
 0x2d2   :  { %v5205_v60 = vpop.f32.mrf.mxu1 }
 0x2d3   :  { %v5206_v17 = vadd.f32 %v5205_v60, %v11436_v34  ;;  %v5257_v4 = vadd.f32 %v5256_v36, %v5204_v19 }
 0x2d4   :  { %v5207_v21 = vpop.f32.mrf.mxu1 }
 0x2d5   :  { %v5259_v29 = vadd.f32 %v5258_v50, %v5206_v17  ;;  %v5208_v59 = vadd.f32 %v5207_v21, %v11441_v0 }
 0x2d6   :  { %v5209_v40 = vpop.f32.mrf.mxu1 }
 0x2d7   :  { %v5210_v60 = vadd.f32 %v5209_v40, %v11436_v34  ;;  %v5261_v36 = vadd.f32 %v11410_v22, %v5208_v59 }
 0x2fa   :  { %v5352_v15 = vpop.f32.mrf.mxu0 }
 0x2fc   :  { %v5354_v6 = vpop.f32.mrf.mxu0 }
 0x2fe   :  { %v5356_v3 = vpop.f32.mrf.mxu0 }
 0x300   :  { %v5358_v49 = vpop.f32.mrf.mxu0 }
 0x302   :  { %v11414_v53 = vpop.f32.mrf.mxu0 }
 0x304   :  { %v5364_v47 = vpop.f32.mrf.mxu0 }
 0x306   :  { %v11416_v27 = vpop.f32.mrf.mxu0 }
 0x308   :  { %v5299_v26 = vpop.f32.mrf.mxu1  ;;  %v11418_v46 = vpop.f32.mrf.mxu0 }
 0x309   :  { %v5300_v20 = vadd.f32 %v5299_v26, %v5247_v14 }
 0x30a   :  { %v5301_v7 = vpop.f32.mrf.mxu1 }
 0x30b   :  { %v5302_v28 = vadd.f32 %v5301_v7, %v5249_v35  ;;  %v5353_v16 = vadd.f32 %v5352_v15, %v5300_v20 }
 0x30c   :  { %v5303_v56 = vpop.f32.mrf.mxu1 }
 0x30d   :  { %v5355_v42 = vadd.f32 %v5354_v6, %v5302_v28  ;;  %v5304_v57 = vadd.f32 %v5303_v56, %v5251_v18 }
 0x30e   :  { %v5305_v10 = vpop.f32.mrf.mxu1 }
 0x30f   :  { %v5306_v41 = vadd.f32 %v5305_v10, %v5253_v48  ;;  %v5379_v26 = vcombine.low %v5353_v16, %v5355_v42  ;;  %v5357_v54 = vadd.f32 %v5356_v3, %v5304_v57  ;;  %v5380_v38 = vcombine.high %v5353_v16, %v5355_v42 }
 0x310   :  { %v5309_v62 = vpop.f32.mrf.mxu1  ;;  %v8041_v2 = vcombine.low %v5355_v42, %v5355_v42  ;;  %v8042_v43 = vcombine.high %v5355_v42, %v5355_v42 }
 0x311   :  { %v5359_v55 = vadd.f32 %v5358_v49, %v5306_v41  ;;  %v5310_v8 = vadd.f32 %v5309_v62, %v5257_v4  ;;  %v5263_v49 = vadd.f32 %v11412_v63, %v5210_v60 }
 0x312   :  { %v5311_v39 = vpop.f32.mrf.mxu1  ;;  %v11463_v3 = vpack.c.bf16 %v8042_v43, %v5380_v38 }
 0x313   :  { %v5312_v7 = vadd.f32 %v5311_v39, %v5259_v29  ;;  %v5381_v56 = vcombine.low %v5357_v54, %v5359_v55  ;;  %v8043_v37 = vcombine.low %v5359_v55, %v5359_v55  ;;  %v11461_v39 = vpack.c.bf16 %v8041_v2, %v5379_v26 }
 0x314   :  { %v11424_v30 = vpop.f32.mrf.mxu1  ;;  %v5382_v58 = vcombine.high %v5357_v54, %v5359_v55  ;;  %v5363_v62 = vadd.f32 %v11414_v53, %v5310_v8  ;;  %v8044_v14 = vcombine.high %v5359_v55, %v5359_v55 }
 0x315   :  { %v5365_v15 = vadd.f32 %v5364_v47, %v5312_v7  ;;  %v11466_v28 = vpack.c.bf16 %v8043_v37, %v5381_v56  ;;  %v5314_v47 = vadd.f32 %v11424_v30, %v5261_v36  ;;  %v6808_v42 = vrot.slane %v11461_v39, %v9207_v61 }
 0x316   :  { %v11428_v52 = vpop.f32.mrf.mxu1  ;;  %v11481_v29 = vpack.c.bf16 %v8044_v14, %v5382_v58 }
 0x317   :  { %v8045_v63 = vcombine.low %v5365_v15, %v5365_v15  ;;  %v5384_v20 = vcombine.high %v5363_v62, %v5365_v15  ;;  %v8046_v18 = vcombine.high %v5365_v15, %v5365_v15 }
 0x319   :  { %v11492_v7 = vpack.c.bf16 %v8046_v18, %v5384_v20 }
 0x33a   :  { %v11420_v25 = vpop.f32.mrf.mxu0 }
 0x33c   :  { %v11422_v51 = vpop.f32.mrf.mxu0 }
 0x33e   :  { %v11426_v12 = vpop.f32.mrf.mxu0 }
 0x340   :  { %v11430_v24 = vpop.f32.mrf.mxu0 }
 0x342   :  { %v11438_v1 = vpop.f32.mrf.mxu0 }
 0x344   :  { %v11444_v32 = vpop.f32.mrf.mxu0 }
 0x346   :  { %v11449_v5 = vpop.f32.mrf.mxu0 }
 0x348   :  { %v6502_v45 = vpop.f32.mrf.mxu1  ;;  %v11452_v33 = vpop.f32.mrf.mxu0 }
 0x349   :  { %v6503_v50 = vadd.f32 %v6502_v45, %v11441_v0  ;;  %v5383_v45 = vcombine.low %v5363_v62, %v5365_v15 }
 0x34a   :  { %v6504_v31 = vpop.f32.mrf.mxu1 }
 0x34b   :  { %v6505_v21 = vadd.f32 %v6504_v31, %v11436_v34  ;;  %v6556_v22 = vadd.f32 %v11420_v25, %v6503_v50  ;;  %v5316_v31 = vadd.f32 %v11428_v52, %v5263_v49  ;;  %v6825_v52 = vrot.slane %v11463_v3, %v9207_v61 }
 0x34c   :  { %v6506_v13 = vpop.f32.mrf.mxu1  ;;  %v11483_v55 = vpack.c.bf16 %v8045_v63, %v5383_v45 }
 0x34d   :  { %v6507_v48 = vadd.f32 %v6506_v13, %v11441_v0  ;;  %v6558_v53 = vadd.f32 %v11422_v51, %v6505_v21  ;;  %v6842_v13 = vrot.slane %v11466_v28, %v9207_v61  ;;  %v11486_v51 = vadd.f32 %v11416_v27, %v5314_v47 }
 0x34e   :  { %v6508_v11 = vpop.f32.mrf.mxu1  ;;  %v11489_v4 = vadd.f32 %v11418_v46, %v5316_v31 }
 0x34f   :  { %v6509_v30 = vadd.f32 %v6508_v11, %v11436_v34  ;;  %v6560_v11 = vadd.f32 %v11426_v12, %v6507_v48 }
 0x350   :  { %v6512_v9 = vpop.f32.mrf.mxu1  ;;  %v5385_v50 = vcombine.low %v11486_v51, %v11489_v4  ;;  %v8048_v49 = vcombine.high %v11489_v4, %v11489_v4 }
 0x351   :  { %v6513_v25 = vadd.f32 %v6512_v9, %v11441_v0  ;;  %v6562_v43 = vadd.f32 %v11430_v24, %v6509_v30 }
 0x352   :  { %v6514_v23 = vpop.f32.mrf.mxu1 }
 0x353   :  { %v6515_v59 = vadd.f32 %v6514_v23, %v11436_v34  ;;  %v6566_v8 = vadd.f32 %v11438_v1, %v6513_v25  ;;  %v5386_v23 = vcombine.high %v11486_v51, %v11489_v4 }
 0x354   :  { %v6516_v6 = vpop.f32.mrf.mxu1 }
 0x355   :  { %v6517_v38 = vadd.f32 %v6516_v6, %v11441_v0  ;;  %v6568_v1 = vadd.f32 %v11444_v32, %v6515_v59 }
 0x356   :  { %v6518_v35 = vpop.f32.mrf.mxu1 }
 0x357   :  { %v6519_v21 = vadd.f32 %v6518_v35, %v11436_v34 }
 0x37a   :  { %v6661_v44 = vpop.f32.mrf.mxu0 }
 0x37c   :  { %v6663_v10 = vpop.f32.mrf.mxu0 }
 0x37e   :  { %v6665_v40 = vpop.f32.mrf.mxu0 }
 0x380   :  { %v6667_v41 = vpop.f32.mrf.mxu0 }
 0x382   :  { %v6671_v60 = vpop.f32.mrf.mxu0 }
 0x384   :  { %v6673_v6 = vpop.f32.mrf.mxu0 }
 0x386   :  { %v6675_v18 = vpop.f32.mrf.mxu0 }
 0x388   :  { %v6608_v17 = vpop.f32.mrf.mxu1 }
 0x389   :  { %v6609_v19 = vadd.f32 %v6608_v17, %v6556_v22  ;;  %v6570_v22 = vadd.f32 %v11449_v5, %v6517_v38 }
 0x38a   :  { %v6610_v57 = vpop.f32.mrf.mxu1 }
 0x38b   :  { %v6611_v16 = vadd.f32 %v6610_v57, %v6558_v53  ;;  %v6662_v26 = vadd.f32 %v6661_v44, %v6609_v19  ;;  %v8047_v44 = vcombine.low %v11489_v4, %v11489_v4  ;;  %v6572_v53 = vadd.f32 %v11452_v33, %v6519_v21 }
 0x38c   :  { %v6612_v9 = vpop.f32.mrf.mxu1  ;;  %v6876_v4 = vrot.slane %v11483_v55, %v9207_v61 }
 0x38d   :  { %v6664_v54 = vadd.f32 %v6663_v10, %v6611_v16  ;;  %v6613_v2 = vadd.f32 %v6612_v9, %v6560_v11  ;;  %v6893_v11 = vrot.slane %v11492_v7, %v9207_v61  ;;  %v6677_v9 = vpop.f32.mrf.mxu0 }
 0x38e   :  { %v6614_v27 = vpop.f32.mrf.mxu1 }
 0x38f   :  { %v6688_v46 = vcombine.low %v6662_v26, %v6664_v54  ;;  %v6689_v56 = vcombine.high %v6662_v26, %v6664_v54  ;;  %v8049_v37 = vcombine.low %v6664_v54, %v6664_v54  ;;  %v8050_v12 = vcombine.high %v6664_v54, %v6664_v54 }
 0x390   :  { %v6615_v0 = vadd.f32 %v6614_v27, %v6562_v43  ;;  %v6618_v10 = vpop.f32.mrf.mxu1  ;;  %v6666_v39 = vadd.f32 %v6665_v40, %v6613_v2  ;;  %v8069_v2 = vpack.c.bf16 %v8047_v44, %v5385_v50  ;;  %v8071_v43 = vpack.c.bf16 %v8048_v49, %v5386_v23 }
 0x391   :  { %v8058_v24 = vpack.c.bf16 %v8049_v37, %v6688_v46  ;;  %v8060_v15 = vpack.c.bf16 %v8050_v12, %v6689_v56  ;;  %v6619_v36 = vadd.f32 %v6618_v10, %v6566_v8 }
 0x392   :  { %v6668_v3 = vadd.f32 %v6667_v41, %v6615_v0  ;;  %v6620_v58 = vpop.f32.mrf.mxu1  ;;  %v6910_v50 = vrot.slane %v8069_v2, %v9207_v61  ;;  %v6927_v23 = vrot.slane %v8071_v43, %v9207_v61 }
 0x393   :  { %v6815_v62 = vrot.slane %v8058_v24, %v9207_v61  ;;  %v6832_v14 = vrot.slane %v8060_v15, %v9207_v61  ;;  %v6621_v47 = vadd.f32 %v6620_v58, %v6568_v1  ;;  %v6672_v19 = vadd.f32 %v6671_v60, %v6619_v36 }
 0x394   :  { %v6690_v45 = vcombine.low %v6666_v39, %v6668_v3  ;;  %v6691_v63 = vcombine.high %v6666_v39, %v6668_v3  ;;  %v8051_v31 = vcombine.low %v6668_v3, %v6668_v3  ;;  %v8052_v48 = vcombine.high %v6668_v3, %v6668_v3  ;;  %v6622_v32 = vpop.f32.mrf.mxu1 }
 0x395   :  { %v6816_v17 = vcombine.low %v6808_v42, %v6815_v62  ;;  %v6833_v20 = vcombine.low %v6825_v52, %v6832_v14  ;;  %v6674_v34 = vadd.f32 %v6673_v6, %v6621_v47  ;;  %v6623_v41 = vadd.f32 %v6622_v32, %v6570_v22 }
 0x396   :  { %v8062_v40 = vpack.c.bf16 %v8051_v31, %v6690_v45  ;;  %v8064_v35 = vpack.c.bf16 %v8052_v48, %v6691_v63  ;;  %v6624_v30 = vpop.f32.mrf.mxu1  ;;  %v6859_v52 = vrot.slane %v11481_v29, %v9207_v61 }
 0x397   :  { %8073 = vst [vmem:[%s11558_s5 + $0x8] sm:$0xff] %v6816_v17  ;;  %8074 = vst [vmem:[%s11558_s5 + $0x18] sm:$0xff] %v6833_v20  ;;  %v6692_v5 = vcombine.low %v6672_v19, %v6674_v34  ;;  %v6693_v42 = vcombine.high %v6672_v19, %v6674_v34  ;;  %v8053_v25 = vcombine.low %v6674_v34, %v6674_v34 }
 0x398   :  { %v8054_v57 = vcombine.high %v6674_v34, %v6674_v34  ;;  %v6849_v16 = vrot.slane %v8062_v40, %v9207_v61  ;;  %v6866_v33 = vrot.slane %v8064_v35, %v9207_v61  ;;  %v6625_v51 = vadd.f32 %v6624_v30, %v6572_v53 }
 0x399   :  { %v8066_v59 = vpack.c.bf16 %v8053_v25, %v6692_v5  ;;  %v6676_v29 = vadd.f32 %v6675_v18, %v6623_v41 }
 0x39a   :  { %v8068_v60 = vpack.c.bf16 %v8054_v57, %v6693_v42  ;;  %v6850_v26 = vcombine.low %v6842_v13, %v6849_v16  ;;  %v6867_v54 = vcombine.low %v6859_v52, %v6866_v33  ;;  %v6678_v38 = vadd.f32 %v6677_v9, %v6625_v51 }
 0x39b   :  { %v6883_v27 = vrot.slane %v8066_v59, %v9207_v61 }
 0x39c   :  { %v6900_v8 = vrot.slane %v8068_v60, %v9207_v61  ;;  %8075 = vst [vmem:[%s11558_s5 + $0x28] sm:$0xff] %v6850_v26  ;;  %8076 = vst [vmem:[%s11558_s5 + $0x38] sm:$0xff] %v6867_v54  ;;  %v6694_v55 = vcombine.low %v6676_v29, %v6678_v38  ;;  %v6695_v28 = vcombine.high %v6676_v29, %v6678_v38 }
 0x39d   :  { %v8055_v13 = vcombine.low %v6678_v38, %v6678_v38  ;;  %v8056_v7 = vcombine.high %v6678_v38, %v6678_v38  ;;  %v6884_v46 = vcombine.low %v6876_v4, %v6883_v27 }
 0x39e   :  { %v6901_v56 = vcombine.low %v6893_v11, %v6900_v8 }
 0x39f   :  { %v8070_v37 = vpack.c.bf16 %v8055_v13, %v6694_v55  ;;  %v8072_v12 = vpack.c.bf16 %v8056_v7, %v6695_v28  ;;  %8077 = vst [vmem:[%s11558_s5 + $0x48] sm:$0xff] %v6884_v46 }
 0x3a0   :  { %8078 = vst [vmem:[%s11558_s5 + $0x58] sm:$0xff] %v6901_v56 }
 0x3a1   :  { %v6917_v44 = vrot.slane %v8070_v37, %v9207_v61  ;;  %v6934_v0 = vrot.slane %v8072_v12, %v9207_v61 }
 0x3a3   :  { %v6918_v10 = vcombine.low %v6910_v50, %v6917_v44  ;;  %v6935_v6 = vcombine.low %v6927_v23, %v6934_v0 }
 0x3a5   :  { %8079 = vst [vmem:[%s11558_s5 + $0x68] sm:$0xff] %v6918_v10  ;;  %8080 = vst [vmem:[%s11558_s5 + $0x78] sm:$0xff] %v6935_v6 }

</bundles_post_ra>
